<compile_context>
chip_gen: v6e
topology: v6e:2x2x1
jax: 0.10.0
libtpu: 0.0.40
codegen_flags: <defaults>
</compile_context>

<pallas_src>
import functools

import jax
import jax.numpy as jnp
from jax.experimental import pallas as pl
from jax.experimental.pallas import tpu as pltpu

TM_MAX = 512  # M-tile for the GEMM kernel (review: 128 -> 512)

_MOSAIC_PARAMS = pltpu.CompilerParams(
    dimension_semantics=("parallel",),        # shard M across TCs on v7x
    vmem_limit_bytes=32 * 1024 * 1024,        # explicit budget (<= v7x 64 MiB)
)


# ----------------------------- Pallas kernels ------------------------------

def _matmul_kernel(x_ref, w_ref, o_ref, *, relu):
    acc = jnp.dot(x_ref[...], w_ref[...], preferred_element_type=jnp.float32)
    if relu:
        acc = jnp.maximum(acc, 0.0)
    o_ref[...] = acc.astype(o_ref.dtype)


def _matmul_bias_kernel(x_ref, w_ref, b_ref, o_ref, *, relu):
    acc = jnp.dot(x_ref[...], w_ref[...], preferred_element_type=jnp.float32)
    acc = acc + b_ref[...]
    if relu:
        acc = jnp.maximum(acc, 0.0)
    o_ref[...] = acc.astype(o_ref.dtype)


def pallas_matmul(x, w, b=None, relu=False, out_dtype=jnp.bfloat16):
    """y = relu?(x @ w [+ b]); bf16 MXU operands, f32 accumulate.

    x:(M,K), w:(K,N), b:(N,) optional.  M tiled (ragged last block allowed, no
    padding copy); K and N kept as full resident blocks.
    """
    M, K = x.shape
    K2, N = w.shape
    assert K == K2
    x = x.astype(jnp.bfloat16)
    w = w.astype(jnp.bfloat16)

    tm = M if M <= TM_MAX else TM_MAX
    grid = (pl.cdiv(M, tm),)

    in_specs = [
        pl.BlockSpec((tm, K), lambda i: (i, 0)),
        pl.BlockSpec((K, N), lambda i: (0, 0)),
    ]
    operands = [x, w]
    if b is None:
        kernel = functools.partial(_matmul_kernel, relu=relu)
    else:
        in_specs.append(pl.BlockSpec((1, N), lambda i: (0, 0)))
        operands.append(b.reshape(1, N).astype(jnp.float32))
        kernel = functools.partial(_matmul_bias_kernel, relu=relu)

    return pl.pallas_call(
        kernel,
        out_shape=jax.ShapeDtypeStruct((M, N), out_dtype),
        grid_spec=pltpu.PrefetchScalarGridSpec(
            num_scalar_prefetch=0,
            grid=grid,
            in_specs=in_specs,
            out_specs=pl.BlockSpec((tm, N), lambda i: (i, 0)),
        ),
        compiler_params=_MOSAIC_PARAMS,
    )(*operands)


def _tail_kernel(flat_ref, ewm_ref, ebm_ref, ewl_ref, ebl_ref, eps_ref,
                 dw_ref, db_ref, cw_ref,
                 mu_ref, logvar_ref, z_ref, h1_ref):
    """Fused: encoder FC (split into mu / logvar heads), reparametrize,
    decoder FC (+ReLU), and the 1x1-input ConvTranspose (+ReLU) as a matmul."""
    flat = flat_ref[...]
    mu = jnp.dot(flat, ewm_ref[...], preferred_element_type=jnp.float32) + ebm_ref[...]
    logvar = jnp.dot(flat, ewl_ref[...], preferred_element_type=jnp.float32) + ebl_ref[...]
    z = mu + jnp.exp(logvar * 0.5) * eps_ref[...]

    d = jnp.dot(z.astype(dw_ref.dtype), dw_ref[...],
                preferred_element_type=jnp.float32) + db_ref[...]
    d = jnp.maximum(d, 0.0)

    h1 = jnp.dot(d.astype(cw_ref.dtype), cw_ref[...],
                 preferred_element_type=jnp.float32)
    h1 = jnp.maximum(h1, 0.0)

    mu_ref[...] = mu
    logvar_ref[...] = logvar
    z_ref[...] = z
    h1_ref[...] = h1.astype(h1_ref.dtype)


def pallas_vae_tail(flat, p, eps):
    n = flat.shape[0]
    nz = eps.shape[1]
    h1_cols = p['d1'].shape[1]
    return pl.pallas_call(
        _tail_kernel,
        out_shape=(
            jax.ShapeDtypeStruct((n, nz), jnp.float32),      # mu
            jax.ShapeDtypeStruct((n, nz), jnp.float32),      # logvar
            jax.ShapeDtypeStruct((n, nz), jnp.float32),      # z
            jax.ShapeDtypeStruct((n, h1_cols), jnp.bfloat16),  # ConvT1 output
        ),
    )(flat.astype(jnp.bfloat16),
      p['efc_w_mu'], p['efc_b_mu'], p['efc_w_lv'], p['efc_b_lv'],
      eps.astype(jnp.float32),
      p['dfc_w'], p['dfc_b'], p['d1'])


# ------------------------- conv lowering (im2col glue) ---------------------

def im2col(x_nhwc, kh, kw, stride, pad):
    if pad:
        x = jnp.pad(x_nhwc, ((0, 0), (pad, pad), (pad, pad), (0, 0)))
    else:
        x = x_nhwc
    n, h, w, c = x.shape
    oh = (h - kh) // stride + 1
    ow = (w - kw) // stride + 1
    cols = []
    for i in range(kh):
        for j in range(kw):
            cols.append(x[:, i:i + stride * oh:stride,
                          j:j + stride * ow:stride, :])
    p = jnp.stack(cols, axis=3)                       # (N, oh, ow, kh*kw, C)
    return p.reshape(n * oh * ow, kh * kw * c), (n, oh, ow)


def conv2d(x_nhwc, wm, kh, kw, stride, pad, b=None, relu=True,
           out_dtype=jnp.bfloat16):
    """Matches nn.Conv2d (+ optional bias + fused ReLU). wm: (kh*kw*ci, co)."""
    co = wm.shape[1]
    cols, (n, oh, ow) = im2col(x_nhwc, kh, kw, stride, pad)
    y = pallas_matmul(cols, wm, b=b, relu=relu, out_dtype=out_dtype)
    return y.reshape(n, oh, ow, co)


def conv_transpose2d_s2(x_nhwc, wm4, relu=True, out_dtype=jnp.bfloat16):
    """nn.ConvTranspose2d(k=4, stride=2, padding=1, bias=False) + ReLU via the
    sub-pixel decomposition: one GEMM over a 3x3/stride-1 im2col of the
    *undilated* input produces all 4 output-parity phases (4*Cout columns);
    the phases are then interleaved into the (2H, 2W) output."""
    n, h, w, _ = x_nhwc.shape
    co = wm4.shape[1] // 4
    cols, _ = im2col(x_nhwc, 3, 3, 1, 1)              # rows = n*h*w, K = 9*ci
    y = pallas_matmul(cols, wm4, relu=relu, out_dtype=out_dtype)
    y = y.reshape(n, h, w, 2, 2, co)                  # (..., ry, rx, co)
    y = jnp.transpose(y, (0, 1, 3, 2, 4, 5)).reshape(n, 2 * h, 2 * w, co)
    return y


# ----------------------- weight preparation (one-time) ----------------------

def _conv_gemm_weight(w_oihw):
    co, ci, kh, kw = w_oihw.shape
    return jnp.transpose(w_oihw, (2, 3, 1, 0)).reshape(
        kh * kw * ci, co).astype(jnp.bfloat16)


def _deconv_s2_gemm_weight(w_iohw):
    """ConvTranspose2d(k=4, s=2, p=1) -> merged 4-phase sub-pixel GEMM weight.

    For output row oy = 2t + ry:
      ry=0: out = w[3]*in[t-1] + w[1]*in[t]   (window rows a=0,1 of the padded
                                               3x3 window centered at t)
      ry=1: out = w[2]*in[t]   + w[0]*in[t+1] (window rows a=1,2)
    (same along x).  Each phase is a 2x2-tap kernel placed inside a 3x3 window
    over the once-padded input; phases are concatenated along output channels.
    """
    ci, co, kh, kw = w_iohw.shape
    assert kh == 4 and kw == 4
    taps = {0: ((0, 3), (1, 1)), 1: ((1, 2), (2, 0))}   # (window_pos, kernel_idx)
    phase_mats = []
    for ry in (0, 1):
        for rx in (0, 1):
            k3 = jnp.zeros((3, 3, ci, co), w_iohw.dtype)
            for a, ky in taps[ry]:
                for b_, kx in taps[rx]:
                    k3 = k3.at[a, b_].set(w_iohw[:, :, ky, kx])
            phase_mats.append(k3.reshape(9 * ci, co))
    return jnp.concatenate(phase_mats, axis=1).astype(jnp.bfloat16)   # (9ci, 4co)


def _deconv1x1_gemm_weight(w_iohw):
    """ConvTranspose2d(k=4, s=1, p=0) on a 1x1 input == outer product:
    out[n, ky, kx, co] = sum_ci in[n, ci] * W[ci, co, ky, kx]."""
    ci, co, kh, kw = w_iohw.shape
    return jnp.transpose(w_iohw, (0, 2, 3, 1)).reshape(
        ci, kh * kw * co).astype(jnp.bfloat16)


def init_params(key, nc, nz, nef):
    keys = jax.random.split(key, 15)

    def w(k, shape, scale=0.05):
        return jax.random.normal(k, shape, jnp.float32) * scale

    return {
        # Encoder (Conv2d weight layout: (Cout, Cin, kh, kw))
        'e_conv1': w(keys[0], (nef, nc, 4, 4)),
        'e_conv2': w(keys[1], (nef * 2, nef, 4, 4)),
        'e_conv3': w(keys[2], (nef * 4, nef * 2, 4, 4)),
        'e_conv4': w(keys[3], (nef * 8, nef * 4, 4, 4)),
        'e_conv5': w(keys[4], (nef * 16, nef * 8, 4, 4)),
        'e_conv5_b': w(keys[5], (nef * 16,)),          # Conv2d default bias=True
        'e_fc_w': w(keys[6], (nz * 2, nef * 16)),      # nn.Linear(nef*16, nz*2)
        'e_fc_b': w(keys[7], (nz * 2,)),
        # Decoder
        'd_fc_w': w(keys[8], (nef * 16, nz)),          # nn.Linear(nz, nef*16)
        'd_fc_b': w(keys[9], (nef * 16,)),
        # ConvTranspose2d weight layout: (Cin, Cout, kh, kw)
        'd_conv1': w(keys[10], (nef * 16, nef * 8, 4, 4)),
        'd_conv2': w(keys[11], (nef * 8, nef * 4, 4, 4)),
        'd_conv3': w(keys[12], (nef * 4, nef * 2, 4, 4)),
        'd_conv4': w(keys[13], (nef * 2, nef, 4, 4)),
        'd_conv5': w(keys[14], (nef, nc, 4, 4)),
    }


def prepare_params(raw, nz):
    """One-time GEMM-layout + bf16 conversion of every weight."""
    f32 = jnp.float32
    return {
        'e1': _conv_gemm_weight(raw['e_conv1']),
        'e2': _conv_gemm_weight(raw['e_conv2']),
        'e3': _conv_gemm_weight(raw['e_conv3']),
        'e4': _conv_gemm_weight(raw['e_conv4']),
        'e5': _conv_gemm_weight(raw['e_conv5']),
        'e5_b': raw['e_conv5_b'].astype(f32),
        # Linear(nef*16 -> 2nz), split into mu / logvar heads at prepare time.
        'efc_w_mu': raw['e_fc_w'][:nz].T.astype(jnp.bfloat16),
        'efc_w_lv': raw['e_fc_w'][nz:].T.astype(jnp.bfloat16),
        'efc_b_mu': raw['e_fc_b'][:nz].reshape(1, -1).astype(f32),
        'efc_b_lv': raw['e_fc_b'][nz:].reshape(1, -1).astype(f32),
        'dfc_w': raw['d_fc_w'].T.astype(jnp.bfloat16),
        'dfc_b': raw['d_fc_b'].reshape(1, -1).astype(f32),
        'd1': _deconv1x1_gemm_weight(raw['d_conv1']),
        'd2': _deconv_s2_gemm_weight(raw['d_conv2']),
        'd3': _deconv_s2_gemm_weight(raw['d_conv3']),
        'd4': _deconv_s2_gemm_weight(raw['d_conv4']),
        'd5': _deconv_s2_gemm_weight(raw['d_conv5']),
    }


# ------------------------------- EDNet model --------------------------------

@jax.jit
def ednet_forward(p, x_nchw, eps):
    # Encoder
    x = jnp.transpose(x_nchw, (0, 2, 3, 1)).astype(jnp.bfloat16)  # NCHW -> NHWC
    h = conv2d(x, p['e1'], 4, 4, 2, 1)                 # /2, ReLU
    h = conv2d(h, p['e2'], 4, 4, 2, 1)
    h = conv2d(h, p['e3'], 4, 4, 2, 1)
    h = conv2d(h, p['e4'], 4, 4, 2, 1)
    h = conv2d(h, p['e5'], 4, 4, 1, 0, b=p['e5_b'])    # -> (N,1,1,nef*16), ReLU
    n = h.shape[0]
    flat = h.reshape(n, -1)                            # spatial is 1x1

    # Fused tail: encoder FC, reparametrize, decoder FC(+ReLU), ConvT1(+ReLU)
    mu, logvar, z, h1 = pallas_vae_tail(flat, p, eps)

    # Decoder (remaining stride-2 transposed convs, sub-pixel GEMMs)
    co1 = p['d1'].shape[1] // 16
    d = h1.reshape(n, 4, 4, co1)                       # ConvT1 output: 1 -> 4
    d = conv_transpose2d_s2(d, p['d2'])                # 4  -> 8
    d = conv_transpose2d_s2(d, p['d3'])                # 8  -> 16
    d = conv_transpose2d_s2(d, p['d4'])                # 16 -> 32
    d = conv_transpose2d_s2(d, p['d5'], out_dtype=jnp.float32)   # 32 -> 64
    R = jnp.transpose(d, (0, 3, 1, 2))                 # NHWC -> NCHW
    return R, mu, logvar, z


# ----------------------------------- main -----------------------------------

if __name__ == "__main__":
    # The architecture (4 stride-2 convs then a 4x4 valid conv to 1x1) requires
    # 64x64 spatial input; small everywhere else.
    batch, nc, nz, nef = 2, 3, 16, 8

    key = jax.random.PRNGKey(0)
    k_params, k_x, k_eps = jax.random.split(key, 3)

    raw_params = init_params(k_params, nc, nz, nef)
    params = prepare_params(raw_params, nz)

    x = jax.random.normal(k_x, (batch, nc, 64, 64), jnp.float32)
    eps = jax.random.normal(k_eps, (batch, nz), jnp.float32)  # reparam noise

    R, mu, logvar, z = ednet_forward(params, x, eps)
    jax.block_until_ready((R, mu, logvar, z))

    assert R.shape == (batch, nc, 64, 64)
    assert mu.shape == (batch, nz) and logvar.shape == (batch, nz)
    assert z.shape == (batch, nz)

    print("KERNEL_OK")
</pallas_src>

<mosaic_0001>
module attributes {stable_mosaic.version = 11 : i64} {
  func.func @_matmul_kernel(%arg0: i32, %arg1: memref<512x48xbf16, #tpu.memory_space<vmem>>, %arg2: memref<48x8xbf16, #tpu.memory_space<vmem>>, %arg3: memref<512x8xbf16, #tpu.memory_space<vmem>>) attributes {dimension_semantics = [#tpu.dimension_semantics<parallel>], iteration_bounds = array<i64: 4>, scalar_prefetch = 0 : i64, scratch_operands = 0 : i64, tpu.core_type = #tpu.core_type<tc>, window_params = [{transform_indices = @transform_0, window_bounds = array<i64: 512, 48>}, {pipeline_mode = #tpu.pipeline_mode<synchronous>, transform_indices = @transform_1, window_bounds = array<i64: 48, 8>}, {transform_indices = @transform_2, window_bounds = array<i64: 512, 8>}]} {
    %c0 = arith.constant 0 : index
    %c0_0 = arith.constant 0 : index
    %0 = vector.load %arg1[%c0, %c0_0] : memref<512x48xbf16, #tpu.memory_space<vmem>>, vector<512x48xbf16>
    %c0_1 = arith.constant 0 : index
    %c0_2 = arith.constant 0 : index
    %1 = vector.load %arg2[%c0_1, %c0_2] : memref<48x8xbf16, #tpu.memory_space<vmem>>, vector<48x8xbf16>
    %cst = arith.constant dense<0.000000e+00> : vector<512x8xf32>
    %2 = tpu.matmul %0, %1, %cst {dimension_numbers = #tpu.dot_dimension_numbers<[1], [0], [0], [1], [0, 0, 1, 1], [], []>} : vector<512x48xbf16>, vector<48x8xbf16>, vector<512x8xf32> -> vector<512x8xf32>
    %cst_3 = arith.constant 0.000000e+00 : f32
    %3 = vector.broadcast %cst_3 : f32 to vector<512x8xf32>
    %4 = arith.maximumf %2, %3 : vector<512x8xf32>
    %5 = arith.truncf %4 : vector<512x8xf32> to vector<512x8xbf16>
    %c0_4 = arith.constant 0 : index
    %c0_5 = arith.constant 0 : index
    %6 = vector.load %arg3[%c0_4, %c0_5] : memref<512x8xbf16, #tpu.memory_space<vmem>>, vector<512x8xbf16>
    tpu.vector_store %arg3[%c0_4, %c0_5], %5 {strides = array<i32>} : memref<512x8xbf16, #tpu.memory_space<vmem>>, vector<512x8xbf16>,
    return
  }
  func.func @transform_0(%arg0: i32) -> (i32, i32) {
    %c0_i32 = arith.constant 0 : i32
    %c0_i32_0 = arith.constant 0 : i32
    return %arg0, %c0_i32 : i32, i32
  }
  func.func @transform_1(%arg0: i32) -> (i32, i32) {
    %c0_i32 = arith.constant 0 : i32
    %c0_i32_0 = arith.constant 0 : i32
    %c0_i32_1 = arith.constant 0 : i32
    return %c0_i32, %c0_i32_0 : i32, i32
  }
  func.func @transform_2(%arg0: i32) -> (i32, i32) {
    %c0_i32 = arith.constant 0 : i32
    %c0_i32_0 = arith.constant 0 : i32
    return %arg0, %c0_i32 : i32, i32
  }
}

module attributes {stable_mosaic.version = 11 : i64} {
  func.func @_matmul_kernel(%arg0: i32, %arg1: memref<512x128xbf16, #tpu.memory_space<vmem>>, %arg2: memref<128x16xbf16, #tpu.memory_space<vmem>>, %arg3: memref<512x16xbf16, #tpu.memory_space<vmem>>) attributes {dimension_semantics = [#tpu.dimension_semantics<parallel>], iteration_bounds = array<i64: 1>, scalar_prefetch = 0 : i64, scratch_operands = 0 : i64, tpu.core_type = #tpu.core_type<tc>, window_params = [{transform_indices = @transform_0, window_bounds = array<i64: 512, 128>}, {pipeline_mode = #tpu.pipeline_mode<synchronous>, transform_indices = @transform_1, window_bounds = array<i64: 128, 16>}, {transform_indices = @transform_2, window_bounds = array<i64: 512, 16>}]} {
    %c0 = arith.constant 0 : index
    %c0_0 = arith.constant 0 : index
    %0 = vector.load %arg1[%c0, %c0_0] : memref<512x128xbf16, #tpu.memory_space<vmem>>, vector<512x128xbf16>
    %c0_1 = arith.constant 0 : index
    %c0_2 = arith.constant 0 : index
    %1 = vector.load %arg2[%c0_1, %c0_2] : memref<128x16xbf16, #tpu.memory_space<vmem>>, vector<128x16xbf16>
    %cst = arith.constant dense<0.000000e+00> : vector<512x16xf32>
    %2 = tpu.matmul %0, %1, %cst {dimension_numbers = #tpu.dot_dimension_numbers<[1], [0], [0], [1], [0, 0, 1, 1], [], []>} : vector<512x128xbf16>, vector<128x16xbf16>, vector<512x16xf32> -> vector<512x16xf32>
    %cst_3 = arith.constant 0.000000e+00 : f32
    %3 = vector.broadcast %cst_3 : f32 to vector<512x16xf32>
    %4 = arith.maximumf %2, %3 : vector<512x16xf32>
    %5 = arith.truncf %4 : vector<512x16xf32> to vector<512x16xbf16>
    %c0_4 = arith.constant 0 : index
    %c0_5 = arith.constant 0 : index
    %6 = vector.load %arg3[%c0_4, %c0_5] : memref<512x16xbf16, #tpu.memory_space<vmem>>, vector<512x16xbf16>
    tpu.vector_store %arg3[%c0_4, %c0_5], %5 {strides = array<i32>} : memref<512x16xbf16, #tpu.memory_space<vmem>>, vector<512x16xbf16>,
    return
  }
  func.func @transform_0(%arg0: i32) -> (i32, i32) {
    %c0_i32 = arith.constant 0 : i32
    %c0_i32_0 = arith.constant 0 : i32
    return %arg0, %c0_i32 : i32, i32
  }
  func.func @transform_1(%arg0: i32) -> (i32, i32) {
    %c0_i32 = arith.constant 0 : i32
    %c0_i32_0 = arith.constant 0 : i32
    %c0_i32_1 = arith.constant 0 : i32
    return %c0_i32, %c0_i32_0 : i32, i32
  }
  func.func @transform_2(%arg0: i32) -> (i32, i32) {
    %c0_i32 = arith.constant 0 : i32
    %c0_i32_0 = arith.constant 0 : i32
    return %arg0, %c0_i32 : i32, i32
  }
}

module attributes {stable_mosaic.version = 11 : i64} {
  func.func @_matmul_kernel(%arg0: i32, %arg1: memref<128x256xbf16, #tpu.memory_space<vmem>>, %arg2: memref<256x32xbf16, #tpu.memory_space<vmem>>, %arg3: memref<128x32xbf16, #tpu.memory_space<vmem>>) attributes {dimension_semantics = [#tpu.dimension_semantics<parallel>], iteration_bounds = array<i64: 1>, scalar_prefetch = 0 : i64, scratch_operands = 0 : i64, tpu.core_type = #tpu.core_type<tc>, window_params = [{transform_indices = @transform_0, window_bounds = array<i64: 128, 256>}, {pipeline_mode = #tpu.pipeline_mode<synchronous>, transform_indices = @transform_1, window_bounds = array<i64: 256, 32>}, {transform_indices = @transform_2, window_bounds = array<i64: 128, 32>}]} {
    %c0 = arith.constant 0 : index
    %c0_0 = arith.constant 0 : index
    %0 = vector.load %arg1[%c0, %c0_0] : memref<128x256xbf16, #tpu.memory_space<vmem>>, vector<128x256xbf16>
    %c0_1 = arith.constant 0 : index
    %c0_2 = arith.constant 0 : index
    %1 = vector.load %arg2[%c0_1, %c0_2] : memref<256x32xbf16, #tpu.memory_space<vmem>>, vector<256x32xbf16>
    %cst = arith.constant dense<0.000000e+00> : vector<128x32xf32>
    %2 = tpu.matmul %0, %1, %cst {dimension_numbers = #tpu.dot_dimension_numbers<[1], [0], [0], [1], [0, 0, 1, 1], [], []>} : vector<128x256xbf16>, vector<256x32xbf16>, vector<128x32xf32> -> vector<128x32xf32>
    %cst_3 = arith.constant 0.000000e+00 : f32
    %3 = vector.broadcast %cst_3 : f32 to vector<128x32xf32>
    %4 = arith.maximumf %2, %3 : vector<128x32xf32>
    %5 = arith.truncf %4 : vector<128x32xf32> to vector<128x32xbf16>
    %c0_4 = arith.constant 0 : index
    %c0_5 = arith.constant 0 : index
    %6 = vector.load %arg3[%c0_4, %c0_5] : memref<128x32xbf16, #tpu.memory_space<vmem>>, vector<128x32xbf16>
    tpu.vector_store %arg3[%c0_4, %c0_5], %5 {strides = array<i32>} : memref<128x32xbf16, #tpu.memory_space<vmem>>, vector<128x32xbf16>,
    return
  }
  func.func @transform_0(%arg0: i32) -> (i32, i32) {
    %c0_i32 = arith.constant 0 : i32
    %c0_i32_0 = arith.constant 0 : i32
    return %arg0, %c0_i32 : i32, i32
  }
  func.func @transform_1(%arg0: i32) -> (i32, i32) {
    %c0_i32 = arith.constant 0 : i32
    %c0_i32_0 = arith.constant 0 : i32
    %c0_i32_1 = arith.constant 0 : i32
    return %c0_i32, %c0_i32_0 : i32, i32
  }
  func.func @transform_2(%arg0: i32) -> (i32, i32) {
    %c0_i32 = arith.constant 0 : i32
    %c0_i32_0 = arith.constant 0 : i32
    return %arg0, %c0_i32 : i32, i32
  }
}

module attributes {stable_mosaic.version = 11 : i64} {
  func.func @_matmul_kernel(%arg0: i32, %arg1: memref<32x512xbf16, #tpu.memory_space<vmem>>, %arg2: memref<512x64xbf16, #tpu.memory_space<vmem>>, %arg3: memref<32x64xbf16, #tpu.memory_space<vmem>>) attributes {dimension_semantics = [#tpu.dimension_semantics<parallel>], iteration_bounds = array<i64: 1>, scalar_prefetch = 0 : i64, scratch_operands = 0 : i64, tpu.core_type = #tpu.core_type<tc>, window_params = [{transform_indices = @transform_0, window_bounds = array<i64: 32, 512>}, {pipeline_mode = #tpu.pipeline_mode<synchronous>, transform_indices = @transform_1, window_bounds = array<i64: 512, 64>}, {transform_indices = @transform_2, window_bounds = array<i64: 32, 64>}]} {
    %c0 = arith.constant 0 : index
    %c0_0 = arith.constant 0 : index
    %0 = vector.load %arg1[%c0, %c0_0] : memref<32x512xbf16, #tpu.memory_space<vmem>>, vector<32x512xbf16>
    %c0_1 = arith.constant 0 : index
    %c0_2 = arith.constant 0 : index
    %1 = vector.load %arg2[%c0_1, %c0_2] : memref<512x64xbf16, #tpu.memory_space<vmem>>, vector<512x64xbf16>
    %cst = arith.constant dense<0.000000e+00> : vector<32x64xf32>
    %2 = tpu.matmul %0, %1, %cst {dimension_numbers = #tpu.dot_dimension_numbers<[1], [0], [0], [1], [0, 0, 1, 1], [], []>} : vector<32x512xbf16>, vector<512x64xbf16>, vector<32x64xf32> -> vector<32x64xf32>
    %cst_3 = arith.constant 0.000000e+00 : f32
    %3 = vector.broadcast %cst_3 : f32 to vector<32x64xf32>
    %4 = arith.maximumf %2, %3 : vector<32x64xf32>
    %5 = arith.truncf %4 : vector<32x64xf32> to vector<32x64xbf16>
    %c0_4 = arith.constant 0 : index
    %c0_5 = arith.constant 0 : index
    %6 = vector.load %arg3[%c0_4, %c0_5] : memref<32x64xbf16, #tpu.memory_space<vmem>>, vector<32x64xbf16>
    tpu.vector_store %arg3[%c0_4, %c0_5], %5 {strides = array<i32>} : memref<32x64xbf16, #tpu.memory_space<vmem>>, vector<32x64xbf16>,
    return
  }
  func.func @transform_0(%arg0: i32) -> (i32, i32) {
    %c0_i32 = arith.constant 0 : i32
    %c0_i32_0 = arith.constant 0 : i32
    return %arg0, %c0_i32 : i32, i32
  }
  func.func @transform_1(%arg0: i32) -> (i32, i32) {
    %c0_i32 = arith.constant 0 : i32
    %c0_i32_0 = arith.constant 0 : i32
    %c0_i32_1 = arith.constant 0 : i32
    return %c0_i32, %c0_i32_0 : i32, i32
  }
  func.func @transform_2(%arg0: i32) -> (i32, i32) {
    %c0_i32 = arith.constant 0 : i32
    %c0_i32_0 = arith.constant 0 : i32
    return %arg0, %c0_i32 : i32, i32
  }
}

module attributes {stable_mosaic.version = 11 : i64} {
  func.func @_tail_kernel(%arg0: memref<2x128xbf16, #tpu.memory_space<vmem>>, %arg1: memref<128x16xbf16, #tpu.memory_space<vmem>>, %arg2: memref<1x16xf32, #tpu.memory_space<vmem>>, %arg3: memref<128x16xbf16, #tpu.memory_space<vmem>>, %arg4: memref<1x16xf32, #tpu.memory_space<vmem>>, %arg5: memref<2x16xf32, #tpu.memory_space<vmem>>, %arg6: memref<16x128xbf16, #tpu.memory_space<vmem>>, %arg7: memref<1x128xf32, #tpu.memory_space<vmem>>, %arg8: memref<128x1024xbf16, #tpu.memory_space<vmem>>, %arg9: memref<2x16xf32, #tpu.memory_space<vmem>>, %arg10: memref<2x16xf32, #tpu.memory_space<vmem>>, %arg11: memref<2x16xf32, #tpu.memory_space<vmem>>, %arg12: memref<2x1024xbf16, #tpu.memory_space<vmem>>) attributes {dimension_semantics = [], scalar_prefetch = 0 : i64, scratch_operands = 0 : i64, tpu.core_type = #tpu.core_type<tc>} {
    %c0 = arith.constant 0 : index
    %c0_0 = arith.constant 0 : index
    %0 = vector.load %arg0[%c0, %c0_0] : memref<2x128xbf16, #tpu.memory_space<vmem>>, vector<2x128xbf16>
    %c0_1 = arith.constant 0 : index
    %c0_2 = arith.constant 0 : index
    %1 = vector.load %arg1[%c0_1, %c0_2] : memref<128x16xbf16, #tpu.memory_space<vmem>>, vector<128x16xbf16>
    %cst = arith.constant dense<0.000000e+00> : vector<2x16xf32>
    %2 = tpu.matmul %0, %1, %cst {dimension_numbers = #tpu.dot_dimension_numbers<[1], [0], [0], [1], [0, 0, 1, 1], [], []>} : vector<2x128xbf16>, vector<128x16xbf16>, vector<2x16xf32> -> vector<2x16xf32>
    %c0_3 = arith.constant 0 : index
    %c0_4 = arith.constant 0 : index
    %3 = vector.load %arg2[%c0_3, %c0_4] : memref<1x16xf32, #tpu.memory_space<vmem>>, vector<1x16xf32>
    %4 = vector.broadcast %3 : vector<1x16xf32> to vector<2x16xf32>
    %5 = arith.addf %2, %4 : vector<2x16xf32>
    %c0_5 = arith.constant 0 : index
    %c0_6 = arith.constant 0 : index
    %6 = vector.load %arg3[%c0_5, %c0_6] : memref<128x16xbf16, #tpu.memory_space<vmem>>, vector<128x16xbf16>
    %cst_7 = arith.constant dense<0.000000e+00> : vector<2x16xf32>
    %7 = tpu.matmul %0, %6, %cst_7 {dimension_numbers = #tpu.dot_dimension_numbers<[1], [0], [0], [1], [0, 0, 1, 1], [], []>} : vector<2x128xbf16>, vector<128x16xbf16>, vector<2x16xf32> -> vector<2x16xf32>
    %c0_8 = arith.constant 0 : index
    %c0_9 = arith.constant 0 : index
    %8 = vector.load %arg4[%c0_8, %c0_9] : memref<1x16xf32, #tpu.memory_space<vmem>>, vector<1x16xf32>
    %9 = vector.broadcast %8 : vector<1x16xf32> to vector<2x16xf32>
    %10 = arith.addf %7, %9 : vector<2x16xf32>
    %cst_10 = arith.constant 5.000000e-01 : f32
    %11 = vector.broadcast %cst_10 : f32 to vector<2x16xf32>
    %12 = arith.mulf %10, %11 : vector<2x16xf32>
    %13 = math.exp %12 : vector<2x16xf32>
    %c0_11 = arith.constant 0 : index
    %c0_12 = arith.constant 0 : index
    %14 = vector.load %arg5[%c0_11, %c0_12] : memref<2x16xf32, #tpu.memory_space<vmem>>, vector<2x16xf32>
    %15 = arith.mulf %13, %14 : vector<2x16xf32>
    %16 = arith.addf %5, %15 : vector<2x16xf32>
    %17 = arith.truncf %16 : vector<2x16xf32> to vector<2x16xbf16>
    %c0_13 = arith.constant 0 : index
    %c0_14 = arith.constant 0 : index
    %18 = vector.load %arg6[%c0_13, %c0_14] : memref<16x128xbf16, #tpu.memory_space<vmem>>, vector<16x128xbf16>
    %cst_15 = arith.constant dense<0.000000e+00> : vector<2x128xf32>
    %19 = tpu.matmul %17, %18, %cst_15 {dimension_numbers = #tpu.dot_dimension_numbers<[1], [0], [0], [1], [0, 0, 1, 1], [], []>} : vector<2x16xbf16>, vector<16x128xbf16>, vector<2x128xf32> -> vector<2x128xf32>
    %c0_16 = arith.constant 0 : index
    %c0_17 = arith.constant 0 : index
    %20 = vector.load %arg7[%c0_16, %c0_17] : memref<1x128xf32, #tpu.memory_space<vmem>>, vector<1x128xf32>
    %21 = vector.broadcast %20 : vector<1x128xf32> to vector<2x128xf32>
    %22 = arith.addf %19, %21 : vector<2x128xf32>
    %cst_18 = arith.constant 0.000000e+00 : f32
    %23 = vector.broadcast %cst_18 : f32 to vector<2x128xf32>
    %24 = arith.maximumf %22, %23 : vector<2x128xf32>
    %25 = arith.truncf %24 : vector<2x128xf32> to vector<2x128xbf16>
    %c0_19 = arith.constant 0 : index
    %c0_20 = arith.constant 0 : index
    %26 = vector.load %arg8[%c0_19, %c0_20] : memref<128x1024xbf16, #tpu.memory_space<vmem>>, vector<128x1024xbf16>
    %cst_21 = arith.constant dense<0.000000e+00> : vector<2x1024xf32>
    %27 = tpu.matmul %25, %26, %cst_21 {dimension_numbers = #tpu.dot_dimension_numbers<[1], [0], [0], [1], [0, 0, 1, 1], [], []>} : vector<2x128xbf16>, vector<128x1024xbf16>, vector<2x1024xf32> -> vector<2x1024xf32>
    %cst_22 = arith.constant 0.000000e+00 : f32
    %28 = vector.broadcast %cst_22 : f32 to vector<2x1024xf32>
    %29 = arith.maximumf %27, %28 : vector<2x1024xf32>
    %c0_23 = arith.constant 0 : index
    %c0_24 = arith.constant 0 : index
    %30 = vector.load %arg9[%c0_23, %c0_24] : memref<2x16xf32, #tpu.memory_space<vmem>>, vector<2x16xf32>
    tpu.vector_store %arg9[%c0_23, %c0_24], %5 {strides = array<i32>} : memref<2x16xf32, #tpu.memory_space<vmem>>, vector<2x16xf32>,
    %c0_25 = arith.constant 0 : index
    %c0_26 = arith.constant 0 : index
    %31 = vector.load %arg10[%c0_25, %c0_26] : memref<2x16xf32, #tpu.memory_space<vmem>>, vector<2x16xf32>
    tpu.vector_store %arg10[%c0_25, %c0_26], %10 {strides = array<i32>} : memref<2x16xf32, #tpu.memory_space<vmem>>, vector<2x16xf32>,
    %c0_27 = arith.constant 0 : index
    %c0_28 = arith.constant 0 : index
    %32 = vector.load %arg11[%c0_27, %c0_28] : memref<2x16xf32, #tpu.memory_space<vmem>>, vector<2x16xf32>
    tpu.vector_store %arg11[%c0_27, %c0_28], %16 {strides = array<i32>} : memref<2x16xf32, #tpu.memory_space<vmem>>, vector<2x16xf32>,
    %33 = arith.truncf %29 : vector<2x1024xf32> to vector<2x1024xbf16>
    %c0_29 = arith.constant 0 : index
    %c0_30 = arith.constant 0 : index
    %34 = vector.load %arg12[%c0_29, %c0_30] : memref<2x1024xbf16, #tpu.memory_space<vmem>>, vector<2x1024xbf16>
    tpu.vector_store %arg12[%c0_29, %c0_30], %33 {strides = array<i32>} : memref<2x1024xbf16, #tpu.memory_space<vmem>>, vector<2x1024xbf16>,
    return
  }
}

module attributes {stable_mosaic.version = 11 : i64} {
  func.func @_matmul_bias_kernel(%arg0: i32, %arg1: memref<2x1024xbf16, #tpu.memory_space<vmem>>, %arg2: memref<1024x128xbf16, #tpu.memory_space<vmem>>, %arg3: memref<1x128xf32, #tpu.memory_space<vmem>>, %arg4: memref<2x128xbf16, #tpu.memory_space<vmem>>) attributes {dimension_semantics = [#tpu.dimension_semantics<parallel>], iteration_bounds = array<i64: 1>, scalar_prefetch = 0 : i64, scratch_operands = 0 : i64, tpu.core_type = #tpu.core_type<tc>, window_params = [{transform_indices = @transform_0, window_bounds = array<i64: 2, 1024>}, {pipeline_mode = #tpu.pipeline_mode<synchronous>, transform_indices = @transform_1, window_bounds = array<i64: 1024, 128>}, {pipeline_mode = #tpu.pipeline_mode<synchronous>, transform_indices = @transform_2, window_bounds = array<i64: 1, 128>}, {transform_indices = @transform_3, window_bounds = array<i64: 2, 128>}]} {
    %c0 = arith.constant 0 : index
    %c0_0 = arith.constant 0 : index
    %0 = vector.load %arg1[%c0, %c0_0] : memref<2x1024xbf16, #tpu.memory_space<vmem>>, vector<2x1024xbf16>
    %c0_1 = arith.constant 0 : index
    %c0_2 = arith.constant 0 : index
    %1 = vector.load %arg2[%c0_1, %c0_2] : memref<1024x128xbf16, #tpu.memory_space<vmem>>, vector<1024x128xbf16>
    %cst = arith.constant dense<0.000000e+00> : vector<2x128xf32>
    %2 = tpu.matmul %0, %1, %cst {dimension_numbers = #tpu.dot_dimension_numbers<[1], [0], [0], [1], [0, 0, 1, 1], [], []>} : vector<2x1024xbf16>, vector<1024x128xbf16>, vector<2x128xf32> -> vector<2x128xf32>
    %c0_3 = arith.constant 0 : index
    %c0_4 = arith.constant 0 : index
    %3 = vector.load %arg3[%c0_3, %c0_4] : memref<1x128xf32, #tpu.memory_space<vmem>>, vector<1x128xf32>
    %4 = vector.broadcast %3 : vector<1x128xf32> to vector<2x128xf32>
    %5 = arith.addf %2, %4 : vector<2x128xf32>
    %cst_5 = arith.constant 0.000000e+00 : f32
    %6 = vector.broadcast %cst_5 : f32 to vector<2x128xf32>
    %7 = arith.maximumf %5, %6 : vector<2x128xf32>
    %8 = arith.truncf %7 : vector<2x128xf32> to vector<2x128xbf16>
    %c0_6 = arith.constant 0 : index
    %c0_7 = arith.constant 0 : index
    %9 = vector.load %arg4[%c0_6, %c0_7] : memref<2x128xbf16, #tpu.memory_space<vmem>>, vector<2x128xbf16>
    tpu.vector_store %arg4[%c0_6, %c0_7], %8 {strides = array<i32>} : memref<2x128xbf16, #tpu.memory_space<vmem>>, vector<2x128xbf16>,
    return
  }
  func.func @transform_0(%arg0: i32) -> (i32, i32) {
    %c0_i32 = arith.constant 0 : i32
    %c0_i32_0 = arith.constant 0 : i32
    return %arg0, %c0_i32 : i32, i32
  }
  func.func @transform_1(%arg0: i32) -> (i32, i32) {
    %c0_i32 = arith.constant 0 : i32
    %c0_i32_0 = arith.constant 0 : i32
    %c0_i32_1 = arith.constant 0 : i32
    return %c0_i32, %c0_i32_0 : i32, i32
  }
  func.func @transform_2(%arg0: i32) -> (i32, i32) {
    %c0_i32 = arith.constant 0 : i32
    %c0_i32_0 = arith.constant 0 : i32
    %c0_i32_1 = arith.constant 0 : i32
    return %c0_i32, %c0_i32_0 : i32, i32
  }
  func.func @transform_3(%arg0: i32) -> (i32, i32) {
    %c0_i32 = arith.constant 0 : i32
    %c0_i32_0 = arith.constant 0 : i32
    return %arg0, %c0_i32 : i32, i32
  }
}

module attributes {stable_mosaic.version = 11 : i64} {
  func.func @_matmul_kernel(%arg0: i32, %arg1: memref<32x576xbf16, #tpu.memory_space<vmem>>, %arg2: memref<576x128xbf16, #tpu.memory_space<vmem>>, %arg3: memref<32x128xbf16, #tpu.memory_space<vmem>>) attributes {dimension_semantics = [#tpu.dimension_semantics<parallel>], iteration_bounds = array<i64: 1>, scalar_prefetch = 0 : i64, scratch_operands = 0 : i64, tpu.core_type = #tpu.core_type<tc>, window_params = [{transform_indices = @transform_0, window_bounds = array<i64: 32, 576>}, {pipeline_mode = #tpu.pipeline_mode<synchronous>, transform_indices = @transform_1, window_bounds = array<i64: 576, 128>}, {transform_indices = @transform_2, window_bounds = array<i64: 32, 128>}]} {
    %c0 = arith.constant 0 : index
    %c0_0 = arith.constant 0 : index
    %0 = vector.load %arg1[%c0, %c0_0] : memref<32x576xbf16, #tpu.memory_space<vmem>>, vector<32x576xbf16>
    %c0_1 = arith.constant 0 : index
    %c0_2 = arith.constant 0 : index
    %1 = vector.load %arg2[%c0_1, %c0_2] : memref<576x128xbf16, #tpu.memory_space<vmem>>, vector<576x128xbf16>
    %cst = arith.constant dense<0.000000e+00> : vector<32x128xf32>
    %2 = tpu.matmul %0, %1, %cst {dimension_numbers = #tpu.dot_dimension_numbers<[1], [0], [0], [1], [0, 0, 1, 1], [], []>} : vector<32x576xbf16>, vector<576x128xbf16>, vector<32x128xf32> -> vector<32x128xf32>
    %cst_3 = arith.constant 0.000000e+00 : f32
    %3 = vector.broadcast %cst_3 : f32 to vector<32x128xf32>
    %4 = arith.maximumf %2, %3 : vector<32x128xf32>
    %5 = arith.truncf %4 : vector<32x128xf32> to vector<32x128xbf16>
    %c0_4 = arith.constant 0 : index
    %c0_5 = arith.constant 0 : index
    %6 = vector.load %arg3[%c0_4, %c0_5] : memref<32x128xbf16, #tpu.memory_space<vmem>>, vector<32x128xbf16>
    tpu.vector_store %arg3[%c0_4, %c0_5], %5 {strides = array<i32>} : memref<32x128xbf16, #tpu.memory_space<vmem>>, vector<32x128xbf16>,
    return
  }
  func.func @transform_0(%arg0: i32) -> (i32, i32) {
    %c0_i32 = arith.constant 0 : i32
    %c0_i32_0 = arith.constant 0 : i32
    return %arg0, %c0_i32 : i32, i32
  }
  func.func @transform_1(%arg0: i32) -> (i32, i32) {
    %c0_i32 = arith.constant 0 : i32
    %c0_i32_0 = arith.constant 0 : i32
    %c0_i32_1 = arith.constant 0 : i32
    return %c0_i32, %c0_i32_0 : i32, i32
  }
  func.func @transform_2(%arg0: i32) -> (i32, i32) {
    %c0_i32 = arith.constant 0 : i32
    %c0_i32_0 = arith.constant 0 : i32
    return %arg0, %c0_i32 : i32, i32
  }
}

module attributes {stable_mosaic.version = 11 : i64} {
  func.func @_matmul_kernel(%arg0: i32, %arg1: memref<128x288xbf16, #tpu.memory_space<vmem>>, %arg2: memref<288x64xbf16, #tpu.memory_space<vmem>>, %arg3: memref<128x64xbf16, #tpu.memory_space<vmem>>) attributes {dimension_semantics = [#tpu.dimension_semantics<parallel>], iteration_bounds = array<i64: 1>, scalar_prefetch = 0 : i64, scratch_operands = 0 : i64, tpu.core_type = #tpu.core_type<tc>, window_params = [{transform_indices = @transform_0, window_bounds = array<i64: 128, 288>}, {pipeline_mode = #tpu.pipeline_mode<synchronous>, transform_indices = @transform_1, window_bounds = array<i64: 288, 64>}, {transform_indices = @transform_2, window_bounds = array<i64: 128, 64>}]} {
    %c0 = arith.constant 0 : index
    %c0_0 = arith.constant 0 : index
    %0 = vector.load %arg1[%c0, %c0_0] : memref<128x288xbf16, #tpu.memory_space<vmem>>, vector<128x288xbf16>
    %c0_1 = arith.constant 0 : index
    %c0_2 = arith.constant 0 : index
    %1 = vector.load %arg2[%c0_1, %c0_2] : memref<288x64xbf16, #tpu.memory_space<vmem>>, vector<288x64xbf16>
    %cst = arith.constant dense<0.000000e+00> : vector<128x64xf32>
    %2 = tpu.matmul %0, %1, %cst {dimension_numbers = #tpu.dot_dimension_numbers<[1], [0], [0], [1], [0, 0, 1, 1], [], []>} : vector<128x288xbf16>, vector<288x64xbf16>, vector<128x64xf32> -> vector<128x64xf32>
    %cst_3 = arith.constant 0.000000e+00 : f32
    %3 = vector.broadcast %cst_3 : f32 to vector<128x64xf32>
    %4 = arith.maximumf %2, %3 : vector<128x64xf32>
    %5 = arith.truncf %4 : vector<128x64xf32> to vector<128x64xbf16>
    %c0_4 = arith.constant 0 : index
    %c0_5 = arith.constant 0 : index
    %6 = vector.load %arg3[%c0_4, %c0_5] : memref<128x64xbf16, #tpu.memory_space<vmem>>, vector<128x64xbf16>
    tpu.vector_store %arg3[%c0_4, %c0_5], %5 {strides = array<i32>} : memref<128x64xbf16, #tpu.memory_space<vmem>>, vector<128x64xbf16>,
    return
  }
  func.func @transform_0(%arg0: i32) -> (i32, i32) {
    %c0_i32 = arith.constant 0 : i32
    %c0_i32_0 = arith.constant 0 : i32
    return %arg0, %c0_i32 : i32, i32
  }
  func.func @transform_1(%arg0: i32) -> (i32, i32) {
    %c0_i32 = arith.constant 0 : i32
    %c0_i32_0 = arith.constant 0 : i32
    %c0_i32_1 = arith.constant 0 : i32
    return %c0_i32, %c0_i32_0 : i32, i32
  }
  func.func @transform_2(%arg0: i32) -> (i32, i32) {
    %c0_i32 = arith.constant 0 : i32
    %c0_i32_0 = arith.constant 0 : i32
    return %arg0, %c0_i32 : i32, i32
  }
}

module attributes {stable_mosaic.version = 11 : i64} {
  func.func @_matmul_kernel(%arg0: i32, %arg1: memref<512x144xbf16, #tpu.memory_space<vmem>>, %arg2: memref<144x32xbf16, #tpu.memory_space<vmem>>, %arg3: memref<512x32xbf16, #tpu.memory_space<vmem>>) attributes {dimension_semantics = [#tpu.dimension_semantics<parallel>], iteration_bounds = array<i64: 1>, scalar_prefetch = 0 : i64, scratch_operands = 0 : i64, tpu.core_type = #tpu.core_type<tc>, window_params = [{transform_indices = @transform_0, window_bounds = array<i64: 512, 144>}, {pipeline_mode = #tpu.pipeline_mode<synchronous>, transform_indices = @transform_1, window_bounds = array<i64: 144, 32>}, {transform_indices = @transform_2, window_bounds = array<i64: 512, 32>}]} {
    %c0 = arith.constant 0 : index
    %c0_0 = arith.constant 0 : index
    %0 = vector.load %arg1[%c0, %c0_0] : memref<512x144xbf16, #tpu.memory_space<vmem>>, vector<512x144xbf16>
    %c0_1 = arith.constant 0 : index
    %c0_2 = arith.constant 0 : index
    %1 = vector.load %arg2[%c0_1, %c0_2] : memref<144x32xbf16, #tpu.memory_space<vmem>>, vector<144x32xbf16>
    %cst = arith.constant dense<0.000000e+00> : vector<512x32xf32>
    %2 = tpu.matmul %0, %1, %cst {dimension_numbers = #tpu.dot_dimension_numbers<[1], [0], [0], [1], [0, 0, 1, 1], [], []>} : vector<512x144xbf16>, vector<144x32xbf16>, vector<512x32xf32> -> vector<512x32xf32>
    %cst_3 = arith.constant 0.000000e+00 : f32
    %3 = vector.broadcast %cst_3 : f32 to vector<512x32xf32>
    %4 = arith.maximumf %2, %3 : vector<512x32xf32>
    %5 = arith.truncf %4 : vector<512x32xf32> to vector<512x32xbf16>
    %c0_4 = arith.constant 0 : index
    %c0_5 = arith.constant 0 : index
    %6 = vector.load %arg3[%c0_4, %c0_5] : memref<512x32xbf16, #tpu.memory_space<vmem>>, vector<512x32xbf16>
    tpu.vector_store %arg3[%c0_4, %c0_5], %5 {strides = array<i32>} : memref<512x32xbf16, #tpu.memory_space<vmem>>, vector<512x32xbf16>,
    return
  }
  func.func @transform_0(%arg0: i32) -> (i32, i32) {
    %c0_i32 = arith.constant 0 : i32
    %c0_i32_0 = arith.constant 0 : i32
    return %arg0, %c0_i32 : i32, i32
  }
  func.func @transform_1(%arg0: i32) -> (i32, i32) {
    %c0_i32 = arith.constant 0 : i32
    %c0_i32_0 = arith.constant 0 : i32
    %c0_i32_1 = arith.constant 0 : i32
    return %c0_i32, %c0_i32_0 : i32, i32
  }
  func.func @transform_2(%arg0: i32) -> (i32, i32) {
    %c0_i32 = arith.constant 0 : i32
    %c0_i32_0 = arith.constant 0 : i32
    return %arg0, %c0_i32 : i32, i32
  }
}

module attributes {stable_mosaic.version = 11 : i64} {
  func.func @_matmul_kernel(%arg0: i32, %arg1: memref<512x72xbf16, #tpu.memory_space<vmem>>, %arg2: memref<72x12xbf16, #tpu.memory_space<vmem>>, %arg3: memref<512x12xf32, #tpu.memory_space<vmem>>) attributes {dimension_semantics = [#tpu.dimension_semantics<parallel>], iteration_bounds = array<i64: 4>, scalar_prefetch = 0 : i64, scratch_operands = 0 : i64, tpu.core_type = #tpu.core_type<tc>, window_params = [{transform_indices = @transform_0, window_bounds = array<i64: 512, 72>}, {pipeline_mode = #tpu.pipeline_mode<synchronous>, transform_indices = @transform_1, window_bounds = array<i64: 72, 12>}, {transform_indices = @transform_2, window_bounds = array<i64: 512, 12>}]} {
    %c0 = arith.constant 0 : index
    %c0_0 = arith.constant 0 : index
    %0 = vector.load %arg1[%c0, %c0_0] : memref<512x72xbf16, #tpu.memory_space<vmem>>, vector<512x72xbf16>
    %c0_1 = arith.constant 0 : index
    %c0_2 = arith.constant 0 : index
    %1 = vector.load %arg2[%c0_1, %c0_2] : memref<72x12xbf16, #tpu.memory_space<vmem>>, vector<72x12xbf16>
    %cst = arith.constant dense<0.000000e+00> : vector<512x12xf32>
    %2 = tpu.matmul %0, %1, %cst {dimension_numbers = #tpu.dot_dimension_numbers<[1], [0], [0], [1], [0, 0, 1, 1], [], []>} : vector<512x72xbf16>, vector<72x12xbf16>, vector<512x12xf32> -> vector<512x12xf32>
    %cst_3 = arith.constant 0.000000e+00 : f32
    %3 = vector.broadcast %cst_3 : f32 to vector<512x12xf32>
    %4 = arith.maximumf %2, %3 : vector<512x12xf32>
    %c0_4 = arith.constant 0 : index
    %c0_5 = arith.constant 0 : index
    %5 = vector.load %arg3[%c0_4, %c0_5] : memref<512x12xf32, #tpu.memory_space<vmem>>, vector<512x12xf32>
    tpu.vector_store %arg3[%c0_4, %c0_5], %4 {strides = array<i32>} : memref<512x12xf32, #tpu.memory_space<vmem>>, vector<512x12xf32>,
    return
  }
  func.func @transform_0(%arg0: i32) -> (i32, i32) {
    %c0_i32 = arith.constant 0 : i32
    %c0_i32_0 = arith.constant 0 : i32
    return %arg0, %c0_i32 : i32, i32
  }
  func.func @transform_1(%arg0: i32) -> (i32, i32) {
    %c0_i32 = arith.constant 0 : i32
    %c0_i32_0 = arith.constant 0 : i32
    %c0_i32_1 = arith.constant 0 : i32
    return %c0_i32, %c0_i32_0 : i32, i32
  }
  func.func @transform_2(%arg0: i32) -> (i32, i32) {
    %c0_i32 = arith.constant 0 : i32
    %c0_i32_0 = arith.constant 0 : i32
    return %arg0, %c0_i32 : i32, i32
  }
}

</mosaic_0001>

<bundles_post_ra>
// kernel: ednet_forward.10
= control target key start
LH: loop header
LB: loop body
LE: loop exit
PB: predicated region body
PF: predicated region fallthrough
CT: control target
= control target key end

     0   :  { %s1606_s9 = smov 0   ;;  %s1835_s0 = inlined_call_operand.vmem [shape: bf16[2048,48], index: 0, kind: input, shape index: {}]   ;;  %s1836_s1 = inlined_call_operand.vmem [shape: bf16[48,8], index: 1, kind: input, shape index: {}]   ;;  %s1837_s2 = inlined_call_operand.vmem [shape: bf16[2048,8], index: 2, kind: output, shape index: {}]  }
   0x1 LB: > { %s1223_s10 = sadd.s32 4294967295, %s1589_s9   ;;  %p1227_p0 = scmp.ge.s32.totalorder %s1589_s9, 1  ;;  %s1589_s9 = sphi %s1606_s9, %s12_s9  }
   0x2   : > { %p113_p1 = scmp.lt.s32.totalorder %s1589_s9, 5 }
   0x4   : > { %p114_p2 = pnand %p1227_p0, %p113_p1 }
   0x5   : > { %s1228_s13 = sshll.u32 (!%p114_p2), %s1223_s10, 6 }
   0x6   : > { %117 = sbr.rel (%p114_p2) target bundleno = 284 (0x11c), region = 28  ;;  %p136_p3 = scmp.lt.s32.totalorder (!%p114_p2), %s1228_s13, 255 }
   0xb   : > { %v1548_v0 = vld [vmem:[%s1836_s1 + $0x10] sm:$0xff]   ;;  %v1549_v1 = vld [vmem:[%s1836_s1 + $0x8] sm:$0xff]   ;;  %s1839_s13 = smov (!%p136_p3, %s1228_s13), 255  ;;  %v1550_v2 = vld [vmem:[%s1836_s1] sm:$0xff]   ;;  %vm396_vm0 = vcmask 392192   ;;  %vm1102_vm1 = vcmask 60416  }
   0xc   : > { %1464 = vmatprep.subr.bf16.mxu0 %v1548_v0  ;;  %1534 = vmatprep.subr.bf16.mxu1 %v1548_v0  ;;  %s1229_s18 = sshll.u32 %s1839_s13, 2 }
   0xd   : > { %1465 = vmatpush3.bf16.msra.mxu0 %v1548_v0  ;;  %1537 = vmatpush3.bf16.msra.mxu1 %v1548_v0  ;;  %s1631_s21 = scalar_lea.vmem %s1835_s0, %s1229_s18  ;;  %s1702_s24 = scalar_lea.vmem %s1837_s2, %s1229_s18 }
   0xe   : > { %1466 = vmatprep.subr.bf16.mxu0 %v1549_v1  ;;  %1535 = vmatprep.subr.bf16.mxu1 %v1549_v1  ;;  %v1551_v3 = vld [vmem:[%s1631_s21] sm:$0xff]   ;;  %v1553_v5 = vld [vmem:[%s1631_s21 + $0x8] sm:$0xff]   ;;  %v1555_v7 = vld [vmem:[%s1631_s21 + $0x10] sm:$0xff]  }
   0xf   : > { %v1552_v4 = vld [vmem:[%s1631_s21 + $0x80] sm:$0xff]   ;;  %1470 = vmatprep.mubr.msk.bf16.mxu0 %vm396_vm0, %v1551_v3  ;;  %v1554_v6 = vld [vmem:[%s1631_s21 + $0x88] sm:$0xff]   ;;  %v1556_v8 = vld [vmem:[%s1631_s21 + $0x90] sm:$0xff]  }
  0x10   : > { %1502 = vmatprep.mubr.msk.bf16.mxu1 %vm396_vm0, %v1552_v4  ;;  %v1557_v9 = vld [vmem:[%s1631_s21 + $0x18] sm:$0xff]   ;;  %v1559_v11 = vld [vmem:[%s1631_s21 + $0x20] sm:$0xff]   ;;  %v1561_v13 = vld [vmem:[%s1631_s21 + $0x28] sm:$0xff]  }
  0x11   : > { %1467 = vmatpush3.bf16.msra.mxu0 %v1549_v1  ;;  %1538 = vmatpush3.bf16.msra.mxu1 %v1549_v1  ;;  %v1558_v10 = vld [vmem:[%s1631_s21 + $0x98] sm:$0xff]   ;;  %v1560_v12 = vld [vmem:[%s1631_s21 + $0xa0] sm:$0xff]   ;;  %v1562_v14 = vld [vmem:[%s1631_s21 + $0xa8] sm:$0xff]  }
  0x12   : > { %1468 = vmatprep.subr.bf16.mxu0 %v1550_v2  ;;  %1536 = vmatprep.subr.bf16.mxu1 %v1550_v2  ;;  %v1563_v15 = vld [vmem:[%s1631_s21 + $0x30] sm:$0xff]   ;;  %v1565_v17 = vld [vmem:[%s1631_s21 + $0x38] sm:$0xff]   ;;  %v1567_v19 = vld [vmem:[%s1631_s21 + $0x40] sm:$0xff]  }
  0x13   : > { %v1564_v16 = vld [vmem:[%s1631_s21 + $0xb0] sm:$0xff]   ;;  %v1566_v18 = vld [vmem:[%s1631_s21 + $0xb8] sm:$0xff]   ;;  %v1568_v20 = vld [vmem:[%s1631_s21 + $0xc0] sm:$0xff]  }
  0x14   : > { %v1569_v21 = vld [vmem:[%s1631_s21 + $0x48] sm:$0xff]   ;;  %v1571_v23 = vld [vmem:[%s1631_s21 + $0x50] sm:$0xff]   ;;  %v1573_v25 = vld [vmem:[%s1631_s21 + $0x58] sm:$0xff]  }
  0x15   : > { %1469 = vmatpush3.bf16.msra.mxu0 %v1550_v2  ;;  %1539 = vmatpush3.bf16.msra.mxu1 %v1550_v2  ;;  %v1570_v22 = vld [vmem:[%s1631_s21 + $0xc8] sm:$0xff]   ;;  %v1572_v24 = vld [vmem:[%s1631_s21 + $0xd0] sm:$0xff]   ;;  %v1574_v26 = vld [vmem:[%s1631_s21 + $0xd8] sm:$0xff]  }
  0x16   : > { %v1575_v27 = vld [vmem:[%s1631_s21 + $0x60] sm:$0xff]   ;;  %v1577_v29 = vld [vmem:[%s1631_s21 + $0x68] sm:$0xff]   ;;  %v1579_v31 = vld [vmem:[%s1631_s21 + $0x70] sm:$0xff]  }
  0x17   : > { %v1576_v28 = vld [vmem:[%s1631_s21 + $0xe0] sm:$0xff]   ;;  %v1578_v30 = vld [vmem:[%s1631_s21 + $0xe8] sm:$0xff]   ;;  %v1580_v32 = vld [vmem:[%s1631_s21 + $0xf0] sm:$0xff]  }
  0x18   : > { %1471 = vmatmul.mubr.msk.bf16.vlgmr.msra.gmra.mxu0 %vm396_vm0, %v1553_v5  ;;  %1503 = vmatmul.mubr.msk.bf16.vlgmr.msra.gmra.mxu1 %vm396_vm0, %v1554_v6  ;;  %v1581_v33 = vld [vmem:[%s1631_s21 + $0x78] sm:$0xff]  }
  0x19   : > { %1474 = vmatprep.mubr.msk.bf16.mxu0 %vm396_vm0, %v1555_v7  ;;  %1506 = vmatprep.mubr.msk.bf16.mxu1 %vm396_vm0, %v1556_v8  ;;  %v1582_v34 = vld [vmem:[%s1631_s21 + $0xf8] sm:$0xff]  }
  0x20   : > { %1475 = vmatmul.mubr.msk.bf16.gmra.mxu0 %vm396_vm0, %v1557_v9  ;;  %1507 = vmatmul.mubr.msk.bf16.gmra.mxu1 %vm396_vm0, %v1558_v10 }
  0x21   : > { %1478 = vmatprep.mubr.msk.bf16.mxu0 %vm396_vm0, %v1559_v11  ;;  %1510 = vmatprep.mubr.msk.bf16.mxu1 %vm396_vm0, %v1560_v12 }
  0x28   : > { %1479 = vmatmul.mubr.msk.bf16.gmra.mxu0 %vm396_vm0, %v1561_v13  ;;  %1511 = vmatmul.mubr.msk.bf16.gmra.mxu1 %vm396_vm0, %v1562_v14 }
  0x29   : > { %1482 = vmatprep.mubr.msk.bf16.mxu0 %vm396_vm0, %v1563_v15  ;;  %1514 = vmatprep.mubr.msk.bf16.mxu1 %vm396_vm0, %v1564_v16 }
  0x30   : > { %1483 = vmatmul.mubr.msk.bf16.gmra.mxu0 %vm396_vm0, %v1565_v17  ;;  %1515 = vmatmul.mubr.msk.bf16.gmra.mxu1 %vm396_vm0, %v1566_v18 }
  0x31   : > { %1486 = vmatprep.mubr.msk.bf16.mxu0 %vm396_vm0, %v1567_v19  ;;  %1518 = vmatprep.mubr.msk.bf16.mxu1 %vm396_vm0, %v1568_v20 }
  0x38   : > { %1487 = vmatmul.mubr.msk.bf16.gmra.mxu0 %vm396_vm0, %v1569_v21  ;;  %1519 = vmatmul.mubr.msk.bf16.gmra.mxu1 %vm396_vm0, %v1570_v22 }
  0x39   : > { %1490 = vmatprep.mubr.msk.bf16.mxu0 %vm396_vm0, %v1571_v23  ;;  %1522 = vmatprep.mubr.msk.bf16.mxu1 %vm396_vm0, %v1572_v24 }
  0x40   : > { %1491 = vmatmul.mubr.msk.bf16.gmra.mxu0 %vm396_vm0, %v1573_v25  ;;  %1523 = vmatmul.mubr.msk.bf16.gmra.mxu1 %vm396_vm0, %v1574_v26 }
  0x41   : > { %1494 = vmatprep.mubr.msk.bf16.mxu0 %vm396_vm0, %v1575_v27  ;;  %1526 = vmatprep.mubr.msk.bf16.mxu1 %vm396_vm0, %v1576_v28 }
  0x48   : > { %1495 = vmatmul.mubr.msk.bf16.gmra.mxu0 %vm396_vm0, %v1577_v29  ;;  %1527 = vmatmul.mubr.msk.bf16.gmra.mxu1 %vm396_vm0, %v1578_v30 }
  0x49   : > { %1498 = vmatprep.mubr.msk.bf16.mxu0 %vm396_vm0, %v1579_v31  ;;  %1530 = vmatprep.mubr.msk.bf16.mxu1 %vm396_vm0, %v1580_v32 }
  0x50   : > { %1499 = vmatmul.mubr.msk.bf16.gmra.mxu0 %vm396_vm0, %v1581_v33  ;;  %1531 = vmatmul.mubr.msk.bf16.gmra.mxu1 %vm396_vm0, %v1582_v34 }
  0xd8   : > { %v1472_v35 = vpop.f32.mrf.mxu0  ;;  %v1504_v36 = vpop.f32.mrf.mxu1 }
  0xd9   : > { %v784_v37 = vmax.f32 %v1472_v35, 0.0  ;;  %v816_v38 = vmax.f32 %v1504_v36, 0.0 }
  0xda   : > { %v527_v39 = vpop.f32.mrf.mxu0  ;;  %v655_v40 = vpop.f32.mrf.mxu1 }
  0xdb   : > { %v1367_v41 = vpack.c.bf16 %v784_v37, %v784_v37  ;;  %v1399_v42 = vpack.c.bf16 %v816_v38, %v816_v38  ;;  %v782_v43 = vmax.f32 %v527_v39, 0.0  ;;  %v814_v44 = vmax.f32 %v655_v40, 0.0 }
  0xdc   : > { %v1473_v45 = vpop.f32.mrf.mxu0  ;;  %v1505_v46 = vpop.f32.mrf.mxu1 }
  0xdd   : > { %1105 = vst.msk [vmem:[%s1702_s24 + $0x8] sm:$0xf] %vm1102_vm1, %v1367_v41  ;;  %1137 = vst.msk [vmem:[%s1702_s24 + $0x88] sm:$0xf] %vm1102_vm1, %v1399_v42  ;;  %v1365_v47 = vpack.c.bf16 %v782_v43, %v782_v43  ;;  %v1397_v48 = vpack.c.bf16 %v814_v44, %v814_v44  ;;  %v785_v49 = vmax.f32 %v1473_v45, 0.0  ;;  %v817_v50 = vmax.f32 %v1505_v46, 0.0 }
  0xde   : > { %v530_v51 = vpop.f32.mrf.mxu0  ;;  %v658_v52 = vpop.f32.mrf.mxu1 }
  0xdf   : > { %1103 = vst.msk [vmem:[%s1702_s24] sm:$0xf] %vm1102_vm1, %v1365_v47  ;;  %1135 = vst.msk [vmem:[%s1702_s24 + $0x80] sm:$0xf] %vm1102_vm1, %v1397_v48  ;;  %v1368_v53 = vpack.c.bf16 %v785_v49, %v785_v49  ;;  %v1400_v54 = vpack.c.bf16 %v817_v50, %v817_v50  ;;  %v783_v55 = vmax.f32 %v530_v51, 0.0  ;;  %v815_v56 = vmax.f32 %v658_v52, 0.0 }
  0xe0   : > { %v1476_v57 = vpop.f32.mrf.mxu0  ;;  %v1508_v58 = vpop.f32.mrf.mxu1 }
  0xe1   : > { %1106 = vst.msk [vmem:[%s1702_s24 + $0xc] sm:$0xf] %vm1102_vm1, %v1368_v53  ;;  %1138 = vst.msk [vmem:[%s1702_s24 + $0x8c] sm:$0xf] %vm1102_vm1, %v1400_v54  ;;  %v1366_v59 = vpack.c.bf16 %v783_v55, %v783_v55  ;;  %v1398_v60 = vpack.c.bf16 %v815_v56, %v815_v56  ;;  %v788_v61 = vmax.f32 %v1476_v57, 0.0  ;;  %v820_v62 = vmax.f32 %v1508_v58, 0.0 }
  0xe2   : > { %v543_v63 = vpop.f32.mrf.mxu0  ;;  %v671_v0 = vpop.f32.mrf.mxu1 }
  0xe3   : > { %1104 = vst.msk [vmem:[%s1702_s24 + $0x4] sm:$0xf] %vm1102_vm1, %v1366_v59  ;;  %1136 = vst.msk [vmem:[%s1702_s24 + $0x84] sm:$0xf] %vm1102_vm1, %v1398_v60  ;;  %v1371_v1 = vpack.c.bf16 %v788_v61, %v788_v61  ;;  %v1403_v2 = vpack.c.bf16 %v820_v62, %v820_v62  ;;  %v786_v3 = vmax.f32 %v543_v63, 0.0  ;;  %v818_v4 = vmax.f32 %v671_v0, 0.0 }
  0xe4   : > { %v1477_v5 = vpop.f32.mrf.mxu0  ;;  %v1509_v6 = vpop.f32.mrf.mxu1 }
  0xe5   : > { %1109 = vst.msk [vmem:[%s1702_s24 + $0x18] sm:$0xf] %vm1102_vm1, %v1371_v1  ;;  %1141 = vst.msk [vmem:[%s1702_s24 + $0x98] sm:$0xf] %vm1102_vm1, %v1403_v2  ;;  %v1369_v7 = vpack.c.bf16 %v786_v3, %v786_v3  ;;  %v1401_v8 = vpack.c.bf16 %v818_v4, %v818_v4  ;;  %v789_v9 = vmax.f32 %v1477_v5, 0.0  ;;  %v821_v10 = vmax.f32 %v1509_v6, 0.0 }
  0xe6   : > { %v546_v11 = vpop.f32.mrf.mxu0  ;;  %v674_v12 = vpop.f32.mrf.mxu1 }
  0xe7   : > { %1107 = vst.msk [vmem:[%s1702_s24 + $0x10] sm:$0xf] %vm1102_vm1, %v1369_v7  ;;  %1139 = vst.msk [vmem:[%s1702_s24 + $0x90] sm:$0xf] %vm1102_vm1, %v1401_v8  ;;  %v1372_v13 = vpack.c.bf16 %v789_v9, %v789_v9  ;;  %v1404_v14 = vpack.c.bf16 %v821_v10, %v821_v10  ;;  %v787_v15 = vmax.f32 %v546_v11, 0.0  ;;  %v819_v16 = vmax.f32 %v674_v12, 0.0 }
  0xe8   : > { %v1480_v17 = vpop.f32.mrf.mxu0  ;;  %v1512_v18 = vpop.f32.mrf.mxu1 }
  0xe9   : > { %1110 = vst.msk [vmem:[%s1702_s24 + $0x1c] sm:$0xf] %vm1102_vm1, %v1372_v13  ;;  %1142 = vst.msk [vmem:[%s1702_s24 + $0x9c] sm:$0xf] %vm1102_vm1, %v1404_v14  ;;  %v1370_v19 = vpack.c.bf16 %v787_v15, %v787_v15  ;;  %v1402_v20 = vpack.c.bf16 %v819_v16, %v819_v16  ;;  %v792_v21 = vmax.f32 %v1480_v17, 0.0  ;;  %v824_v22 = vmax.f32 %v1512_v18, 0.0 }
  0xea   : > { %v559_v23 = vpop.f32.mrf.mxu0  ;;  %v687_v24 = vpop.f32.mrf.mxu1 }
  0xeb   : > { %1108 = vst.msk [vmem:[%s1702_s24 + $0x14] sm:$0xf] %vm1102_vm1, %v1370_v19  ;;  %1140 = vst.msk [vmem:[%s1702_s24 + $0x94] sm:$0xf] %vm1102_vm1, %v1402_v20  ;;  %v1375_v25 = vpack.c.bf16 %v792_v21, %v792_v21  ;;  %v1407_v26 = vpack.c.bf16 %v824_v22, %v824_v22  ;;  %v790_v27 = vmax.f32 %v559_v23, 0.0  ;;  %v822_v28 = vmax.f32 %v687_v24, 0.0 }
  0xec   : > { %v1481_v29 = vpop.f32.mrf.mxu0  ;;  %v1513_v30 = vpop.f32.mrf.mxu1 }
  0xed   : > { %1113 = vst.msk [vmem:[%s1702_s24 + $0x28] sm:$0xf] %vm1102_vm1, %v1375_v25  ;;  %1145 = vst.msk [vmem:[%s1702_s24 + $0xa8] sm:$0xf] %vm1102_vm1, %v1407_v26  ;;  %v1373_v31 = vpack.c.bf16 %v790_v27, %v790_v27  ;;  %v1405_v32 = vpack.c.bf16 %v822_v28, %v822_v28  ;;  %v793_v33 = vmax.f32 %v1481_v29, 0.0  ;;  %v825_v34 = vmax.f32 %v1513_v30, 0.0 }
  0xee   : > { %v562_v35 = vpop.f32.mrf.mxu0  ;;  %v690_v36 = vpop.f32.mrf.mxu1 }
  0xef   : > { %1111 = vst.msk [vmem:[%s1702_s24 + $0x20] sm:$0xf] %vm1102_vm1, %v1373_v31  ;;  %1143 = vst.msk [vmem:[%s1702_s24 + $0xa0] sm:$0xf] %vm1102_vm1, %v1405_v32  ;;  %v1376_v37 = vpack.c.bf16 %v793_v33, %v793_v33  ;;  %v1408_v38 = vpack.c.bf16 %v825_v34, %v825_v34  ;;  %v791_v39 = vmax.f32 %v562_v35, 0.0  ;;  %v823_v40 = vmax.f32 %v690_v36, 0.0 }
  0xf0   : > { %v1484_v41 = vpop.f32.mrf.mxu0  ;;  %v1516_v42 = vpop.f32.mrf.mxu1 }
  0xf1   : > { %1114 = vst.msk [vmem:[%s1702_s24 + $0x2c] sm:$0xf] %vm1102_vm1, %v1376_v37  ;;  %1146 = vst.msk [vmem:[%s1702_s24 + $0xac] sm:$0xf] %vm1102_vm1, %v1408_v38  ;;  %v1374_v43 = vpack.c.bf16 %v791_v39, %v791_v39  ;;  %v1406_v44 = vpack.c.bf16 %v823_v40, %v823_v40  ;;  %v796_v45 = vmax.f32 %v1484_v41, 0.0  ;;  %v828_v46 = vmax.f32 %v1516_v42, 0.0 }
  0xf2   : > { %v575_v47 = vpop.f32.mrf.mxu0  ;;  %v703_v48 = vpop.f32.mrf.mxu1 }
  0xf3   : > { %1112 = vst.msk [vmem:[%s1702_s24 + $0x24] sm:$0xf] %vm1102_vm1, %v1374_v43  ;;  %1144 = vst.msk [vmem:[%s1702_s24 + $0xa4] sm:$0xf] %vm1102_vm1, %v1406_v44  ;;  %v1379_v49 = vpack.c.bf16 %v796_v45, %v796_v45  ;;  %v1411_v50 = vpack.c.bf16 %v828_v46, %v828_v46  ;;  %v794_v51 = vmax.f32 %v575_v47, 0.0  ;;  %v826_v52 = vmax.f32 %v703_v48, 0.0 }
  0xf4   : > { %v1485_v53 = vpop.f32.mrf.mxu0  ;;  %v1517_v54 = vpop.f32.mrf.mxu1 }
  0xf5   : > { %1117 = vst.msk [vmem:[%s1702_s24 + $0x38] sm:$0xf] %vm1102_vm1, %v1379_v49  ;;  %1149 = vst.msk [vmem:[%s1702_s24 + $0xb8] sm:$0xf] %vm1102_vm1, %v1411_v50  ;;  %v1377_v55 = vpack.c.bf16 %v794_v51, %v794_v51  ;;  %v1409_v56 = vpack.c.bf16 %v826_v52, %v826_v52  ;;  %v797_v57 = vmax.f32 %v1485_v53, 0.0  ;;  %v829_v58 = vmax.f32 %v1517_v54, 0.0 }
  0xf6   : > { %v578_v59 = vpop.f32.mrf.mxu0  ;;  %v706_v60 = vpop.f32.mrf.mxu1 }
  0xf7   : > { %1115 = vst.msk [vmem:[%s1702_s24 + $0x30] sm:$0xf] %vm1102_vm1, %v1377_v55  ;;  %1147 = vst.msk [vmem:[%s1702_s24 + $0xb0] sm:$0xf] %vm1102_vm1, %v1409_v56  ;;  %v1380_v61 = vpack.c.bf16 %v797_v57, %v797_v57  ;;  %v1412_v62 = vpack.c.bf16 %v829_v58, %v829_v58  ;;  %v795_v63 = vmax.f32 %v578_v59, 0.0  ;;  %v827_v0 = vmax.f32 %v706_v60, 0.0 }
  0xf8   : > { %v1488_v1 = vpop.f32.mrf.mxu0  ;;  %v1520_v2 = vpop.f32.mrf.mxu1 }
  0xf9   : > { %1118 = vst.msk [vmem:[%s1702_s24 + $0x3c] sm:$0xf] %vm1102_vm1, %v1380_v61  ;;  %1150 = vst.msk [vmem:[%s1702_s24 + $0xbc] sm:$0xf] %vm1102_vm1, %v1412_v62  ;;  %v1378_v3 = vpack.c.bf16 %v795_v63, %v795_v63  ;;  %v1410_v4 = vpack.c.bf16 %v827_v0, %v827_v0  ;;  %v800_v5 = vmax.f32 %v1488_v1, 0.0  ;;  %v832_v6 = vmax.f32 %v1520_v2, 0.0 }
  0xfa   : > { %v591_v7 = vpop.f32.mrf.mxu0  ;;  %v719_v8 = vpop.f32.mrf.mxu1 }
  0xfb   : > { %1116 = vst.msk [vmem:[%s1702_s24 + $0x34] sm:$0xf] %vm1102_vm1, %v1378_v3  ;;  %1148 = vst.msk [vmem:[%s1702_s24 + $0xb4] sm:$0xf] %vm1102_vm1, %v1410_v4  ;;  %v1383_v9 = vpack.c.bf16 %v800_v5, %v800_v5  ;;  %v1415_v10 = vpack.c.bf16 %v832_v6, %v832_v6  ;;  %v798_v11 = vmax.f32 %v591_v7, 0.0  ;;  %v830_v12 = vmax.f32 %v719_v8, 0.0 }
  0xfc   : > { %v1489_v13 = vpop.f32.mrf.mxu0  ;;  %v1521_v14 = vpop.f32.mrf.mxu1 }
  0xfd   : > { %1121 = vst.msk [vmem:[%s1702_s24 + $0x48] sm:$0xf] %vm1102_vm1, %v1383_v9  ;;  %1153 = vst.msk [vmem:[%s1702_s24 + $0xc8] sm:$0xf] %vm1102_vm1, %v1415_v10  ;;  %v1381_v15 = vpack.c.bf16 %v798_v11, %v798_v11  ;;  %v1413_v16 = vpack.c.bf16 %v830_v12, %v830_v12  ;;  %v801_v17 = vmax.f32 %v1489_v13, 0.0  ;;  %v833_v18 = vmax.f32 %v1521_v14, 0.0 }
  0xfe   : > { %v594_v19 = vpop.f32.mrf.mxu0  ;;  %v722_v20 = vpop.f32.mrf.mxu1 }
  0xff   : > { %1119 = vst.msk [vmem:[%s1702_s24 + $0x40] sm:$0xf] %vm1102_vm1, %v1381_v15  ;;  %1151 = vst.msk [vmem:[%s1702_s24 + $0xc0] sm:$0xf] %vm1102_vm1, %v1413_v16  ;;  %v1384_v21 = vpack.c.bf16 %v801_v17, %v801_v17  ;;  %v1416_v22 = vpack.c.bf16 %v833_v18, %v833_v18  ;;  %v799_v23 = vmax.f32 %v594_v19, 0.0  ;;  %v831_v24 = vmax.f32 %v722_v20, 0.0 }
 0x100   : > { %v1492_v25 = vpop.f32.mrf.mxu0  ;;  %v1524_v26 = vpop.f32.mrf.mxu1 }
 0x101   : > { %1122 = vst.msk [vmem:[%s1702_s24 + $0x4c] sm:$0xf] %vm1102_vm1, %v1384_v21  ;;  %1154 = vst.msk [vmem:[%s1702_s24 + $0xcc] sm:$0xf] %vm1102_vm1, %v1416_v22  ;;  %v1382_v27 = vpack.c.bf16 %v799_v23, %v799_v23  ;;  %v1414_v28 = vpack.c.bf16 %v831_v24, %v831_v24  ;;  %v804_v29 = vmax.f32 %v1492_v25, 0.0  ;;  %v836_v30 = vmax.f32 %v1524_v26, 0.0 }
 0x102   : > { %v607_v31 = vpop.f32.mrf.mxu0  ;;  %v735_v32 = vpop.f32.mrf.mxu1 }
 0x103   : > { %1120 = vst.msk [vmem:[%s1702_s24 + $0x44] sm:$0xf] %vm1102_vm1, %v1382_v27  ;;  %1152 = vst.msk [vmem:[%s1702_s24 + $0xc4] sm:$0xf] %vm1102_vm1, %v1414_v28  ;;  %v1387_v33 = vpack.c.bf16 %v804_v29, %v804_v29  ;;  %v1419_v34 = vpack.c.bf16 %v836_v30, %v836_v30  ;;  %v802_v35 = vmax.f32 %v607_v31, 0.0  ;;  %v834_v36 = vmax.f32 %v735_v32, 0.0 }
 0x104   : > { %v1493_v37 = vpop.f32.mrf.mxu0  ;;  %v1525_v38 = vpop.f32.mrf.mxu1 }
 0x105   : > { %1125 = vst.msk [vmem:[%s1702_s24 + $0x58] sm:$0xf] %vm1102_vm1, %v1387_v33  ;;  %1157 = vst.msk [vmem:[%s1702_s24 + $0xd8] sm:$0xf] %vm1102_vm1, %v1419_v34  ;;  %v1385_v39 = vpack.c.bf16 %v802_v35, %v802_v35  ;;  %v1417_v40 = vpack.c.bf16 %v834_v36, %v834_v36  ;;  %v805_v41 = vmax.f32 %v1493_v37, 0.0  ;;  %v837_v42 = vmax.f32 %v1525_v38, 0.0 }
 0x106   : > { %v610_v43 = vpop.f32.mrf.mxu0  ;;  %v738_v44 = vpop.f32.mrf.mxu1 }
 0x107   : > { %1123 = vst.msk [vmem:[%s1702_s24 + $0x50] sm:$0xf] %vm1102_vm1, %v1385_v39  ;;  %1155 = vst.msk [vmem:[%s1702_s24 + $0xd0] sm:$0xf] %vm1102_vm1, %v1417_v40  ;;  %v1388_v45 = vpack.c.bf16 %v805_v41, %v805_v41  ;;  %v1420_v46 = vpack.c.bf16 %v837_v42, %v837_v42  ;;  %v803_v47 = vmax.f32 %v610_v43, 0.0  ;;  %v835_v48 = vmax.f32 %v738_v44, 0.0 }
 0x108   : > { %v1496_v49 = vpop.f32.mrf.mxu0  ;;  %v1528_v50 = vpop.f32.mrf.mxu1 }
 0x109   : > { %1126 = vst.msk [vmem:[%s1702_s24 + $0x5c] sm:$0xf] %vm1102_vm1, %v1388_v45  ;;  %1158 = vst.msk [vmem:[%s1702_s24 + $0xdc] sm:$0xf] %vm1102_vm1, %v1420_v46  ;;  %v1386_v51 = vpack.c.bf16 %v803_v47, %v803_v47  ;;  %v1418_v52 = vpack.c.bf16 %v835_v48, %v835_v48  ;;  %v808_v53 = vmax.f32 %v1496_v49, 0.0  ;;  %v840_v54 = vmax.f32 %v1528_v50, 0.0 }
 0x10a   : > { %v623_v55 = vpop.f32.mrf.mxu0  ;;  %v751_v56 = vpop.f32.mrf.mxu1 }
 0x10b   : > { %1124 = vst.msk [vmem:[%s1702_s24 + $0x54] sm:$0xf] %vm1102_vm1, %v1386_v51  ;;  %1156 = vst.msk [vmem:[%s1702_s24 + $0xd4] sm:$0xf] %vm1102_vm1, %v1418_v52  ;;  %v1391_v57 = vpack.c.bf16 %v808_v53, %v808_v53  ;;  %v1423_v58 = vpack.c.bf16 %v840_v54, %v840_v54  ;;  %v806_v59 = vmax.f32 %v623_v55, 0.0  ;;  %v838_v60 = vmax.f32 %v751_v56, 0.0 }
 0x10c   : > { %v1497_v61 = vpop.f32.mrf.mxu0  ;;  %v1529_v62 = vpop.f32.mrf.mxu1 }
 0x10d   : > { %1129 = vst.msk [vmem:[%s1702_s24 + $0x68] sm:$0xf] %vm1102_vm1, %v1391_v57  ;;  %1161 = vst.msk [vmem:[%s1702_s24 + $0xe8] sm:$0xf] %vm1102_vm1, %v1423_v58  ;;  %v1389_v63 = vpack.c.bf16 %v806_v59, %v806_v59  ;;  %v1421_v0 = vpack.c.bf16 %v838_v60, %v838_v60  ;;  %v809_v1 = vmax.f32 %v1497_v61, 0.0  ;;  %v841_v2 = vmax.f32 %v1529_v62, 0.0 }
 0x10e   : > { %v626_v3 = vpop.f32.mrf.mxu0  ;;  %v754_v4 = vpop.f32.mrf.mxu1 }
 0x10f   : > { %1127 = vst.msk [vmem:[%s1702_s24 + $0x60] sm:$0xf] %vm1102_vm1, %v1389_v63  ;;  %1159 = vst.msk [vmem:[%s1702_s24 + $0xe0] sm:$0xf] %vm1102_vm1, %v1421_v0  ;;  %v1392_v5 = vpack.c.bf16 %v809_v1, %v809_v1  ;;  %v1424_v6 = vpack.c.bf16 %v841_v2, %v841_v2  ;;  %v807_v7 = vmax.f32 %v626_v3, 0.0  ;;  %v839_v8 = vmax.f32 %v754_v4, 0.0 }
 0x110   : > { %v1500_v9 = vpop.f32.mrf.mxu0  ;;  %v1532_v10 = vpop.f32.mrf.mxu1 }
 0x111   : > { %1130 = vst.msk [vmem:[%s1702_s24 + $0x6c] sm:$0xf] %vm1102_vm1, %v1392_v5  ;;  %1162 = vst.msk [vmem:[%s1702_s24 + $0xec] sm:$0xf] %vm1102_vm1, %v1424_v6  ;;  %v1390_v11 = vpack.c.bf16 %v807_v7, %v807_v7  ;;  %v1422_v12 = vpack.c.bf16 %v839_v8, %v839_v8  ;;  %v812_v13 = vmax.f32 %v1500_v9, 0.0  ;;  %v844_v14 = vmax.f32 %v1532_v10, 0.0 }
 0x112   : > { %v639_v15 = vpop.f32.mrf.mxu0  ;;  %v767_v16 = vpop.f32.mrf.mxu1 }
 0x113   : > { %1128 = vst.msk [vmem:[%s1702_s24 + $0x64] sm:$0xf] %vm1102_vm1, %v1390_v11  ;;  %1160 = vst.msk [vmem:[%s1702_s24 + $0xe4] sm:$0xf] %vm1102_vm1, %v1422_v12  ;;  %v1395_v17 = vpack.c.bf16 %v812_v13, %v812_v13  ;;  %v1427_v18 = vpack.c.bf16 %v844_v14, %v844_v14  ;;  %v810_v19 = vmax.f32 %v639_v15, 0.0  ;;  %v842_v20 = vmax.f32 %v767_v16, 0.0 }
 0x114   : > { %v1501_v21 = vpop.f32.mrf.mxu0  ;;  %v1533_v22 = vpop.f32.mrf.mxu1 }
 0x115   : > { %1133 = vst.msk [vmem:[%s1702_s24 + $0x78] sm:$0xf] %vm1102_vm1, %v1395_v17  ;;  %1165 = vst.msk [vmem:[%s1702_s24 + $0xf8] sm:$0xf] %vm1102_vm1, %v1427_v18  ;;  %v1393_v23 = vpack.c.bf16 %v810_v19, %v810_v19  ;;  %v1425_v24 = vpack.c.bf16 %v842_v20, %v842_v20  ;;  %v813_v25 = vmax.f32 %v1501_v21, 0.0  ;;  %v845_v26 = vmax.f32 %v1533_v22, 0.0 }
 0x116   : > { %v642_v27 = vpop.f32.mrf.mxu0  ;;  %v770_v28 = vpop.f32.mrf.mxu1 }
 0x117   : > { %1131 = vst.msk [vmem:[%s1702_s24 + $0x70] sm:$0xf] %vm1102_vm1, %v1393_v23  ;;  %1163 = vst.msk [vmem:[%s1702_s24 + $0xf0] sm:$0xf] %vm1102_vm1, %v1425_v24  ;;  %v1396_v29 = vpack.c.bf16 %v813_v25, %v813_v25  ;;  %v1428_v30 = vpack.c.bf16 %v845_v26, %v845_v26  ;;  %v811_v31 = vmax.f32 %v642_v27, 0.0  ;;  %v843_v32 = vmax.f32 %v770_v28, 0.0 }
 0x119   : > { %1134 = vst.msk [vmem:[%s1702_s24 + $0x7c] sm:$0xf] %vm1102_vm1, %v1396_v29  ;;  %1166 = vst.msk [vmem:[%s1702_s24 + $0xfc] sm:$0xf] %vm1102_vm1, %v1428_v30  ;;  %v1394_v33 = vpack.c.bf16 %v811_v31, %v811_v31  ;;  %v1426_v34 = vpack.c.bf16 %v843_v32, %v843_v32 }
 0x11b   : > { %1132 = vst.msk [vmem:[%s1702_s24 + $0x74] sm:$0xf] %vm1102_vm1, %v1394_v33  ;;  %1164 = vst.msk [vmem:[%s1702_s24 + $0xf4] sm:$0xf] %vm1102_vm1, %v1426_v34 }
 0x11c PF: > { %s12_s9 = sadd.s32 1, %s1589_s9  }
 0x11d   : > { %p9_p4 = scmp.ge.s32.totalorder %s12_s9, 6  }
 0x11f   :  { %11 = sbr.rel (!%p9_p4) target bundleno = 1 (0x1), region = 58 }

// kernel: ednet_forward.11
= control target key start
LH: loop header
LB: loop body
LE: loop exit
PB: predicated region body
PF: predicated region fallthrough
CT: control target
= control target key end

     0   :  { %vm941_vm0 = vcmask 125952   ;;  %s1745_s1 = inlined_call_operand.vmem [shape: bf16[128,16], index: 1, kind: input, shape index: {}]   ;;  %s1746_s0 = inlined_call_operand.vmem [shape: bf16[512,128], index: 0, kind: input, shape index: {}]   ;;  %s1747_s2 = inlined_call_operand.vmem [shape: bf16[512,16], index: 2, kind: output, shape index: {}]  }
   0x1   :  { %v1314_v0 = vld [vmem:[%s1745_s1 + $0x38] sm:$0xff]   ;;  %v1315_v1 = vld [vmem:[%s1745_s1 + $0x30] sm:$0xff]   ;;  %v1316_v2 = vld [vmem:[%s1745_s1 + $0x28] sm:$0xff]  }
   0x2   :  { %1218 = vmatprep.subr.bf16.mxu0 %v1314_v0  ;;  %1298 = vmatprep.subr.bf16.mxu1 %v1314_v0  ;;  %v1317_v3 = vld [vmem:[%s1745_s1 + $0x20] sm:$0xff]   ;;  %v1318_v6 = vld [vmem:[%s1745_s1 + $0x18] sm:$0xff]   ;;  %v1319_v7 = vld [vmem:[%s1745_s1 + $0x10] sm:$0xff]  }
   0x3   :  { %1219 = vmatpush3.bf16.msra.mxu0 %v1314_v0  ;;  %1306 = vmatpush3.bf16.msra.mxu1 %v1314_v0  ;;  %v1322_v4 = vld [vmem:[%s1746_s0] sm:$0xff]   ;;  %v1320_v8 = vld [vmem:[%s1745_s1 + $0x8] sm:$0xff]   ;;  %v1326_v12 = vld [vmem:[%s1746_s0 + $0x10] sm:$0xff]  }
   0x4   :  { %1220 = vmatprep.subr.bf16.mxu0 %v1315_v1  ;;  %1299 = vmatprep.subr.bf16.mxu1 %v1315_v1  ;;  %v1323_v5 = vld [vmem:[%s1746_s0 + $0x80] sm:$0xff]   ;;  %v1324_v10 = vld [vmem:[%s1746_s0 + $0x8] sm:$0xff]   ;;  %v1327_v13 = vld [vmem:[%s1746_s0 + $0x90] sm:$0xff]  }
   0x5   :  { %1234 = vmatprep.mubr.bf16.mxu0 %v1322_v4  ;;  %1266 = vmatprep.mubr.bf16.mxu1 %v1323_v5  ;;  %v1321_v9 = vld [vmem:[%s1745_s1] sm:$0xff]   ;;  %v1325_v11 = vld [vmem:[%s1746_s0 + $0x88] sm:$0xff]   ;;  %v1328_v14 = vld [vmem:[%s1746_s0 + $0x18] sm:$0xff]  }
   0x6   :  { %v1329_v15 = vld [vmem:[%s1746_s0 + $0x98] sm:$0xff]   ;;  %v1330_v16 = vld [vmem:[%s1746_s0 + $0x20] sm:$0xff]   ;;  %v1332_v18 = vld [vmem:[%s1746_s0 + $0x28] sm:$0xff]  }
   0x7   :  { %1221 = vmatpush3.bf16.msra.mxu0 %v1315_v1  ;;  %1307 = vmatpush3.bf16.msra.mxu1 %v1315_v1  ;;  %v1331_v17 = vld [vmem:[%s1746_s0 + $0xa0] sm:$0xff]   ;;  %v1333_v19 = vld [vmem:[%s1746_s0 + $0xa8] sm:$0xff]   ;;  %v1334_v20 = vld [vmem:[%s1746_s0 + $0x30] sm:$0xff]  }
   0x8   :  { %1222 = vmatprep.subr.bf16.mxu0 %v1316_v2  ;;  %1300 = vmatprep.subr.bf16.mxu1 %v1316_v2  ;;  %v1335_v21 = vld [vmem:[%s1746_s0 + $0xb0] sm:$0xff]   ;;  %v1336_v22 = vld [vmem:[%s1746_s0 + $0x38] sm:$0xff]   ;;  %v1338_v24 = vld [vmem:[%s1746_s0 + $0x40] sm:$0xff]  }
   0x9   :  { %v1337_v23 = vld [vmem:[%s1746_s0 + $0xb8] sm:$0xff]   ;;  %v1339_v25 = vld [vmem:[%s1746_s0 + $0xc0] sm:$0xff]   ;;  %v1340_v26 = vld [vmem:[%s1746_s0 + $0x48] sm:$0xff]  }
   0xa   :  { %v1341_v27 = vld [vmem:[%s1746_s0 + $0xc8] sm:$0xff]   ;;  %v1342_v28 = vld [vmem:[%s1746_s0 + $0x50] sm:$0xff]   ;;  %v1344_v30 = vld [vmem:[%s1746_s0 + $0x58] sm:$0xff]  }
   0xb   :  { %1223 = vmatpush3.bf16.msra.mxu0 %v1316_v2  ;;  %1308 = vmatpush3.bf16.msra.mxu1 %v1316_v2  ;;  %v1343_v29 = vld [vmem:[%s1746_s0 + $0xd0] sm:$0xff]   ;;  %v1345_v31 = vld [vmem:[%s1746_s0 + $0xd8] sm:$0xff]   ;;  %v1346_v32 = vld [vmem:[%s1746_s0 + $0x60] sm:$0xff]  }
   0xc   :  { %1224 = vmatprep.subr.bf16.mxu0 %v1317_v3  ;;  %1301 = vmatprep.subr.bf16.mxu1 %v1317_v3  ;;  %v1347_v33 = vld [vmem:[%s1746_s0 + $0xe0] sm:$0xff]   ;;  %v1348_v34 = vld [vmem:[%s1746_s0 + $0x68] sm:$0xff]   ;;  %v1350_v36 = vld [vmem:[%s1746_s0 + $0x70] sm:$0xff]  }
   0xd   :  { %v1349_v35 = vld [vmem:[%s1746_s0 + $0xe8] sm:$0xff]   ;;  %v1351_v37 = vld [vmem:[%s1746_s0 + $0xf0] sm:$0xff]   ;;  %v1352_v38 = vld [vmem:[%s1746_s0 + $0x78] sm:$0xff]  }
   0xe   :  { %v1353_v39 = vld [vmem:[%s1746_s0 + $0xf8] sm:$0xff]  }
   0xf   :  { %1225 = vmatpush3.bf16.msra.mxu0 %v1317_v3  ;;  %1309 = vmatpush3.bf16.msra.mxu1 %v1317_v3 }
  0x10   :  { %1226 = vmatprep.subr.bf16.mxu0 %v1318_v6  ;;  %1302 = vmatprep.subr.bf16.mxu1 %v1318_v6 }
  0x13   :  { %1227 = vmatpush3.bf16.msra.mxu0 %v1318_v6  ;;  %1310 = vmatpush3.bf16.msra.mxu1 %v1318_v6 }
  0x14   :  { %1228 = vmatprep.subr.bf16.mxu0 %v1319_v7  ;;  %1303 = vmatprep.subr.bf16.mxu1 %v1319_v7 }
  0x17   :  { %1229 = vmatpush3.bf16.msra.mxu0 %v1319_v7  ;;  %1311 = vmatpush3.bf16.msra.mxu1 %v1319_v7 }
  0x18   :  { %1230 = vmatprep.subr.bf16.mxu0 %v1320_v8  ;;  %1304 = vmatprep.subr.bf16.mxu1 %v1320_v8 }
  0x1b   :  { %1231 = vmatpush3.bf16.msra.mxu0 %v1320_v8  ;;  %1312 = vmatpush3.bf16.msra.mxu1 %v1320_v8 }
  0x1c   :  { %1232 = vmatprep.subr.bf16.mxu0 %v1321_v9  ;;  %1305 = vmatprep.subr.bf16.mxu1 %v1321_v9 }
  0x1f   :  { %1233 = vmatpush3.bf16.msra.mxu0 %v1321_v9  ;;  %1313 = vmatpush3.bf16.msra.mxu1 %v1321_v9 }
  0x22   :  { %1235 = vmatmul.mubr.bf16.vlgmr.msra.gmra.mxu0 %v1324_v10  ;;  %1267 = vmatmul.mubr.bf16.vlgmr.msra.gmra.mxu1 %v1325_v11 }
  0x23   :  { %1238 = vmatprep.mubr.bf16.mxu0 %v1326_v12  ;;  %1270 = vmatprep.mubr.bf16.mxu1 %v1327_v13 }
  0x2a   :  { %1239 = vmatmul.mubr.bf16.gmra.mxu0 %v1328_v14  ;;  %1271 = vmatmul.mubr.bf16.gmra.mxu1 %v1329_v15 }
  0x2b   :  { %1242 = vmatprep.mubr.bf16.mxu0 %v1330_v16  ;;  %1274 = vmatprep.mubr.bf16.mxu1 %v1331_v17 }
  0x32   :  { %1243 = vmatmul.mubr.bf16.gmra.mxu0 %v1332_v18  ;;  %1275 = vmatmul.mubr.bf16.gmra.mxu1 %v1333_v19 }
  0x33   :  { %1246 = vmatprep.mubr.bf16.mxu0 %v1334_v20  ;;  %1278 = vmatprep.mubr.bf16.mxu1 %v1335_v21 }
  0x3a   :  { %1247 = vmatmul.mubr.bf16.gmra.mxu0 %v1336_v22  ;;  %1279 = vmatmul.mubr.bf16.gmra.mxu1 %v1337_v23 }
  0x3b   :  { %1250 = vmatprep.mubr.bf16.mxu0 %v1338_v24  ;;  %1282 = vmatprep.mubr.bf16.mxu1 %v1339_v25 }
  0x42   :  { %1251 = vmatmul.mubr.bf16.gmra.mxu0 %v1340_v26  ;;  %1283 = vmatmul.mubr.bf16.gmra.mxu1 %v1341_v27 }
  0x43   :  { %1254 = vmatprep.mubr.bf16.mxu0 %v1342_v28  ;;  %1286 = vmatprep.mubr.bf16.mxu1 %v1343_v29 }
  0x4a   :  { %1255 = vmatmul.mubr.bf16.gmra.mxu0 %v1344_v30  ;;  %1287 = vmatmul.mubr.bf16.gmra.mxu1 %v1345_v31 }
  0x4b   :  { %1258 = vmatprep.mubr.bf16.mxu0 %v1346_v32  ;;  %1290 = vmatprep.mubr.bf16.mxu1 %v1347_v33 }
  0x52   :  { %1259 = vmatmul.mubr.bf16.gmra.mxu0 %v1348_v34  ;;  %1291 = vmatmul.mubr.bf16.gmra.mxu1 %v1349_v35 }
  0x53   :  { %1262 = vmatprep.mubr.bf16.mxu0 %v1350_v36  ;;  %1294 = vmatprep.mubr.bf16.mxu1 %v1351_v37 }
  0x5a   :  { %1263 = vmatmul.mubr.bf16.gmra.mxu0 %v1352_v38  ;;  %1295 = vmatmul.mubr.bf16.gmra.mxu1 %v1353_v39 }
  0xe2   :  { %v1236_v40 = vpop.f32.mrf.mxu0  ;;  %v1268_v41 = vpop.f32.mrf.mxu1 }
  0xe3   :  { %v623_v42 = vmax.f32 %v1236_v40, 0.0  ;;  %v655_v43 = vmax.f32 %v1268_v41, 0.0 }
  0xe4   :  { %v366_v44 = vpop.f32.mrf.mxu0  ;;  %v494_v45 = vpop.f32.mrf.mxu1 }
  0xe5   :  { %v1116_v46 = vpack.c.bf16 %v623_v42, %v623_v42  ;;  %v1148_v47 = vpack.c.bf16 %v655_v43, %v655_v43  ;;  %v621_v48 = vmax.f32 %v366_v44, 0.0  ;;  %v653_v49 = vmax.f32 %v494_v45, 0.0 }
  0xe6   :  { %v1237_v50 = vpop.f32.mrf.mxu0  ;;  %v1269_v51 = vpop.f32.mrf.mxu1 }
  0xe7   :  { %944 = vst.msk [vmem:[%s1747_s2 + $0x8] sm:$0xf] %vm941_vm0, %v1116_v46  ;;  %976 = vst.msk [vmem:[%s1747_s2 + $0x88] sm:$0xf] %vm941_vm0, %v1148_v47  ;;  %v1114_v52 = vpack.c.bf16 %v621_v48, %v621_v48  ;;  %v1146_v53 = vpack.c.bf16 %v653_v49, %v653_v49  ;;  %v624_v54 = vmax.f32 %v1237_v50, 0.0  ;;  %v656_v55 = vmax.f32 %v1269_v51, 0.0 }
  0xe8   :  { %v369_v56 = vpop.f32.mrf.mxu0  ;;  %v497_v57 = vpop.f32.mrf.mxu1 }
  0xe9   :  { %942 = vst.msk [vmem:[%s1747_s2] sm:$0xf] %vm941_vm0, %v1114_v52  ;;  %974 = vst.msk [vmem:[%s1747_s2 + $0x80] sm:$0xf] %vm941_vm0, %v1146_v53  ;;  %v1117_v58 = vpack.c.bf16 %v624_v54, %v624_v54  ;;  %v1149_v59 = vpack.c.bf16 %v656_v55, %v656_v55  ;;  %v622_v60 = vmax.f32 %v369_v56, 0.0  ;;  %v654_v61 = vmax.f32 %v497_v57, 0.0 }
  0xea   :  { %v1240_v62 = vpop.f32.mrf.mxu0  ;;  %v1272_v63 = vpop.f32.mrf.mxu1 }
  0xeb   :  { %945 = vst.msk [vmem:[%s1747_s2 + $0xc] sm:$0xf] %vm941_vm0, %v1117_v58  ;;  %977 = vst.msk [vmem:[%s1747_s2 + $0x8c] sm:$0xf] %vm941_vm0, %v1149_v59  ;;  %v1115_v0 = vpack.c.bf16 %v622_v60, %v622_v60  ;;  %v1147_v1 = vpack.c.bf16 %v654_v61, %v654_v61  ;;  %v627_v2 = vmax.f32 %v1240_v62, 0.0  ;;  %v659_v3 = vmax.f32 %v1272_v63, 0.0 }
  0xec   :  { %v382_v4 = vpop.f32.mrf.mxu0  ;;  %v510_v5 = vpop.f32.mrf.mxu1 }
  0xed   :  { %943 = vst.msk [vmem:[%s1747_s2 + $0x4] sm:$0xf] %vm941_vm0, %v1115_v0  ;;  %975 = vst.msk [vmem:[%s1747_s2 + $0x84] sm:$0xf] %vm941_vm0, %v1147_v1  ;;  %v1120_v6 = vpack.c.bf16 %v627_v2, %v627_v2  ;;  %v1152_v7 = vpack.c.bf16 %v659_v3, %v659_v3  ;;  %v625_v8 = vmax.f32 %v382_v4, 0.0  ;;  %v657_v9 = vmax.f32 %v510_v5, 0.0 }
  0xee   :  { %v1241_v10 = vpop.f32.mrf.mxu0  ;;  %v1273_v11 = vpop.f32.mrf.mxu1 }
  0xef   :  { %948 = vst.msk [vmem:[%s1747_s2 + $0x18] sm:$0xf] %vm941_vm0, %v1120_v6  ;;  %980 = vst.msk [vmem:[%s1747_s2 + $0x98] sm:$0xf] %vm941_vm0, %v1152_v7  ;;  %v1118_v12 = vpack.c.bf16 %v625_v8, %v625_v8  ;;  %v1150_v13 = vpack.c.bf16 %v657_v9, %v657_v9  ;;  %v628_v14 = vmax.f32 %v1241_v10, 0.0  ;;  %v660_v15 = vmax.f32 %v1273_v11, 0.0 }
  0xf0   :  { %v385_v16 = vpop.f32.mrf.mxu0  ;;  %v513_v17 = vpop.f32.mrf.mxu1 }
  0xf1   :  { %946 = vst.msk [vmem:[%s1747_s2 + $0x10] sm:$0xf] %vm941_vm0, %v1118_v12  ;;  %978 = vst.msk [vmem:[%s1747_s2 + $0x90] sm:$0xf] %vm941_vm0, %v1150_v13  ;;  %v1121_v18 = vpack.c.bf16 %v628_v14, %v628_v14  ;;  %v1153_v19 = vpack.c.bf16 %v660_v15, %v660_v15  ;;  %v626_v20 = vmax.f32 %v385_v16, 0.0  ;;  %v658_v21 = vmax.f32 %v513_v17, 0.0 }
  0xf2   :  { %v1244_v22 = vpop.f32.mrf.mxu0  ;;  %v1276_v23 = vpop.f32.mrf.mxu1 }
  0xf3   :  { %949 = vst.msk [vmem:[%s1747_s2 + $0x1c] sm:$0xf] %vm941_vm0, %v1121_v18  ;;  %981 = vst.msk [vmem:[%s1747_s2 + $0x9c] sm:$0xf] %vm941_vm0, %v1153_v19  ;;  %v1119_v24 = vpack.c.bf16 %v626_v20, %v626_v20  ;;  %v1151_v25 = vpack.c.bf16 %v658_v21, %v658_v21  ;;  %v631_v26 = vmax.f32 %v1244_v22, 0.0  ;;  %v663_v27 = vmax.f32 %v1276_v23, 0.0 }
  0xf4   :  { %v398_v28 = vpop.f32.mrf.mxu0  ;;  %v526_v29 = vpop.f32.mrf.mxu1 }
  0xf5   :  { %947 = vst.msk [vmem:[%s1747_s2 + $0x14] sm:$0xf] %vm941_vm0, %v1119_v24  ;;  %979 = vst.msk [vmem:[%s1747_s2 + $0x94] sm:$0xf] %vm941_vm0, %v1151_v25  ;;  %v1124_v30 = vpack.c.bf16 %v631_v26, %v631_v26  ;;  %v1156_v31 = vpack.c.bf16 %v663_v27, %v663_v27  ;;  %v629_v32 = vmax.f32 %v398_v28, 0.0  ;;  %v661_v33 = vmax.f32 %v526_v29, 0.0 }
  0xf6   :  { %v1245_v34 = vpop.f32.mrf.mxu0  ;;  %v1277_v35 = vpop.f32.mrf.mxu1 }
  0xf7   :  { %952 = vst.msk [vmem:[%s1747_s2 + $0x28] sm:$0xf] %vm941_vm0, %v1124_v30  ;;  %984 = vst.msk [vmem:[%s1747_s2 + $0xa8] sm:$0xf] %vm941_vm0, %v1156_v31  ;;  %v1122_v36 = vpack.c.bf16 %v629_v32, %v629_v32  ;;  %v1154_v37 = vpack.c.bf16 %v661_v33, %v661_v33  ;;  %v632_v38 = vmax.f32 %v1245_v34, 0.0  ;;  %v664_v39 = vmax.f32 %v1277_v35, 0.0 }
  0xf8   :  { %v401_v40 = vpop.f32.mrf.mxu0  ;;  %v529_v41 = vpop.f32.mrf.mxu1 }
  0xf9   :  { %950 = vst.msk [vmem:[%s1747_s2 + $0x20] sm:$0xf] %vm941_vm0, %v1122_v36  ;;  %982 = vst.msk [vmem:[%s1747_s2 + $0xa0] sm:$0xf] %vm941_vm0, %v1154_v37  ;;  %v1125_v42 = vpack.c.bf16 %v632_v38, %v632_v38  ;;  %v1157_v43 = vpack.c.bf16 %v664_v39, %v664_v39  ;;  %v630_v44 = vmax.f32 %v401_v40, 0.0  ;;  %v662_v45 = vmax.f32 %v529_v41, 0.0 }
  0xfa   :  { %v1248_v46 = vpop.f32.mrf.mxu0  ;;  %v1280_v47 = vpop.f32.mrf.mxu1 }
  0xfb   :  { %953 = vst.msk [vmem:[%s1747_s2 + $0x2c] sm:$0xf] %vm941_vm0, %v1125_v42  ;;  %985 = vst.msk [vmem:[%s1747_s2 + $0xac] sm:$0xf] %vm941_vm0, %v1157_v43  ;;  %v1123_v48 = vpack.c.bf16 %v630_v44, %v630_v44  ;;  %v1155_v49 = vpack.c.bf16 %v662_v45, %v662_v45  ;;  %v635_v50 = vmax.f32 %v1248_v46, 0.0  ;;  %v667_v51 = vmax.f32 %v1280_v47, 0.0 }
  0xfc   :  { %v414_v52 = vpop.f32.mrf.mxu0  ;;  %v542_v53 = vpop.f32.mrf.mxu1 }
  0xfd   :  { %951 = vst.msk [vmem:[%s1747_s2 + $0x24] sm:$0xf] %vm941_vm0, %v1123_v48  ;;  %983 = vst.msk [vmem:[%s1747_s2 + $0xa4] sm:$0xf] %vm941_vm0, %v1155_v49  ;;  %v1128_v54 = vpack.c.bf16 %v635_v50, %v635_v50  ;;  %v1160_v55 = vpack.c.bf16 %v667_v51, %v667_v51  ;;  %v633_v56 = vmax.f32 %v414_v52, 0.0  ;;  %v665_v57 = vmax.f32 %v542_v53, 0.0 }
  0xfe   :  { %v1249_v58 = vpop.f32.mrf.mxu0  ;;  %v1281_v59 = vpop.f32.mrf.mxu1 }
  0xff   :  { %956 = vst.msk [vmem:[%s1747_s2 + $0x38] sm:$0xf] %vm941_vm0, %v1128_v54  ;;  %988 = vst.msk [vmem:[%s1747_s2 + $0xb8] sm:$0xf] %vm941_vm0, %v1160_v55  ;;  %v1126_v60 = vpack.c.bf16 %v633_v56, %v633_v56  ;;  %v1158_v61 = vpack.c.bf16 %v665_v57, %v665_v57  ;;  %v636_v62 = vmax.f32 %v1249_v58, 0.0  ;;  %v668_v63 = vmax.f32 %v1281_v59, 0.0 }
 0x100   :  { %v417_v0 = vpop.f32.mrf.mxu0  ;;  %v545_v1 = vpop.f32.mrf.mxu1 }
 0x101   :  { %954 = vst.msk [vmem:[%s1747_s2 + $0x30] sm:$0xf] %vm941_vm0, %v1126_v60  ;;  %986 = vst.msk [vmem:[%s1747_s2 + $0xb0] sm:$0xf] %vm941_vm0, %v1158_v61  ;;  %v1129_v2 = vpack.c.bf16 %v636_v62, %v636_v62  ;;  %v1161_v3 = vpack.c.bf16 %v668_v63, %v668_v63  ;;  %v634_v4 = vmax.f32 %v417_v0, 0.0  ;;  %v666_v5 = vmax.f32 %v545_v1, 0.0 }
 0x102   :  { %v1252_v6 = vpop.f32.mrf.mxu0  ;;  %v1284_v7 = vpop.f32.mrf.mxu1 }
 0x103   :  { %957 = vst.msk [vmem:[%s1747_s2 + $0x3c] sm:$0xf] %vm941_vm0, %v1129_v2  ;;  %989 = vst.msk [vmem:[%s1747_s2 + $0xbc] sm:$0xf] %vm941_vm0, %v1161_v3  ;;  %v1127_v8 = vpack.c.bf16 %v634_v4, %v634_v4  ;;  %v1159_v9 = vpack.c.bf16 %v666_v5, %v666_v5  ;;  %v639_v10 = vmax.f32 %v1252_v6, 0.0  ;;  %v671_v11 = vmax.f32 %v1284_v7, 0.0 }
 0x104   :  { %v430_v12 = vpop.f32.mrf.mxu0  ;;  %v558_v13 = vpop.f32.mrf.mxu1 }
 0x105   :  { %955 = vst.msk [vmem:[%s1747_s2 + $0x34] sm:$0xf] %vm941_vm0, %v1127_v8  ;;  %987 = vst.msk [vmem:[%s1747_s2 + $0xb4] sm:$0xf] %vm941_vm0, %v1159_v9  ;;  %v1132_v14 = vpack.c.bf16 %v639_v10, %v639_v10  ;;  %v1164_v15 = vpack.c.bf16 %v671_v11, %v671_v11  ;;  %v637_v16 = vmax.f32 %v430_v12, 0.0  ;;  %v669_v17 = vmax.f32 %v558_v13, 0.0 }
 0x106   :  { %v1253_v18 = vpop.f32.mrf.mxu0  ;;  %v1285_v19 = vpop.f32.mrf.mxu1 }
 0x107   :  { %960 = vst.msk [vmem:[%s1747_s2 + $0x48] sm:$0xf] %vm941_vm0, %v1132_v14  ;;  %992 = vst.msk [vmem:[%s1747_s2 + $0xc8] sm:$0xf] %vm941_vm0, %v1164_v15  ;;  %v1130_v20 = vpack.c.bf16 %v637_v16, %v637_v16  ;;  %v1162_v21 = vpack.c.bf16 %v669_v17, %v669_v17  ;;  %v640_v22 = vmax.f32 %v1253_v18, 0.0  ;;  %v672_v23 = vmax.f32 %v1285_v19, 0.0 }
 0x108   :  { %v433_v24 = vpop.f32.mrf.mxu0  ;;  %v561_v25 = vpop.f32.mrf.mxu1 }
 0x109   :  { %958 = vst.msk [vmem:[%s1747_s2 + $0x40] sm:$0xf] %vm941_vm0, %v1130_v20  ;;  %990 = vst.msk [vmem:[%s1747_s2 + $0xc0] sm:$0xf] %vm941_vm0, %v1162_v21  ;;  %v1133_v26 = vpack.c.bf16 %v640_v22, %v640_v22  ;;  %v1165_v27 = vpack.c.bf16 %v672_v23, %v672_v23  ;;  %v638_v28 = vmax.f32 %v433_v24, 0.0  ;;  %v670_v29 = vmax.f32 %v561_v25, 0.0 }
 0x10a   :  { %v1256_v30 = vpop.f32.mrf.mxu0  ;;  %v1288_v31 = vpop.f32.mrf.mxu1 }
 0x10b   :  { %961 = vst.msk [vmem:[%s1747_s2 + $0x4c] sm:$0xf] %vm941_vm0, %v1133_v26  ;;  %993 = vst.msk [vmem:[%s1747_s2 + $0xcc] sm:$0xf] %vm941_vm0, %v1165_v27  ;;  %v1131_v32 = vpack.c.bf16 %v638_v28, %v638_v28  ;;  %v1163_v33 = vpack.c.bf16 %v670_v29, %v670_v29  ;;  %v643_v34 = vmax.f32 %v1256_v30, 0.0  ;;  %v675_v35 = vmax.f32 %v1288_v31, 0.0 }
 0x10c   :  { %v446_v36 = vpop.f32.mrf.mxu0  ;;  %v574_v37 = vpop.f32.mrf.mxu1 }
 0x10d   :  { %959 = vst.msk [vmem:[%s1747_s2 + $0x44] sm:$0xf] %vm941_vm0, %v1131_v32  ;;  %991 = vst.msk [vmem:[%s1747_s2 + $0xc4] sm:$0xf] %vm941_vm0, %v1163_v33  ;;  %v1136_v38 = vpack.c.bf16 %v643_v34, %v643_v34  ;;  %v1168_v39 = vpack.c.bf16 %v675_v35, %v675_v35  ;;  %v641_v40 = vmax.f32 %v446_v36, 0.0  ;;  %v673_v41 = vmax.f32 %v574_v37, 0.0 }
 0x10e   :  { %v1257_v42 = vpop.f32.mrf.mxu0  ;;  %v1289_v43 = vpop.f32.mrf.mxu1 }
 0x10f   :  { %964 = vst.msk [vmem:[%s1747_s2 + $0x58] sm:$0xf] %vm941_vm0, %v1136_v38  ;;  %996 = vst.msk [vmem:[%s1747_s2 + $0xd8] sm:$0xf] %vm941_vm0, %v1168_v39  ;;  %v1134_v44 = vpack.c.bf16 %v641_v40, %v641_v40  ;;  %v1166_v45 = vpack.c.bf16 %v673_v41, %v673_v41  ;;  %v644_v46 = vmax.f32 %v1257_v42, 0.0  ;;  %v676_v47 = vmax.f32 %v1289_v43, 0.0 }
 0x110   :  { %v449_v48 = vpop.f32.mrf.mxu0  ;;  %v577_v49 = vpop.f32.mrf.mxu1 }
 0x111   :  { %962 = vst.msk [vmem:[%s1747_s2 + $0x50] sm:$0xf] %vm941_vm0, %v1134_v44  ;;  %994 = vst.msk [vmem:[%s1747_s2 + $0xd0] sm:$0xf] %vm941_vm0, %v1166_v45  ;;  %v1137_v50 = vpack.c.bf16 %v644_v46, %v644_v46  ;;  %v1169_v51 = vpack.c.bf16 %v676_v47, %v676_v47  ;;  %v642_v52 = vmax.f32 %v449_v48, 0.0  ;;  %v674_v53 = vmax.f32 %v577_v49, 0.0 }
 0x112   :  { %v1260_v54 = vpop.f32.mrf.mxu0  ;;  %v1292_v55 = vpop.f32.mrf.mxu1 }
 0x113   :  { %965 = vst.msk [vmem:[%s1747_s2 + $0x5c] sm:$0xf] %vm941_vm0, %v1137_v50  ;;  %997 = vst.msk [vmem:[%s1747_s2 + $0xdc] sm:$0xf] %vm941_vm0, %v1169_v51  ;;  %v1135_v56 = vpack.c.bf16 %v642_v52, %v642_v52  ;;  %v1167_v57 = vpack.c.bf16 %v674_v53, %v674_v53  ;;  %v647_v58 = vmax.f32 %v1260_v54, 0.0  ;;  %v679_v59 = vmax.f32 %v1292_v55, 0.0 }
 0x114   :  { %v462_v60 = vpop.f32.mrf.mxu0  ;;  %v590_v61 = vpop.f32.mrf.mxu1 }
 0x115   :  { %963 = vst.msk [vmem:[%s1747_s2 + $0x54] sm:$0xf] %vm941_vm0, %v1135_v56  ;;  %995 = vst.msk [vmem:[%s1747_s2 + $0xd4] sm:$0xf] %vm941_vm0, %v1167_v57  ;;  %v1140_v62 = vpack.c.bf16 %v647_v58, %v647_v58  ;;  %v1172_v63 = vpack.c.bf16 %v679_v59, %v679_v59  ;;  %v645_v0 = vmax.f32 %v462_v60, 0.0  ;;  %v677_v1 = vmax.f32 %v590_v61, 0.0 }
 0x116   :  { %v1261_v2 = vpop.f32.mrf.mxu0  ;;  %v1293_v3 = vpop.f32.mrf.mxu1 }
 0x117   :  { %968 = vst.msk [vmem:[%s1747_s2 + $0x68] sm:$0xf] %vm941_vm0, %v1140_v62  ;;  %1000 = vst.msk [vmem:[%s1747_s2 + $0xe8] sm:$0xf] %vm941_vm0, %v1172_v63  ;;  %v1138_v4 = vpack.c.bf16 %v645_v0, %v645_v0  ;;  %v1170_v5 = vpack.c.bf16 %v677_v1, %v677_v1  ;;  %v648_v6 = vmax.f32 %v1261_v2, 0.0  ;;  %v680_v7 = vmax.f32 %v1293_v3, 0.0 }
 0x118   :  { %v465_v8 = vpop.f32.mrf.mxu0  ;;  %v593_v9 = vpop.f32.mrf.mxu1 }
 0x119   :  { %966 = vst.msk [vmem:[%s1747_s2 + $0x60] sm:$0xf] %vm941_vm0, %v1138_v4  ;;  %998 = vst.msk [vmem:[%s1747_s2 + $0xe0] sm:$0xf] %vm941_vm0, %v1170_v5  ;;  %v1141_v10 = vpack.c.bf16 %v648_v6, %v648_v6  ;;  %v1173_v11 = vpack.c.bf16 %v680_v7, %v680_v7  ;;  %v646_v12 = vmax.f32 %v465_v8, 0.0  ;;  %v678_v13 = vmax.f32 %v593_v9, 0.0 }
 0x11a   :  { %v1264_v14 = vpop.f32.mrf.mxu0  ;;  %v1296_v15 = vpop.f32.mrf.mxu1 }
 0x11b   :  { %969 = vst.msk [vmem:[%s1747_s2 + $0x6c] sm:$0xf] %vm941_vm0, %v1141_v10  ;;  %1001 = vst.msk [vmem:[%s1747_s2 + $0xec] sm:$0xf] %vm941_vm0, %v1173_v11  ;;  %v1139_v16 = vpack.c.bf16 %v646_v12, %v646_v12  ;;  %v1171_v17 = vpack.c.bf16 %v678_v13, %v678_v13  ;;  %v651_v18 = vmax.f32 %v1264_v14, 0.0  ;;  %v683_v19 = vmax.f32 %v1296_v15, 0.0 }
 0x11c   :  { %v478_v20 = vpop.f32.mrf.mxu0  ;;  %v606_v21 = vpop.f32.mrf.mxu1 }
 0x11d   :  { %967 = vst.msk [vmem:[%s1747_s2 + $0x64] sm:$0xf] %vm941_vm0, %v1139_v16  ;;  %999 = vst.msk [vmem:[%s1747_s2 + $0xe4] sm:$0xf] %vm941_vm0, %v1171_v17  ;;  %v1144_v22 = vpack.c.bf16 %v651_v18, %v651_v18  ;;  %v1176_v23 = vpack.c.bf16 %v683_v19, %v683_v19  ;;  %v649_v24 = vmax.f32 %v478_v20, 0.0  ;;  %v681_v25 = vmax.f32 %v606_v21, 0.0 }
 0x11e   :  { %v1265_v26 = vpop.f32.mrf.mxu0  ;;  %v1297_v27 = vpop.f32.mrf.mxu1 }
 0x11f   :  { %972 = vst.msk [vmem:[%s1747_s2 + $0x78] sm:$0xf] %vm941_vm0, %v1144_v22  ;;  %1004 = vst.msk [vmem:[%s1747_s2 + $0xf8] sm:$0xf] %vm941_vm0, %v1176_v23  ;;  %v1142_v28 = vpack.c.bf16 %v649_v24, %v649_v24  ;;  %v1174_v29 = vpack.c.bf16 %v681_v25, %v681_v25  ;;  %v652_v30 = vmax.f32 %v1265_v26, 0.0  ;;  %v684_v31 = vmax.f32 %v1297_v27, 0.0 }
 0x120   :  { %v481_v32 = vpop.f32.mrf.mxu0  ;;  %v609_v33 = vpop.f32.mrf.mxu1 }
 0x121   :  { %970 = vst.msk [vmem:[%s1747_s2 + $0x70] sm:$0xf] %vm941_vm0, %v1142_v28  ;;  %1002 = vst.msk [vmem:[%s1747_s2 + $0xf0] sm:$0xf] %vm941_vm0, %v1174_v29  ;;  %v1145_v34 = vpack.c.bf16 %v652_v30, %v652_v30  ;;  %v1177_v35 = vpack.c.bf16 %v684_v31, %v684_v31  ;;  %v650_v36 = vmax.f32 %v481_v32, 0.0  ;;  %v682_v37 = vmax.f32 %v609_v33, 0.0 }
 0x123   :  { %973 = vst.msk [vmem:[%s1747_s2 + $0x7c] sm:$0xf] %vm941_vm0, %v1145_v34  ;;  %1005 = vst.msk [vmem:[%s1747_s2 + $0xfc] sm:$0xf] %vm941_vm0, %v1177_v35  ;;  %v1143_v38 = vpack.c.bf16 %v650_v36, %v650_v36  ;;  %v1175_v39 = vpack.c.bf16 %v682_v37, %v682_v37 }
 0x125   :  { %971 = vst.msk [vmem:[%s1747_s2 + $0x74] sm:$0xf] %vm941_vm0, %v1143_v38  ;;  %1003 = vst.msk [vmem:[%s1747_s2 + $0xf4] sm:$0xf] %vm941_vm0, %v1175_v39 }

// kernel: ednet_forward.12
= control target key start
LH: loop header
LB: loop body
LE: loop exit
PB: predicated region body
PF: predicated region fallthrough
CT: control target
= control target key end

     0   :  { %vm413_vm0 = vcmask 257024   ;;  %s793_s1 = inlined_call_operand.vmem [shape: bf16[256,32], index: 1, kind: input, shape index: {}]   ;;  %s794_s0 = inlined_call_operand.vmem [shape: bf16[128,256], index: 0, kind: input, shape index: {}]   ;;  %s795_s2 = inlined_call_operand.vmem [shape: bf16[128,32], index: 2, kind: output, shape index: {}]  }
   0x1   :  { %v578_v0 = vld [vmem:[%s793_s1 + $0x78] sm:$0xff]   ;;  %v580_v2 = vld [vmem:[%s793_s1 + $0x70] sm:$0xff]   ;;  %v582_v4 = vld [vmem:[%s793_s1 + $0x68] sm:$0xff]  }
   0x2   :  { %v579_v1 = vld [vmem:[%s793_s1 + $0x38] sm:$0xff]   ;;  %498 = vmatprep.subr.bf16.mxu0 %v578_v0  ;;  %562 = vmatprep.subr.bf16.mxu1 %v578_v0  ;;  %v581_v3 = vld [vmem:[%s793_s1 + $0x30] sm:$0xff]   ;;  %v583_v5 = vld [vmem:[%s793_s1 + $0x28] sm:$0xff]  }
   0x3   :  { %499 = vmatpush3.bf16.msra.mxu0 %v579_v1  ;;  %570 = vmatpush3.bf16.msra.mxu1 %v579_v1  ;;  %v584_v6 = vld [vmem:[%s793_s1 + $0x60] sm:$0xff]   ;;  %v586_v8 = vld [vmem:[%s793_s1 + $0x58] sm:$0xff]   ;;  %v588_v10 = vld [vmem:[%s793_s1 + $0x50] sm:$0xff]  }
   0x4   :  { %500 = vmatprep.subr.bf16.mxu0 %v580_v2  ;;  %563 = vmatprep.subr.bf16.mxu1 %v580_v2  ;;  %v585_v7 = vld [vmem:[%s793_s1 + $0x20] sm:$0xff]   ;;  %v587_v9 = vld [vmem:[%s793_s1 + $0x18] sm:$0xff]   ;;  %v589_v13 = vld [vmem:[%s793_s1 + $0x10] sm:$0xff]  }
   0x5   :  { %v596_v11 = vld [vmem:[%s794_s0 + $0x4] ss:$8 sps:$4 sm:$0xff]   ;;  %v594_v18 = vld [vmem:[%s794_s0] ss:$8 sps:$4 sm:$0xff]   ;;  %v600_v20 = vld [vmem:[%s794_s0 + $0x14] ss:$8 sps:$4 sm:$0xff]  }
   0x6   :  { %v599_v12 = vld [vmem:[%s794_s0 + $0x44] ss:$8 sps:$4 sm:$0xff]   ;;  %268 = vmatprep.mubr.bf16.mxu0 %v596_v11  ;;  %v597_v19 = vld [vmem:[%s794_s0 + $0x40] ss:$8 sps:$4 sm:$0xff]   ;;  %v602_v21 = vld [vmem:[%s794_s0 + $0x54] ss:$8 sps:$4 sm:$0xff]  }
   0x7   :  { %501 = vmatpush3.bf16.msra.mxu0 %v581_v3  ;;  %571 = vmatpush3.bf16.msra.mxu1 %v581_v3  ;;  %v590_v14 = vld [vmem:[%s793_s1 + $0x48] sm:$0xff]   ;;  %v592_v16 = vld [vmem:[%s793_s1 + $0x40] sm:$0xff]   ;;  %v604_v22 = vld [vmem:[%s794_s0 + $0x10] ss:$8 sps:$4 sm:$0xff]  }
   0x8   :  { %502 = vmatprep.subr.bf16.mxu0 %v582_v4  ;;  %564 = vmatprep.subr.bf16.mxu1 %v582_v4  ;;  %v591_v15 = vld [vmem:[%s793_s1 + $0x8] sm:$0xff]   ;;  %v593_v17 = vld [vmem:[%s793_s1] sm:$0xff]   ;;  %v605_v23 = vld [vmem:[%s794_s0 + $0x50] ss:$8 sps:$4 sm:$0xff]  }
   0x9   :  { %300 = vmatprep.mubr.bf16.mxu1 %v599_v12  ;;  %v606_v24 = vld [vmem:[%s794_s0 + $0x24] ss:$8 sps:$4 sm:$0xff]   ;;  %v610_v26 = vld [vmem:[%s794_s0 + $0x20] ss:$8 sps:$4 sm:$0xff]   ;;  %v612_v28 = vld [vmem:[%s794_s0 + $0x34] ss:$8 sps:$4 sm:$0xff]  }
   0xa   :  { %v608_v25 = vld [vmem:[%s794_s0 + $0x64] ss:$8 sps:$4 sm:$0xff]   ;;  %v611_v27 = vld [vmem:[%s794_s0 + $0x60] ss:$8 sps:$4 sm:$0xff]   ;;  %v614_v29 = vld [vmem:[%s794_s0 + $0x74] ss:$8 sps:$4 sm:$0xff]  }
   0xb   :  { %503 = vmatpush3.bf16.msra.mxu0 %v583_v5  ;;  %572 = vmatpush3.bf16.msra.mxu1 %v583_v5  ;;  %v616_v30 = vld [vmem:[%s794_s0 + $0x30] ss:$8 sps:$4 sm:$0xff]  }
   0xc   :  { %504 = vmatprep.subr.bf16.mxu0 %v584_v6  ;;  %565 = vmatprep.subr.bf16.mxu1 %v584_v6  ;;  %v617_v31 = vld [vmem:[%s794_s0 + $0x70] ss:$8 sps:$4 sm:$0xff]  }
   0xf   :  { %505 = vmatpush3.bf16.msra.mxu0 %v585_v7  ;;  %573 = vmatpush3.bf16.msra.mxu1 %v585_v7 }
  0x10   :  { %506 = vmatprep.subr.bf16.mxu0 %v586_v8  ;;  %566 = vmatprep.subr.bf16.mxu1 %v586_v8 }
  0x13   :  { %507 = vmatpush3.bf16.msra.mxu0 %v587_v9  ;;  %574 = vmatpush3.bf16.msra.mxu1 %v587_v9 }
  0x14   :  { %508 = vmatprep.subr.bf16.mxu0 %v588_v10  ;;  %567 = vmatprep.subr.bf16.mxu1 %v588_v10 }
  0x17   :  { %509 = vmatpush3.bf16.msra.mxu0 %v589_v13  ;;  %575 = vmatpush3.bf16.msra.mxu1 %v589_v13 }
  0x18   :  { %510 = vmatprep.subr.bf16.mxu0 %v590_v14  ;;  %568 = vmatprep.subr.bf16.mxu1 %v590_v14 }
  0x1b   :  { %511 = vmatpush3.bf16.msra.mxu0 %v591_v15  ;;  %576 = vmatpush3.bf16.msra.mxu1 %v591_v15 }
  0x1c   :  { %512 = vmatprep.subr.bf16.mxu0 %v592_v16  ;;  %569 = vmatprep.subr.bf16.mxu1 %v592_v16 }
  0x1f   :  { %513 = vmatpush3.bf16.msra.mxu0 %v593_v17  ;;  %577 = vmatpush3.bf16.msra.mxu1 %v593_v17 }
  0x22   :  { %269 = vmatmul.mubr.bf16.vlgmr.msra.gmra.mxu0 %v594_v18  ;;  %301 = vmatmul.mubr.bf16.vlgmr.msra.gmra.mxu1 %v597_v19 }
  0x23   :  { %276 = vmatprep.mubr.bf16.mxu0 %v600_v20  ;;  %308 = vmatprep.mubr.bf16.mxu1 %v602_v21 }
  0x2a   :  { %277 = vmatmul.mubr.bf16.gmra.mxu0 %v604_v22  ;;  %309 = vmatmul.mubr.bf16.gmra.mxu1 %v605_v23 }
  0x2b   :  { %284 = vmatprep.mubr.bf16.mxu0 %v606_v24  ;;  %316 = vmatprep.mubr.bf16.mxu1 %v608_v25 }
  0x32   :  { %285 = vmatmul.mubr.bf16.gmra.mxu0 %v610_v26  ;;  %317 = vmatmul.mubr.bf16.gmra.mxu1 %v611_v27 }
  0x33   :  { %292 = vmatprep.mubr.bf16.mxu0 %v612_v28  ;;  %324 = vmatprep.mubr.bf16.mxu1 %v614_v29 }
  0x3a   :  { %293 = vmatmul.mubr.bf16.gmra.mxu0 %v616_v30  ;;  %325 = vmatmul.mubr.bf16.gmra.mxu1 %v617_v31 }
  0xe2   :  { %v514_v32 = vpop.f32.mrf.mxu0  ;;  %v538_v33 = vpop.f32.mrf.mxu1 }
  0xe4   :  { %v515_v34 = vpop.f32.mrf.mxu0  ;;  %v539_v35 = vpop.f32.mrf.mxu1 }
  0xe5   :  { %v516_v36 = vadd.f32 %v515_v34, %v514_v32  ;;  %v540_v37 = vadd.f32 %v539_v35, %v538_v33 }
  0xe6   :  { %v517_v38 = vpop.f32.mrf.mxu0  ;;  %v541_v39 = vpop.f32.mrf.mxu1 }
  0xe7   :  { %v333_v40 = vmax.f32 %v516_v36, 0.0  ;;  %v341_v41 = vmax.f32 %v540_v37, 0.0 }
  0xe8   :  { %v518_v42 = vpop.f32.mrf.mxu0  ;;  %v542_v43 = vpop.f32.mrf.mxu1 }
  0xe9   :  { %v482_v44 = vpack.c.bf16 %v333_v40, %v333_v40  ;;  %v490_v45 = vpack.c.bf16 %v341_v41, %v341_v41  ;;  %v519_v46 = vadd.f32 %v518_v42, %v517_v38  ;;  %v543_v47 = vadd.f32 %v542_v43, %v541_v39 }
  0xea   :  { %v520_v48 = vpop.f32.mrf.mxu0  ;;  %v544_v49 = vpop.f32.mrf.mxu1 }
  0xeb   :  { %414 = vst.msk [vmem:[%s795_s2] sm:$0xf] %vm413_vm0, %v482_v44  ;;  %422 = vst.msk [vmem:[%s795_s2 + $0x20] sm:$0xf] %vm413_vm0, %v490_v45  ;;  %v334_v50 = vmax.f32 %v519_v46, 0.0  ;;  %v342_v51 = vmax.f32 %v543_v47, 0.0 }
  0xec   :  { %v521_v52 = vpop.f32.mrf.mxu0  ;;  %v545_v53 = vpop.f32.mrf.mxu1 }
  0xed   :  { %v483_v54 = vpack.c.bf16 %v334_v50, %v334_v50  ;;  %v491_v55 = vpack.c.bf16 %v342_v51, %v342_v51  ;;  %v522_v56 = vadd.f32 %v521_v52, %v520_v48  ;;  %v546_v57 = vadd.f32 %v545_v53, %v544_v49 }
  0xee   :  { %v523_v58 = vpop.f32.mrf.mxu0  ;;  %v547_v59 = vpop.f32.mrf.mxu1 }
  0xef   :  { %415 = vst.msk [vmem:[%s795_s2 + $0x4] sm:$0xf] %vm413_vm0, %v483_v54  ;;  %423 = vst.msk [vmem:[%s795_s2 + $0x24] sm:$0xf] %vm413_vm0, %v491_v55  ;;  %v335_v60 = vmax.f32 %v522_v56, 0.0  ;;  %v343_v61 = vmax.f32 %v546_v57, 0.0 }
  0xf0   :  { %v524_v62 = vpop.f32.mrf.mxu0  ;;  %v548_v63 = vpop.f32.mrf.mxu1 }
  0xf1   :  { %v484_v0 = vpack.c.bf16 %v335_v60, %v335_v60  ;;  %v492_v1 = vpack.c.bf16 %v343_v61, %v343_v61  ;;  %v525_v2 = vadd.f32 %v524_v62, %v523_v58  ;;  %v549_v3 = vadd.f32 %v548_v63, %v547_v59 }
  0xf2   :  { %v526_v4 = vpop.f32.mrf.mxu0  ;;  %v550_v5 = vpop.f32.mrf.mxu1 }
  0xf3   :  { %416 = vst.msk [vmem:[%s795_s2 + $0x8] sm:$0xf] %vm413_vm0, %v484_v0  ;;  %424 = vst.msk [vmem:[%s795_s2 + $0x28] sm:$0xf] %vm413_vm0, %v492_v1  ;;  %v336_v6 = vmax.f32 %v525_v2, 0.0  ;;  %v344_v7 = vmax.f32 %v549_v3, 0.0 }
  0xf4   :  { %v527_v8 = vpop.f32.mrf.mxu0  ;;  %v551_v9 = vpop.f32.mrf.mxu1 }
  0xf5   :  { %v485_v10 = vpack.c.bf16 %v336_v6, %v336_v6  ;;  %v493_v11 = vpack.c.bf16 %v344_v7, %v344_v7  ;;  %v528_v12 = vadd.f32 %v527_v8, %v526_v4  ;;  %v552_v13 = vadd.f32 %v551_v9, %v550_v5 }
  0xf6   :  { %v529_v14 = vpop.f32.mrf.mxu0  ;;  %v553_v15 = vpop.f32.mrf.mxu1 }
  0xf7   :  { %417 = vst.msk [vmem:[%s795_s2 + $0xc] sm:$0xf] %vm413_vm0, %v485_v10  ;;  %425 = vst.msk [vmem:[%s795_s2 + $0x2c] sm:$0xf] %vm413_vm0, %v493_v11  ;;  %v337_v16 = vmax.f32 %v528_v12, 0.0  ;;  %v345_v17 = vmax.f32 %v552_v13, 0.0 }
  0xf8   :  { %v530_v18 = vpop.f32.mrf.mxu0  ;;  %v554_v19 = vpop.f32.mrf.mxu1 }
  0xf9   :  { %v486_v20 = vpack.c.bf16 %v337_v16, %v337_v16  ;;  %v494_v21 = vpack.c.bf16 %v345_v17, %v345_v17  ;;  %v531_v22 = vadd.f32 %v530_v18, %v529_v14  ;;  %v555_v23 = vadd.f32 %v554_v19, %v553_v15 }
  0xfa   :  { %v532_v24 = vpop.f32.mrf.mxu0  ;;  %v556_v25 = vpop.f32.mrf.mxu1 }
  0xfb   :  { %418 = vst.msk [vmem:[%s795_s2 + $0x10] sm:$0xf] %vm413_vm0, %v486_v20  ;;  %426 = vst.msk [vmem:[%s795_s2 + $0x30] sm:$0xf] %vm413_vm0, %v494_v21  ;;  %v338_v26 = vmax.f32 %v531_v22, 0.0  ;;  %v346_v27 = vmax.f32 %v555_v23, 0.0 }
  0xfc   :  { %v533_v28 = vpop.f32.mrf.mxu0  ;;  %v557_v29 = vpop.f32.mrf.mxu1 }
  0xfd   :  { %v487_v30 = vpack.c.bf16 %v338_v26, %v338_v26  ;;  %v495_v31 = vpack.c.bf16 %v346_v27, %v346_v27  ;;  %v534_v32 = vadd.f32 %v533_v28, %v532_v24  ;;  %v558_v33 = vadd.f32 %v557_v29, %v556_v25 }
  0xfe   :  { %v535_v34 = vpop.f32.mrf.mxu0  ;;  %v559_v35 = vpop.f32.mrf.mxu1 }
  0xff   :  { %419 = vst.msk [vmem:[%s795_s2 + $0x14] sm:$0xf] %vm413_vm0, %v487_v30  ;;  %427 = vst.msk [vmem:[%s795_s2 + $0x34] sm:$0xf] %vm413_vm0, %v495_v31  ;;  %v339_v36 = vmax.f32 %v534_v32, 0.0  ;;  %v347_v37 = vmax.f32 %v558_v33, 0.0 }
 0x100   :  { %v536_v38 = vpop.f32.mrf.mxu0  ;;  %v560_v39 = vpop.f32.mrf.mxu1 }
 0x101   :  { %v488_v40 = vpack.c.bf16 %v339_v36, %v339_v36  ;;  %v496_v41 = vpack.c.bf16 %v347_v37, %v347_v37  ;;  %v537_v42 = vadd.f32 %v536_v38, %v535_v34  ;;  %v561_v43 = vadd.f32 %v560_v39, %v559_v35 }
 0x103   :  { %420 = vst.msk [vmem:[%s795_s2 + $0x18] sm:$0xf] %vm413_vm0, %v488_v40  ;;  %428 = vst.msk [vmem:[%s795_s2 + $0x38] sm:$0xf] %vm413_vm0, %v496_v41  ;;  %v340_v44 = vmax.f32 %v537_v42, 0.0  ;;  %v348_v45 = vmax.f32 %v561_v43, 0.0 }
 0x105   :  { %v489_v46 = vpack.c.bf16 %v340_v44, %v340_v44  ;;  %v497_v47 = vpack.c.bf16 %v348_v45, %v348_v45 }
 0x107   :  { %421 = vst.msk [vmem:[%s795_s2 + $0x1c] sm:$0xf] %vm413_vm0, %v489_v46  ;;  %429 = vst.msk [vmem:[%s795_s2 + $0x3c] sm:$0xf] %vm413_vm0, %v497_v47 }

// kernel: ednet_forward.13
= control target key start
LH: loop header
LB: loop body
LE: loop exit
PB: predicated region body
PF: predicated region fallthrough
CT: control target
= control target key end

     0   :  { %vm434_vm0 = vcmask 519168   ;;  %s742_s1 = inlined_call_operand.vmem [shape: bf16[512,64], index: 1, kind: input, shape index: {}]   ;;  %s743_s0 = inlined_call_operand.vmem [shape: bf16[32,512], index: 0, kind: input, shape index: {}]   ;;  %s744_s2 = inlined_call_operand.vmem [shape: bf16[32,64], index: 2, kind: output, shape index: {}]  }
   0x1   :  { %v547_v0 = vld [vmem:[%s742_s1 + $0x78] sm:$0xff]   ;;  %v551_v4 = vld [vmem:[%s742_s1 + $0x70] sm:$0xff]   ;;  %v555_v8 = vld [vmem:[%s742_s1 + $0x68] sm:$0xff]  }
   0x2   :  { %v548_v1 = vld [vmem:[%s742_s1 + $0xf8] sm:$0xff]   ;;  %491 = vmatprep.subr.bf16.mxu0 %v547_v0  ;;  %v552_v5 = vld [vmem:[%s742_s1 + $0xf0] sm:$0xff]   ;;  %v556_v9 = vld [vmem:[%s742_s1 + $0xe8] sm:$0xff]  }
   0x3   :  { %v549_v2 = vld [vmem:[%s742_s1 + $0x38] sm:$0xff]   ;;  %519 = vmatprep.subr.bf16.mxu1 %v548_v1  ;;  %v553_v6 = vld [vmem:[%s742_s1 + $0x30] sm:$0xff]   ;;  %v557_v10 = vld [vmem:[%s742_s1 + $0x28] sm:$0xff]  }
   0x4   :  { %v550_v3 = vld [vmem:[%s742_s1 + $0xb8] sm:$0xff]   ;;  %492 = vmatpush3.bf16.msra.mxu0 %v549_v2  ;;  %v554_v7 = vld [vmem:[%s742_s1 + $0xb0] sm:$0xff]   ;;  %v558_v11 = vld [vmem:[%s742_s1 + $0xa8] sm:$0xff]  }
   0x5   :  { %520 = vmatpush3.bf16.msra.mxu1 %v550_v3  ;;  %493 = vmatprep.subr.bf16.mxu0 %v551_v4  ;;  %v559_v12 = vld [vmem:[%s742_s1 + $0x60] sm:$0xff]   ;;  %v563_v16 = vld [vmem:[%s742_s1 + $0x58] sm:$0xff]   ;;  %v567_v20 = vld [vmem:[%s742_s1 + $0x50] sm:$0xff]  }
   0x6   :  { %521 = vmatprep.subr.bf16.mxu1 %v552_v5  ;;  %v560_v13 = vld [vmem:[%s742_s1 + $0xe0] sm:$0xff]   ;;  %v564_v17 = vld [vmem:[%s742_s1 + $0xd8] sm:$0xff]   ;;  %v568_v21 = vld [vmem:[%s742_s1 + $0xd0] sm:$0xff]  }
   0x7   :  { %v561_v14 = vld [vmem:[%s742_s1 + $0x20] sm:$0xff]   ;;  %v565_v18 = vld [vmem:[%s742_s1 + $0x18] sm:$0xff]   ;;  %v569_v22 = vld [vmem:[%s742_s1 + $0x10] sm:$0xff]  }
   0x8   :  { %494 = vmatpush3.bf16.msra.mxu0 %v553_v6  ;;  %v562_v15 = vld [vmem:[%s742_s1 + $0xa0] sm:$0xff]   ;;  %v566_v19 = vld [vmem:[%s742_s1 + $0x98] sm:$0xff]   ;;  %v570_v23 = vld [vmem:[%s742_s1 + $0x90] sm:$0xff]  }
   0x9   :  { %522 = vmatpush3.bf16.msra.mxu1 %v554_v7  ;;  %495 = vmatprep.subr.bf16.mxu0 %v555_v8  ;;  %v571_v24 = vld [vmem:[%s742_s1 + $0x48] sm:$0xff]   ;;  %v575_v28 = vld [vmem:[%s742_s1 + $0x40] sm:$0xff]  }
   0xa   :  { %523 = vmatprep.subr.bf16.mxu1 %v556_v9  ;;  %v572_v25 = vld [vmem:[%s742_s1 + $0xc8] sm:$0xff]   ;;  %v576_v29 = vld [vmem:[%s742_s1 + $0xc0] sm:$0xff]  }
   0xb   :  { %v573_v26 = vld [vmem:[%s742_s1 + $0x8] sm:$0xff]   ;;  %v577_v30 = vld [vmem:[%s742_s1] sm:$0xff]  }
   0xc   :  { %496 = vmatpush3.bf16.msra.mxu0 %v557_v10  ;;  %v574_v27 = vld [vmem:[%s742_s1 + $0x88] sm:$0xff]   ;;  %v578_v31 = vld [vmem:[%s742_s1 + $0x80] sm:$0xff]  }
   0xd   :  { %524 = vmatpush3.bf16.msra.mxu1 %v558_v11  ;;  %497 = vmatprep.subr.bf16.mxu0 %v559_v12  ;;  %v579_v32 = vld [vmem:[%s743_s0] ss:$16 sps:$4 sm:$0xff]   ;;  %v581_v33 = vld [vmem:[%s743_s0 + $0x4] ss:$16 sps:$4 sm:$0xff]   ;;  %v582_v34 = vld [vmem:[%s743_s0 + $0x8] ss:$16 sps:$4 sm:$0xff]  }
   0xe   :  { %525 = vmatprep.subr.bf16.mxu1 %v560_v13  ;;  %v584_v35 = vld [vmem:[%s743_s0 + $0xc] ss:$16 sps:$4 sm:$0xff]   ;;  %348 = vmatprep.mubr.bf16.mxu0 %v581_v33  ;;  %v585_v36 = vld [vmem:[%s743_s0 + $0x24] ss:$16 sps:$4 sm:$0xff]   ;;  %v589_v38 = vld [vmem:[%s743_s0 + $0x20] ss:$16 sps:$4 sm:$0xff]  }
   0xf   :  { %397 = vmatprep.mubr.bf16.mxu1 %v584_v35  ;;  %v587_v37 = vld [vmem:[%s743_s0 + $0x2c] ss:$16 sps:$4 sm:$0xff]   ;;  %v590_v39 = vld [vmem:[%s743_s0 + $0x28] ss:$16 sps:$4 sm:$0xff]  }
  0x10   :  { %498 = vmatpush3.bf16.msra.mxu0 %v561_v14 }
  0x11   :  { %526 = vmatpush3.bf16.msra.mxu1 %v562_v15  ;;  %499 = vmatprep.subr.bf16.mxu0 %v563_v16 }
  0x12   :  { %527 = vmatprep.subr.bf16.mxu1 %v564_v17 }
  0x14   :  { %500 = vmatpush3.bf16.msra.mxu0 %v565_v18 }
  0x15   :  { %528 = vmatpush3.bf16.msra.mxu1 %v566_v19  ;;  %501 = vmatprep.subr.bf16.mxu0 %v567_v20 }
  0x16   :  { %529 = vmatprep.subr.bf16.mxu1 %v568_v21 }
  0x18   :  { %502 = vmatpush3.bf16.msra.mxu0 %v569_v22 }
  0x19   :  { %530 = vmatpush3.bf16.msra.mxu1 %v570_v23  ;;  %503 = vmatprep.subr.bf16.mxu0 %v571_v24 }
  0x1a   :  { %531 = vmatprep.subr.bf16.mxu1 %v572_v25 }
  0x1c   :  { %504 = vmatpush3.bf16.msra.mxu0 %v573_v26 }
  0x1d   :  { %532 = vmatpush3.bf16.msra.mxu1 %v574_v27  ;;  %505 = vmatprep.subr.bf16.mxu0 %v575_v28 }
  0x1e   :  { %533 = vmatprep.subr.bf16.mxu1 %v576_v29 }
  0x20   :  { %506 = vmatpush3.bf16.msra.mxu0 %v577_v30 }
  0x21   :  { %534 = vmatpush3.bf16.msra.mxu1 %v578_v31 }
  0x23   :  { %349 = vmatmul.mubr.bf16.vlgmr.msra.gmra.mxu0 %v579_v32 }
  0x24   :  { %398 = vmatmul.mubr.bf16.vlgmr.msra.gmra.mxu1 %v582_v34  ;;  %356 = vmatprep.mubr.bf16.mxu0 %v585_v36 }
  0x25   :  { %405 = vmatprep.mubr.bf16.mxu1 %v587_v37 }
  0x2b   :  { %357 = vmatmul.mubr.bf16.gmra.mxu0 %v589_v38 }
  0x2c   :  { %406 = vmatmul.mubr.bf16.gmra.mxu1 %v590_v39 }
  0xe3   :  { %v507_v40 = vpop.f32.mrf.mxu0 }
  0xe4   :  { %v535_v41 = vpop.f32.mrf.mxu1 }
  0xe5   :  { %v508_v42 = vpop.f32.mrf.mxu0 }
  0xe6   :  { %v509_v43 = vadd.f32 %v508_v42, %v507_v40  ;;  %v536_v44 = vpop.f32.mrf.mxu1 }
  0xe7   :  { %v537_v45 = vadd.f32 %v536_v44, %v535_v41  ;;  %v510_v46 = vpop.f32.mrf.mxu0 }
  0xe8   :  { %v538_v47 = vpop.f32.mrf.mxu1 }
  0xe9   :  { %v400_v48 = vadd.f32 %v537_v45, %v509_v43  ;;  %v511_v49 = vpop.f32.mrf.mxu0 }
  0xea   :  { %v512_v50 = vadd.f32 %v511_v49, %v510_v46  ;;  %v539_v51 = vpop.f32.mrf.mxu1 }
  0xeb   :  { %v414_v52 = vmax.f32 %v400_v48, 0.0  ;;  %v540_v53 = vadd.f32 %v539_v51, %v538_v47  ;;  %v513_v54 = vpop.f32.mrf.mxu0 }
  0xec   :  { %v541_v55 = vpop.f32.mrf.mxu1 }
  0xed   :  { %v487_v56 = vpack.c.bf16 %v414_v52, %v414_v52  ;;  %v403_v57 = vadd.f32 %v540_v53, %v512_v50  ;;  %v514_v58 = vpop.f32.mrf.mxu0 }
  0xee   :  { %v515_v59 = vadd.f32 %v514_v58, %v513_v54  ;;  %v542_v60 = vpop.f32.mrf.mxu1 }
  0xef   :  { %435 = vst.msk [vmem:[%s744_s2] sm:$0xf] %vm434_vm0, %v487_v56  ;;  %v415_v61 = vmax.f32 %v403_v57, 0.0  ;;  %v543_v62 = vadd.f32 %v542_v60, %v541_v55  ;;  %v516_v63 = vpop.f32.mrf.mxu0 }
  0xf0   :  { %v544_v0 = vpop.f32.mrf.mxu1 }
  0xf1   :  { %v488_v1 = vpack.c.bf16 %v415_v61, %v415_v61  ;;  %v408_v2 = vadd.f32 %v543_v62, %v515_v59  ;;  %v517_v3 = vpop.f32.mrf.mxu0 }
  0xf2   :  { %v518_v4 = vadd.f32 %v517_v3, %v516_v63  ;;  %v545_v5 = vpop.f32.mrf.mxu1 }
  0xf3   :  { %436 = vst.msk [vmem:[%s744_s2 + $0x4] sm:$0xf] %vm434_vm0, %v488_v1  ;;  %v416_v6 = vmax.f32 %v408_v2, 0.0  ;;  %v546_v7 = vadd.f32 %v545_v5, %v544_v0 }
  0xf5   :  { %v489_v8 = vpack.c.bf16 %v416_v6, %v416_v6  ;;  %v411_v9 = vadd.f32 %v546_v7, %v518_v4 }
  0xf7   :  { %437 = vst.msk [vmem:[%s744_s2 + $0x8] sm:$0xf] %vm434_vm0, %v489_v8  ;;  %v417_v10 = vmax.f32 %v411_v9, 0.0 }
  0xf9   :  { %v490_v11 = vpack.c.bf16 %v417_v10, %v417_v10 }
  0xfb   :  { %438 = vst.msk [vmem:[%s744_s2 + $0xc] sm:$0xf] %vm434_vm0, %v490_v11 }

// kernel: ednet_forward.15
= control target key start
LH: loop header
LB: loop body
LE: loop exit
PB: predicated region body
PF: predicated region fallthrough
CT: control target
= control target key end

     0   :  { %18 = vsyncpa [#allocation3], 0  ;;  %v1247_v1 = vmov 0.0   ;;  %vm1248_vm0 = vmmov 0   ;;  %s1612_s0 = inlined_call_operand.vmem [shape: bf16[2,128], index: 0, kind: input, shape index: {}]   ;;  %s1613_s1 = inlined_call_operand.vmem [shape: bf16[128,16], index: 1, kind: input, shape index: {}]   ;;  %s1614_s2 = inlined_call_operand.vmem [shape: f32[1,16], index: 2, kind: input, shape index: {}]   ;;  %s1615_s3 = inlined_call_operand.vmem [shape: bf16[128,16], index: 3, kind: input, shape index: {}]   ;;  %s1616_s4 = inlined_call_operand.vmem [shape: f32[1,16], index: 4, kind: input, shape index: {}]   ;;  %s1617_s5 = inlined_call_operand.vmem [shape: f32[2,16], index: 5, kind: input, shape index: {}]   ;;  %s1618_s6 = inlined_call_operand.vmem [shape: bf16[16,128], index: 6, kind: input, shape index: {}]   ;;  %s1619_s7 = inlined_call_operand.vmem [shape: f32[1,128], index: 7, kind: input, shape index: {}]   ;;  %s1620_s8 = inlined_call_operand.vmem [shape: bf16[128,1024], index: 8, kind: input, shape index: {}]   ;;  %s1621_s9 = inlined_call_operand.hbm [shape: f32[2,16], index: 9, kind: output, shape index: {0}]   ;;  %s1622_s10 = inlined_call_operand.hbm [shape: f32[2,16], index: 10, kind: output, shape index: {1}]   ;;  %s1623_s11 = inlined_call_operand.hbm [shape: f32[2,16], index: 11, kind: output, shape index: {2}]   ;;  %s1624_s12 = inlined_call_operand.vmem [shape: bf16[2,1024], index: 12, kind: output, shape index: {3}]  }
   0x1   :  { %v1164_v0 = vld [vmem:[%s1615_s3 + $0x38] sm:$0xff]   ;;  %1131 = vmatprep.subr.bf16.mxu1 %v1247_v1  ;;  %1111 = vmatprep.subr.bf16.mxu0 %v1247_v1  ;;  %v1165_v2 = vld [vmem:[%s1615_s3 + $0x30] sm:$0xff]   ;;  %v1166_v4 = vld [vmem:[%s1615_s3 + $0x28] sm:$0xff]  }
   0x2   :  { %1132 = vmatpush3.bf16.msra.mxu1 %v1164_v0  ;;  %1147 = vmatprep.mubr.msk.bf16.mxu1 %vm1248_vm0, %v1247_v1  ;;  %v1168_v3 = vld [vmem:[%s1613_s1 + $0x38] sm:$0xff]   ;;  %v1170_v5 = vld [vmem:[%s1613_s1 + $0x30] sm:$0xff]   ;;  %v1167_v6 = vld [vmem:[%s1615_s3 + $0x20] sm:$0xff]  }
   0x3   :  { %1133 = vmatprep.subr.bf16.mxu1 %v1247_v1  ;;  %1127 = vmatprep.mubr.msk.bf16.mxu0 %vm1248_vm0, %v1247_v1  ;;  %v1172_v7 = vld [vmem:[%s1613_s1 + $0x28] sm:$0xff]   ;;  %v1169_v8 = vld [vmem:[%s1615_s3 + $0x18] sm:$0xff]   ;;  %v1174_v9 = vld [vmem:[%s1613_s1 + $0x20] sm:$0xff]  }
   0x4   :  { %1112 = vmatpush3.bf16.msra.mxu0 %v1168_v3 }
   0x5   :  { %1113 = vmatprep.subr.bf16.mxu0 %v1247_v1 }
   0x6   :  { %1134 = vmatpush3.bf16.msra.mxu1 %v1165_v2 }
   0x7   :  { %1135 = vmatprep.subr.bf16.mxu1 %v1247_v1 }
   0x8   :  { %1114 = vmatpush3.bf16.msra.mxu0 %v1170_v5 }
   0x9   :  { %1115 = vmatprep.subr.bf16.mxu0 %v1247_v1 }
   0xa   :  { %1136 = vmatpush3.bf16.msra.mxu1 %v1166_v4 }
   0xb   :  { %1137 = vmatprep.subr.bf16.mxu1 %v1247_v1 }
   0xc   :  { %1116 = vmatpush3.bf16.msra.mxu0 %v1172_v7 }
   0xd   :  { %1117 = vmatprep.subr.bf16.mxu0 %v1247_v1 }
   0xe   :  { %1138 = vmatpush3.bf16.msra.mxu1 %v1167_v6 }
   0xf   :  { %1139 = vmatprep.subr.bf16.mxu1 %v1247_v1 }
  0x10   :  { %19 = vsyncpa [#allocation5], 0  ;;  %v1171_v10 = vld [vmem:[%s1615_s3 + $0x10] sm:$0xff]   ;;  %1118 = vmatpush3.bf16.msra.mxu0 %v1174_v9  ;;  %v1176_v11 = vld [vmem:[%s1613_s1 + $0x18] sm:$0xff]   ;;  %vm886_vm1 = vcmask 123904   ;;  %vm284_vm2 = vcmask 130048  }
  0x11   :  { %1119 = vmatprep.subr.bf16.mxu0 %v1247_v1  ;;  %v1173_v12 = vld [vmem:[%s1615_s3 + $0x8] sm:$0xff]   ;;  %v1177_v13 = vld [vmem:[%s1613_s1 + $0x10] sm:$0xff]   ;;  %v1175_v14 = vld [vmem:[%s1615_s3] sm:$0xff]   ;;  %s1251_s30 = smov [#allocation2]  }
  0x12   :  { %1140 = vmatpush3.bf16.msra.mxu1 %v1169_v8  ;;  %v1178_v15 = vld [vmem:[%s1613_s1 + $0x8] sm:$0xff]   ;;  %v39_v16 = vld [vmem:[%s1612_s0] sm:$0x1] }
  0x13   :  { %1141 = vmatprep.subr.bf16.mxu1 %v1247_v1  ;;  %v1179_v17 = vld [vmem:[%s1613_s1] sm:$0xff]   ;;  %v1385_v21 = vld [vmem:[%s1620_s8 + $0x1c8] sm:$0xff] }
  0x14   :  { %1120 = vmatpush3.bf16.msra.mxu0 %v1176_v11  ;;  %v1180_v18 = vld [vmem:[%s1618_s6] sm:$0xff]   ;;  %v1390_v24 = vld [vmem:[%s1620_s8 + $0x1e8] sm:$0xff] }
  0x15   :  { %1121 = vmatprep.subr.bf16.mxu0 %v1247_v1  ;;  %v386_v19 = vld [vmem:[%s1620_s8 + $0x1c0] sm:$0xff]  ;;  %v1081_v27 = vcombine.low %v1385_v21, %v1390_v24  ;;  %v1082_v28 = vcombine.high %v1385_v21, %v1390_v24  ;;  %v379_v4 = vld [vmem:[%s1620_s8 + $0x188] sm:$0xff] }
  0x16   :  { %1142 = vmatpush3.bf16.msra.mxu1 %v1171_v10  ;;  %v390_v20 = vld [vmem:[%s1620_s8 + $0x1e0] sm:$0xff]  ;;  %v383_v5 = vld [vmem:[%s1620_s8 + $0x1a8] sm:$0xff] }
  0x17   :  { %1143 = vmatprep.subr.bf16.mxu1 %v1247_v1  ;;  %v1079_v22 = vcombine.low %v386_v19, %v390_v20  ;;  %v1080_v23 = vcombine.high %v386_v19, %v390_v20  ;;  %v378_v25 = vld [vmem:[%s1620_s8 + $0x180] sm:$0xff]  ;;  %v1074_v8 = vcombine.high %v379_v4, %v383_v5  ;;  %v371_v9 = vld [vmem:[%s1620_s8 + $0x148] sm:$0xff]  ;;  %v1073_v11 = vcombine.low %v379_v4, %v383_v5  ;;  %v364_v5 = vld [vmem:[%s1620_s8 + $0x110] sm:$0xff] }
  0x18   :  { %1122 = vmatpush3.bf16.msra.mxu0 %v1177_v13  ;;  %v382_v26 = vld [vmem:[%s1620_s8 + $0x1a0] sm:$0xff]  ;;  %v375_v10 = vld [vmem:[%s1620_s8 + $0x168] sm:$0xff] }
  0x19   :  { %1123 = vmatprep.subr.bf16.mxu0 %v1247_v1  ;;  %v1072_v29 = vcombine.high %v378_v25, %v382_v26  ;;  %v1071_v30 = vcombine.low %v378_v25, %v382_v26  ;;  %v370_v31 = vld [vmem:[%s1620_s8 + $0x140] sm:$0xff]  ;;  %v363_v13 = vld [vmem:[%s1620_s8 + $0x108] sm:$0xff] }
  0x1a   :  { %1144 = vmatpush3.bf16.msra.mxu1 %v1173_v12  ;;  %v374_v32 = vld [vmem:[%s1620_s8 + $0x160] sm:$0xff]  ;;  %v1066_v12 = vcombine.high %v371_v9, %v375_v10  ;;  %v347_v21 = vld [vmem:[%s1620_s8 + $0x88] sm:$0xff] }
  0x1b   :  { %1145 = vmatprep.subr.bf16.mxu1 %v1247_v1  ;;  %v1064_v33 = vcombine.high %v370_v31, %v374_v32  ;;  %v1063_v34 = vcombine.low %v370_v31, %v374_v32  ;;  %v362_v35 = vld [vmem:[%s1620_s8 + $0x100] sm:$0xff]  ;;  %v339_v25 = vld [vmem:[%s1620_s8 + $0x48] sm:$0xff] }
  0x1c   :  { %1124 = vmatpush3.bf16.msra.mxu0 %v1178_v15  ;;  %v366_v36 = vld [vmem:[%s1620_s8 + $0x120] sm:$0xff]  ;;  %v1065_v15 = vcombine.low %v371_v9, %v375_v10  ;;  %v343_v26 = vld [vmem:[%s1620_s8 + $0x68] sm:$0xff] }
  0x1d   :  { %1125 = vmatprep.subr.bf16.mxu0 %v1247_v1  ;;  %v1056_v37 = vcombine.high %v362_v35, %v366_v36  ;;  %v1055_v38 = vcombine.low %v362_v35, %v366_v36  ;;  %v354_v39 = vld [vmem:[%s1620_s8 + $0xc0] sm:$0xff]  ;;  %v331_v32 = vld [vmem:[%s1620_s8 + $0x8] sm:$0xff] }
  0x1e   :  { %1146 = vmatpush3.bf16.msra.mxu1 %v1175_v14  ;;  %v358_v40 = vld [vmem:[%s1620_s8 + $0xe0] sm:$0xff]  ;;  %v367_v14 = vld [vmem:[%s1620_s8 + $0x128] sm:$0xff] }
  0x1f   :  { %714 = vmatprep.subr.bf16.mxu1 %v1080_v23  ;;  %v1048_v41 = vcombine.high %v354_v39, %v358_v40  ;;  %v1047_v42 = vcombine.low %v354_v39, %v358_v40  ;;  %v346_v43 = vld [vmem:[%s1620_s8 + $0x80] sm:$0xff]  ;;  %v1057_v19 = vcombine.low %v363_v13, %v367_v14  ;;  %v392_v39 = vld [vmem:[%s1620_s8 + $0x1f0] sm:$0xff]  ;;  %v389_v40 = vld [vmem:[%s1620_s8 + $0x1d8] sm:$0xff] }
  0x20   :  { %1126 = vmatpush3.bf16.msra.mxu0 %v1179_v17  ;;  %v350_v44 = vld [vmem:[%s1620_s8 + $0xa0] sm:$0xff]  ;;  %v355_v17 = vld [vmem:[%s1620_s8 + $0xc8] sm:$0xff] }
  0x21   :  { %1148 = vmatmul.mubr.bf16.vlgmr.msra.gmra.mxu1 %v39_v16  ;;  %1151 = vmatprep.subr.bf16.mxu0 %v1247_v1  ;;  %v1040_v45 = vcombine.high %v346_v43, %v350_v44  ;;  %v1039_v46 = vcombine.low %v346_v43, %v350_v44  ;;  %v338_v47 = vld [vmem:[%s1620_s8 + $0x40] sm:$0xff] }
  0x22   :  { %715 = vmatpush1.bf16.msra.mxu1 %v1079_v22  ;;  %v342_v48 = vld [vmem:[%s1620_s8 + $0x60] sm:$0xff]  ;;  %v351_v22 = vld [vmem:[%s1620_s8 + $0xa8] sm:$0xff] }
  0x23   :  { %1128 = vmatmul.mubr.bf16.vlgmr.msra.gmra.mxu0 %v39_v16  ;;  %716 = vmatprep.subr.bf16.mxu1 %v1072_v29  ;;  %v1032_v49 = vcombine.high %v338_v47, %v342_v48  ;;  %v1031_v50 = vcombine.low %v338_v47, %v342_v48  ;;  %v1011_v51 = vld [vmem:[%s1616_s4] ss:$0 sm:$0xff]  ;;  %v1058_v16 = vcombine.high %v363_v13, %v367_v14  ;;  %v356_v13 = vld [vmem:[%s1620_s8 + $0xd0] sm:$0xff]  ;;  %s963_s4 = sshll.u32 %s1251_s30, 4  ;;  %s964_s4 = int_to_ptr.vmem [resolvable:$true] %s963_s4 }
  0x24   :  { %1153 = vmatprep.mubr.msk.bf16.mxu0 %vm1248_vm0, %v1247_v1  ;;  %1152 = vmatpush3.bf16.msra.mxu0 %v1180_v18  ;;  %v1002_v55 = vld [vmem:[%s1614_s2] ss:$0 sm:$0xff]  ;;  %v359_v18 = vld [vmem:[%s1620_s8 + $0xe8] sm:$0xff]  ;;  %v1042_v24 = vcombine.high %v347_v21, %v351_v22  ;;  %v1033_v29 = vcombine.low %v339_v25, %v343_v26  ;;  %v360_v14 = vld [vmem:[%s1620_s8 + $0xf0] sm:$0xff] }
  0x25   :  { %755 = vmatprep.subr.bf16.mxu0 %v1082_v28  ;;  %v265_v1 = vld [vmem:[%s1617_s5] sm:$0x3]  ;;  %v1050_v20 = vcombine.high %v355_v17, %v359_v18  ;;  %v1049_v23 = vcombine.low %v355_v17, %v359_v18  ;;  %v1034_v28 = vcombine.high %v339_v25, %v343_v26  ;;  %v1051_v25 = vcombine.low %v356_v13, %v360_v14 }
  0x26   :  { %717 = vmatpush1.bf16.msra.mxu1 %v1071_v30  ;;  %v330_v30 = vld [vmem:[%s1620_s8] sm:$0xff] }
  0x27   :  { %718 = vmatprep.subr.bf16.mxu1 %v1064_v33  ;;  %v334_v31 = vld [vmem:[%s1620_s8 + $0x20] sm:$0xff] }
  0x28   :  { %v1024_v33 = vcombine.high %v330_v30, %v334_v31  ;;  %v1023_v35 = vcombine.low %v330_v30, %v334_v31  ;;  %v1020_v47 = vld [vmem:[%s1619_s7] ss:$0 sm:$0xff]  ;;  %v344_v30 = vld [vmem:[%s1620_s8 + $0x70] sm:$0xff]  ;;  %v341_v31 = vld [vmem:[%s1620_s8 + $0x58] sm:$0xff] }
  0x2a   :  { %719 = vmatpush1.bf16.msra.mxu1 %v1063_v34  ;;  %v335_v34 = vld [vmem:[%s1620_s8 + $0x28] sm:$0xff] }
  0x2b   :  { %720 = vmatprep.subr.bf16.mxu1 %v1056_v37  ;;  %v1025_v36 = vcombine.low %v331_v32, %v335_v34  ;;  %v1026_v37 = vcombine.high %v331_v32, %v335_v34  ;;  %v345_v32 = vld [vmem:[%s1620_s8 + $0x78] sm:$0xff] }
  0x2e   :  { %721 = vmatpush1.bf16.msra.mxu1 %v1055_v38  ;;  %v388_v38 = vld [vmem:[%s1620_s8 + $0x1d0] sm:$0xff] }
  0x2f   :  { %722 = vmatprep.subr.bf16.mxu1 %v1048_v41  ;;  %v1084_v41 = vcombine.high %v388_v38, %v392_v39  ;;  %v1083_v43 = vcombine.low %v388_v38, %v392_v39  ;;  %v336_v38 = vld [vmem:[%s1620_s8 + $0x30] sm:$0xff]  ;;  %v333_v39 = vld [vmem:[%s1620_s8 + $0x18] sm:$0xff] }
  0x32   :  { %723 = vmatpush1.bf16.msra.mxu1 %v1047_v42  ;;  %v393_v42 = vld [vmem:[%s1620_s8 + $0x1f8] sm:$0xff] }
  0x33   :  { %724 = vmatprep.subr.bf16.mxu1 %v1040_v45  ;;  %v1085_v44 = vcombine.low %v389_v40, %v393_v42  ;;  %v1086_v45 = vcombine.high %v389_v40, %v393_v42  ;;  %v337_v40 = vld [vmem:[%s1620_s8 + $0x38] sm:$0xff]  ;;  %v1037_v42 = vcombine.low %v341_v31, %v345_v32 }
  0x36   :  { %725 = vmatpush1.bf16.msra.mxu1 %v1039_v46  ;;  %v1249_v46 = vmov 0  }
  0x37   :  { %726 = vmatprep.subr.bf16.mxu1 %v1032_v49  ;;  %746 = vmatprep.mubr.bf16.mxu1 %v1249_v46 }
  0x3a   :  { %727 = vmatpush1.bf16.msra.mxu1 %v1031_v50  ;;  %v380_v50 = vld [vmem:[%s1620_s8 + $0x190] sm:$0xff] }
  0x3b   :  { %728 = vmatprep.subr.bf16.mxu1 %v1024_v33 }
  0x3e   :  { %729 = vmatpush1.bf16.msra.mxu1 %v1023_v35 }
  0x3f   :  { %796 = vmatprep.subr.bf16.mxu1 %v1084_v41 }
  0xe1   :  { %v256_v52 = vpop.f32.mrf.mxu1 }
  0xe2   :  { %v257_v53 = vadd.f32 %v1011_v51, %v256_v52  ;;  %v384_v52 = vld [vmem:[%s1620_s8 + $0x1b0] sm:$0xff] }
  0xe3   :  { %v1149_v54 = vpop.f32.mrf.mxu1  ;;  %v145_v58 = vpop.f32.mrf.mxu0 }
  0xe4   :  { %v262_v56 = vmul.f32 0.5, %v257_v53  ;;  %888 = vst.msk [vmem:[#allocation4] sm:$0x3] %vm886_vm1, %v257_v53  ;;  %v146_v60 = vadd.f32 %v1002_v55, %v145_v58  ;;  %v381_v53 = vld [vmem:[%s1620_s8 + $0x198] sm:$0xff]  ;;  %v1076_v58 = vcombine.high %v380_v50, %v384_v52 }
  0xe5   :  { %v259_v57 = vpop.f32.mrf.mxu1  ;;  %v1129_v62 = vpop.f32.mrf.mxu0  ;;  %v385_v54 = vld [vmem:[%s1620_s8 + $0x1b8] sm:$0xff] }
  0xe6   :  { %v263_v59 = vmul.f32 1.442695, %v262_v56  ;;  %887 = vst.msk [vmem:[#allocation2] sm:$0x3] %vm886_vm1, %v146_v60  ;;  %v376_v62 = vld [vmem:[%s1620_s8 + $0x170] sm:$0xff] }
  0xe7   :  { %v1150_v61 = vpop.f32.mrf.mxu1  ;;  %v148_v63 = vpop.f32.mrf.mxu0 }
  0xe8   :  { %1181 = vpow2.f32 %v263_v59  ;;  %v1078_v59 = vcombine.high %v381_v53, %v385_v54  ;;  %v373_v63 = vld [vmem:[%s1620_s8 + $0x158] sm:$0xff] }
  0xe9   :  { %v1130_v0 = vpop.f32.mrf.mxu0 }
  0xea   :  { %v377_v0 = vld [vmem:[%s1620_s8 + $0x178] sm:$0xff] }
  0xeb   :  { %v1070_v4 = vcombine.high %v373_v63, %v377_v0  ;;  %v1069_v10 = vcombine.low %v373_v63, %v377_v0 }
  0xf5   :  { %v1182_v2 = vpop.eup %1181 }
  0xf6   :  { %v266_v3 = vmul.f32 %v1182_v2, %v265_v1  ;;  %v1075_v1 = vcombine.low %v380_v50, %v384_v52  ;;  %v1077_v2 = vcombine.low %v381_v53, %v385_v54 }
  0xf8   :  { %v267_v6 = vadd.f32 %v266_v3, %v146_v60  ;;  %v372_v60 = vld [vmem:[%s1620_s8 + $0x150] sm:$0xff] }
  0xf9   :  { %v1068_v3 = vcombine.high %v372_v60, %v376_v62  ;;  %v1067_v9 = vcombine.low %v372_v60, %v376_v62 }
  0xfa   :  { %v268_v7 = vpack.c.bf16 %v267_v6, %v267_v6  ;;  %889 = vst.msk [vmem:[#allocation6] sm:$0x3] %vm886_vm1, %v267_v6  ;;  %v368_v6 = vld [vmem:[%s1620_s8 + $0x130] sm:$0xff] }
  0xfb   :  { %v1059_v17 = vcombine.low %v364_v5, %v368_v6 }
  0xfc   :  { %1154 = vmatmul.mubr.msk.bf16.vlgmr.msra.gmra.mxu0 %vm284_vm2, %v268_v7  ;;  %v365_v7 = vld [vmem:[%s1620_s8 + $0x118] sm:$0xff] }
  0xfd   :  { %756 = vmatpush1.bf16.msra.mxu0 %v1081_v27  ;;  %v1041_v27 = vcombine.low %v347_v21, %v351_v22  ;;  %787 = vmatprep.mubr.bf16.mxu0 %v1249_v46  ;;  %v348_v21 = vld [vmem:[%s1620_s8 + $0x90] sm:$0xff] }
  0xfe   :  { %757 = vmatprep.subr.bf16.mxu0 %v1074_v8  ;;  %v369_v8 = vld [vmem:[%s1620_s8 + $0x138] sm:$0xff]  ;;  %v352_v22 = vld [vmem:[%s1620_s8 + $0xb0] sm:$0xff] }
  0xff   :  { %v1061_v18 = vcombine.low %v365_v7, %v369_v8  ;;  %v1043_v33 = vcombine.low %v348_v21, %v352_v22 }
 0x101   :  { %758 = vmatpush1.bf16.msra.mxu0 %v1073_v11  ;;  %v1060_v11 = vcombine.high %v364_v5, %v368_v6 }
 0x102   :  { %759 = vmatprep.subr.bf16.mxu0 %v1066_v12  ;;  %v1062_v12 = vcombine.high %v365_v7, %v369_v8 }
 0x105   :  { %760 = vmatpush1.bf16.msra.mxu0 %v1065_v15  ;;  %v357_v15 = vld [vmem:[%s1620_s8 + $0xd8] sm:$0xff] }
 0x106   :  { %761 = vmatprep.subr.bf16.mxu0 %v1058_v16  ;;  %v361_v16 = vld [vmem:[%s1620_s8 + $0xf8] sm:$0xff] }
 0x107   :  { %v1053_v26 = vcombine.low %v357_v15, %v361_v16 }
 0x109   :  { %762 = vmatpush1.bf16.msra.mxu0 %v1057_v19  ;;  %v1052_v19 = vcombine.high %v356_v13, %v360_v14 }
 0x10a   :  { %763 = vmatprep.subr.bf16.mxu0 %v1050_v20  ;;  %v1054_v20 = vcombine.high %v357_v15, %v361_v16 }
 0x10d   :  { %764 = vmatpush1.bf16.msra.mxu0 %v1049_v23  ;;  %v349_v23 = vld [vmem:[%s1620_s8 + $0x98] sm:$0xff] }
 0x10e   :  { %765 = vmatprep.subr.bf16.mxu0 %v1042_v24  ;;  %v353_v24 = vld [vmem:[%s1620_s8 + $0xb8] sm:$0xff] }
 0x10f   :  { %v1045_v34 = vcombine.low %v349_v23, %v353_v24 }
 0x111   :  { %766 = vmatpush1.bf16.msra.mxu0 %v1041_v27  ;;  %v1044_v27 = vcombine.high %v348_v21, %v352_v22 }
 0x112   :  { %767 = vmatprep.subr.bf16.mxu0 %v1034_v28  ;;  %v1046_v28 = vcombine.high %v349_v23, %v353_v24 }
 0x115   :  { %768 = vmatpush1.bf16.msra.mxu0 %v1033_v29  ;;  %v340_v29 = vld [vmem:[%s1620_s8 + $0x50] sm:$0xff] }
 0x116   :  { %769 = vmatprep.subr.bf16.mxu0 %v1026_v37  ;;  %v1036_v35 = vcombine.high %v340_v29, %v344_v30  ;;  %v332_v37 = vld [vmem:[%s1620_s8 + $0x10] sm:$0xff]  ;;  %v1035_v41 = vcombine.low %v340_v29, %v344_v30  ;;  %s1250_s8 = smov [#allocation4]  }
 0x117   :  { %s973_s29 = sshll.u32 %s1250_s8, 4  ;;  %s974_s29 = int_to_ptr.vmem [resolvable:$true] %s973_s29 }
 0x118   :  { %s1183_s13 = scalar_lea.vmem %s974_s29, 32  ;;  %p1188_p1 = scmp.lt.s32.totalorder %s974_s29, %s974_s29 }
 0x119   :  { %770 = vmatpush1.bf16.msra.mxu0 %v1025_v36  ;;  %v1038_v36 = vcombine.high %v341_v31, %v345_v32  ;;  %p1184_p0 = scmp.ne.s32.totalorder %s974_s29, %s1183_s13  ;;  %p1189_p2 = scmp.lt.s32.totalorder %s1183_s13, %s1183_s13 }
 0x11a   :  { %837 = vmatprep.subr.bf16.mxu0 %v1086_v45  ;;  %v1027_v45 = vcombine.low %v332_v37, %v336_v38 }
 0x11b   :  { %p1190_p3 = por %p1189_p2, %p1188_p1 }
 0x11d   :  { %p1191_p4 = pnand %p1190_p3, %p1184_p0 }
 0x1bc   :  { %v322_v48 = vpop.f32.mrf.mxu0 }
 0x1bd   :  { %v323_v49 = vadd.f32 %v1020_v47, %v322_v48 }
 0x1be   :  { %v1155_v51 = vpop.f32.mrf.mxu0 }
 0x1bf   :  { %v328_v55 = vmax.f32 %v323_v49, 0.0 }
 0x1c0   :  { %v325_v56 = vpop.f32.mrf.mxu0 }
 0x1c1   :  { %v1522_v57 = vpack.c.bf16 %v328_v55, %v328_v55 }
 0x1c2   :  { %v1156_v61 = vpop.f32.mrf.mxu0 }
 0x1c3   :  { %747 = vmatmul.mubr.bf16.vlgmr.msra.gmra.mxu1 %v1522_v57  ;;  %788 = vmatmul.mubr.bf16.vlgmr.msra.gmra.mxu0 %v1522_v57 }
 0x1c4   :  { %797 = vmatpush1.bf16.msra.mxu1 %v1083_v43  ;;  %838 = vmatpush1.bf16.msra.mxu0 %v1085_v44  ;;  %v1028_v43 = vcombine.high %v332_v37, %v336_v38  ;;  %v1030_v44 = vcombine.high %v333_v39, %v337_v40 }
 0x1c5   :  { %798 = vmatprep.subr.bf16.mxu1 %v1076_v58  ;;  %839 = vmatprep.subr.bf16.mxu0 %v1078_v59 }
 0x1c6   :  { %828 = vmatprep.mubr.bf16.mxu1 %v1249_v46  ;;  %869 = vmatprep.mubr.bf16.mxu0 %v1249_v46  ;;  %v1029_v46 = vcombine.low %v333_v39, %v337_v40 }
 0x1c8   :  { %799 = vmatpush1.bf16.msra.mxu1 %v1075_v1  ;;  %840 = vmatpush1.bf16.msra.mxu0 %v1077_v2 }
 0x1c9   :  { %800 = vmatprep.subr.bf16.mxu1 %v1068_v3  ;;  %841 = vmatprep.subr.bf16.mxu0 %v1070_v4 }
 0x1cc   :  { %801 = vmatpush1.bf16.msra.mxu1 %v1067_v9  ;;  %842 = vmatpush1.bf16.msra.mxu0 %v1069_v10 }
 0x1cd   :  { %802 = vmatprep.subr.bf16.mxu1 %v1060_v11  ;;  %843 = vmatprep.subr.bf16.mxu0 %v1062_v12 }
 0x1d0   :  { %803 = vmatpush1.bf16.msra.mxu1 %v1059_v17  ;;  %844 = vmatpush1.bf16.msra.mxu0 %v1061_v18 }
 0x1d1   :  { %804 = vmatprep.subr.bf16.mxu1 %v1052_v19  ;;  %845 = vmatprep.subr.bf16.mxu0 %v1054_v20 }
 0x1d4   :  { %805 = vmatpush1.bf16.msra.mxu1 %v1051_v25  ;;  %846 = vmatpush1.bf16.msra.mxu0 %v1053_v26 }
 0x1d5   :  { %806 = vmatprep.subr.bf16.mxu1 %v1044_v27  ;;  %847 = vmatprep.subr.bf16.mxu0 %v1046_v28 }
 0x1d8   :  { %807 = vmatpush1.bf16.msra.mxu1 %v1043_v33  ;;  %848 = vmatpush1.bf16.msra.mxu0 %v1045_v34 }
 0x1d9   :  { %808 = vmatprep.subr.bf16.mxu1 %v1036_v35  ;;  %849 = vmatprep.subr.bf16.mxu0 %v1038_v36 }
 0x1dc   :  { %809 = vmatpush1.bf16.msra.mxu1 %v1035_v41  ;;  %850 = vmatpush1.bf16.msra.mxu0 %v1037_v42 }
 0x1dd   :  { %810 = vmatprep.subr.bf16.mxu1 %v1028_v43  ;;  %851 = vmatprep.subr.bf16.mxu0 %v1030_v44 }
 0x1e0   :  { %811 = vmatpush1.bf16.msra.mxu1 %v1027_v45  ;;  %852 = vmatpush1.bf16.msra.mxu0 %v1029_v46 }
 0x1e3   :  { %829 = vmatmul.mubr.bf16.vlgmr.msra.gmra.mxu1 %v1522_v57  ;;  %870 = vmatmul.mubr.bf16.vlgmr.msra.gmra.mxu0 %v1522_v57 }
 0x1e4   :  { %1194 = shalt.err (!%p1191_p4)
}
 0x1e5   :  { %976 = dma.vmem_to_hbm [thread:$0]  %s974_s29, 32, %s1622_s10, [#allocation5]  }
 0x1e6   :  { %s1203_s14 = scalar_lea.vmem %s964_s4, 32  ;;  %p1208_p6 = scmp.lt.s32.totalorder %s964_s4, %s964_s4 }
 0x1e7   :  { %p1204_p5 = scmp.ne.s32.totalorder %s964_s4, %s1203_s14  ;;  %p1209_p7 = scmp.lt.s32.totalorder %s1203_s14, %s1203_s14 }
 0x1e9   :  { %p1210_p8 = por %p1209_p7, %p1208_p6 }
 0x1eb   :  { %p1211_p9 = pnand %p1210_p8, %p1204_p5 }
 0x1ed   :  { %1214 = shalt.err (!%p1211_p9)
}
 0x1ee   :  { %966 = dma.vmem_to_hbm [thread:$0]  %s964_s4, 32, %s1621_s9, [#allocation3]  }
 0x1ef   :  { %s1252_s17 = smov [#allocation6]  }
 0x1f0   :  { %s983_s18 = sshll.u32 %s1252_s17, 4  ;;  %s984_s18 = int_to_ptr.vmem [resolvable:$true] %s983_s18 }
 0x1f1   :  { %s1223_s5 = scalar_lea.vmem %s984_s18, 32  ;;  %p1228_p11 = scmp.lt.s32.totalorder %s984_s18, %s984_s18 }
 0x1f2   :  { %p1224_p10 = scmp.ne.s32.totalorder %s984_s18, %s1223_s5  ;;  %p1229_p12 = scmp.lt.s32.totalorder %s1223_s5, %s1223_s5 }
 0x1f4   :  { %p1230_p13 = por %p1229_p12, %p1228_p11 }
 0x1f6   :  { %p1231_p0 = pnand %p1230_p13, %p1224_p10 }
 0x1f8   :  { %1234 = shalt.err (!%p1231_p0)
}
 0x1f9   :  { %986 = dma.vmem_to_hbm [thread:$0]  %s984_s18, 32, %s1623_s11, [#allocation5]   ;;  %v1253_v55 = vmov 1966171168   ;;  %v913_v57 = vlaneseq }
 0x1fa   :  { %v911_v56 = vunpack.c.l.s4 %v1253_v55 }
 0x1fb   :  { %v914_v60 = vshrl.u32 %v913_v57, 7 }
 0x1fc   :  { %v912_v59 = vunpack.c.0.s8 %v911_v56 }
 0x1fe   :  { %v915_v1 = vsub.s32 %v912_v59, %v914_v60 }
 0x283   :  { %v748_v47 = vpop.f32.mrf.mxu1  ;;  %v789_v48 = vpop.f32.mrf.mxu0 }
 0x284   :  { %v878_v62 = vmax.f32 %v748_v47, 0.0  ;;  %v880_v63 = vmax.f32 %v789_v48, 0.0 }
 0x285   :  { %v750_v49 = vpop.f32.mrf.mxu1  ;;  %v791_v50 = vpop.f32.mrf.mxu0 }
 0x286   :  { %v879_v58 = vmax.f32 %v750_v49, 0.0  ;;  %v881_v61 = vmax.f32 %v791_v50, 0.0 }
 0x287   :  { %v752_v51 = vpop.f32.mrf.mxu1  ;;  %v793_v52 = vpop.f32.mrf.mxu0 }
 0x288   :  { %v1087_v0 = vpack.c.bf16 %v879_v58, %v878_v62  ;;  %v1088_v2 = vpack.c.bf16 %v881_v61, %v880_v63 }
 0x289   :  { %v753_v53 = vpop.f32.mrf.mxu1  ;;  %v794_v54 = vpop.f32.mrf.mxu0 }
 0x28a   :  { %v916_v5 = vrot.slane %v1087_v0, %v915_v1  ;;  %v923_v6 = vrot.slane %v1088_v2, %v915_v1 }
 0x28c   :  { %v938_v19 = vcombine.low %v916_v5, %v923_v6 }
 0x28e   :  { %v946_v23 = vrot.slane %v938_v19, %v915_v1 }
 0x2a3   :  { %v830_v3 = vpop.f32.mrf.mxu1  ;;  %v871_v4 = vpop.f32.mrf.mxu0 }
 0x2a4   :  { %v882_v9 = vmax.f32 %v830_v3, 0.0  ;;  %v884_v10 = vmax.f32 %v871_v4, 0.0 }
 0x2a5   :  { %v832_v7 = vpop.f32.mrf.mxu1  ;;  %v873_v8 = vpop.f32.mrf.mxu0 }
 0x2a6   :  { %v883_v11 = vmax.f32 %v832_v7, 0.0  ;;  %v885_v12 = vmax.f32 %v873_v8, 0.0 }
 0x2a7   :  { %v834_v13 = vpop.f32.mrf.mxu1  ;;  %v875_v14 = vpop.f32.mrf.mxu0 }
 0x2a8   :  { %v1089_v15 = vpack.c.bf16 %v883_v11, %v882_v9  ;;  %v1090_v16 = vpack.c.bf16 %v885_v12, %v884_v10 }
 0x2a9   :  { %v835_v17 = vpop.f32.mrf.mxu1  ;;  %v876_v18 = vpop.f32.mrf.mxu0 }
 0x2aa   :  { %v930_v20 = vrot.slane %v1089_v15, %v915_v1  ;;  %v937_v21 = vrot.slane %v1090_v16, %v915_v1 }
 0x2ac   :  { %v939_v22 = vcombine.low %v930_v20, %v937_v21 }
 0x2ae   :  { %v953_v24 = vrot.slane %v939_v22, %v915_v1 }
 0x2b0   :  { %v954_v25 = vcombine.low %v946_v23, %v953_v24 }
 0x2b2   :  { %956 = vst [vmem:[%s1624_s12] sm:$0xff] %v954_v25 }
 0x2b3   :  { %1243 = dma.done.wait [#allocation3], 32  }
 0x2b4   :  { %1244 = vsyncadd [#allocation3], 4294967264 }
 0x2b5   :  { %1245 = dma.done.wait [#allocation5], 64  }
 0x2b6   :  { %1246 = vsyncadd [#allocation5], 4294967232 }
 0x2b7   :  { %1000 = vsyncpa [#allocation3], 1 }
 0x2b8   :  { %1001 = vsyncpa [#allocation5], 1 }

// kernel: ednet_forward.14
= control target key start
LH: loop header
LB: loop body
LE: loop exit
PB: predicated region body
PF: predicated region fallthrough
CT: control target
= control target key end

     0   :  { %v979_v22 = vmov 1966171168   ;;  %v156_v24 = vlaneseq  ;;  %s1214_s1 = inlined_call_operand.vmem [shape: bf16[1024,128], index: 1, kind: input, shape index: {}]   ;;  %s1215_s0 = inlined_call_operand.vmem [shape: bf16[2,1024], index: 0, kind: input, shape index: {}]   ;;  %s1216_s2 = inlined_call_operand.vmem [shape: f32[1,128], index: 2, kind: input, shape index: {}]   ;;  %s1217_s3 = inlined_call_operand.vmem [shape: bf16[2,128], index: 3, kind: output, shape index: {}]  }
   0x1   :  { %v914_v0 = vld [vmem:[%s1214_s1 + $0x78] sm:$0xff]   ;;  %v918_v4 = vld [vmem:[%s1214_s1 + $0x70] sm:$0xff]   ;;  %v922_v8 = vld [vmem:[%s1214_s1 + $0x68] sm:$0xff]   ;;  %v154_v23 = vunpack.c.l.s4 %v979_v22 }
   0x2   :  { %v915_v1 = vld [vmem:[%s1214_s1 + $0xf8] sm:$0xff]   ;;  %825 = vmatprep.subr.bf16.mxu0 %v914_v0  ;;  %v919_v5 = vld [vmem:[%s1214_s1 + $0xf0] sm:$0xff]   ;;  %v923_v9 = vld [vmem:[%s1214_s1 + $0xe8] sm:$0xff]   ;;  %v157_v30 = vshrl.u32 %v156_v24, 7 }
   0x3   :  { %v916_v2 = vld [vmem:[%s1214_s1 + $0x38] sm:$0xff]   ;;  %847 = vmatprep.subr.bf16.mxu1 %v915_v1  ;;  %v920_v6 = vld [vmem:[%s1214_s1 + $0x30] sm:$0xff]   ;;  %v924_v10 = vld [vmem:[%s1214_s1 + $0x28] sm:$0xff]   ;;  %v155_v29 = vunpack.c.0.s8 %v154_v23 }
   0x4   :  { %v917_v3 = vld [vmem:[%s1214_s1 + $0xb8] sm:$0xff]   ;;  %826 = vmatpush3.bf16.msra.mxu0 %v916_v2  ;;  %v921_v7 = vld [vmem:[%s1214_s1 + $0xb0] sm:$0xff]   ;;  %v925_v11 = vld [vmem:[%s1214_s1 + $0xa8] sm:$0xff]  }
   0x5   :  { %848 = vmatpush3.bf16.msra.mxu1 %v917_v3  ;;  %827 = vmatprep.subr.bf16.mxu0 %v918_v4  ;;  %v926_v12 = vld [vmem:[%s1214_s1 + $0x60] sm:$0xff]   ;;  %v930_v16 = vld [vmem:[%s1214_s1 + $0x58] sm:$0xff]   ;;  %v934_v20 = vld [vmem:[%s1214_s1 + $0x50] sm:$0xff]   ;;  %v1090_v35 = vsub.s32 %v155_v29, %v157_v30 }
   0x6   :  { %849 = vmatprep.subr.bf16.mxu1 %v919_v5  ;;  %v927_v13 = vld [vmem:[%s1214_s1 + $0xe0] sm:$0xff]   ;;  %v931_v17 = vld [vmem:[%s1214_s1 + $0xd8] sm:$0xff]   ;;  %v935_v21 = vld [vmem:[%s1214_s1 + $0xd0] sm:$0xff]  }
   0x7   :  { %v928_v14 = vld [vmem:[%s1214_s1 + $0x20] sm:$0xff]   ;;  %v932_v18 = vld [vmem:[%s1214_s1 + $0x18] sm:$0xff]   ;;  %v936_v25 = vld [vmem:[%s1214_s1 + $0x10] sm:$0xff]  }
   0x8   :  { %828 = vmatpush3.bf16.msra.mxu0 %v920_v6  ;;  %v929_v15 = vld [vmem:[%s1214_s1 + $0xa0] sm:$0xff]   ;;  %v933_v19 = vld [vmem:[%s1214_s1 + $0x98] sm:$0xff]   ;;  %v937_v26 = vld [vmem:[%s1214_s1 + $0x90] sm:$0xff]  }
   0x9   :  { %850 = vmatpush3.bf16.msra.mxu1 %v921_v7  ;;  %829 = vmatprep.subr.bf16.mxu0 %v922_v8  ;;  %v938_v27 = vld [vmem:[%s1214_s1 + $0x48] sm:$0xff]   ;;  %v942_v33 = vld [vmem:[%s1214_s1 + $0x40] sm:$0xff]   ;;  %v947_v41 = vld [vmem:[%s1214_s1 + $0x178] sm:$0xff]  }
   0xa   :  { %851 = vmatprep.subr.bf16.mxu1 %v923_v9  ;;  %v939_v28 = vld [vmem:[%s1214_s1 + $0xc8] sm:$0xff]   ;;  %v943_v34 = vld [vmem:[%s1214_s1 + $0xc0] sm:$0xff]   ;;  %v948_v42 = vld [vmem:[%s1214_s1 + $0x1f8] sm:$0xff]  }
   0xb   :  { %v940_v31 = vld [vmem:[%s1214_s1 + $0x8] sm:$0xff]   ;;  %v944_v36 = vld [vmem:[%s1214_s1] sm:$0xff]   ;;  %v949_v47 = vld [vmem:[%s1214_s1 + $0x138] sm:$0xff]  }
   0xc   :  { %830 = vmatpush3.bf16.msra.mxu0 %v924_v10  ;;  %v941_v32 = vld [vmem:[%s1214_s1 + $0x88] sm:$0xff]   ;;  %v945_v37 = vld [vmem:[%s1214_s1 + $0x80] sm:$0xff]   ;;  %v951_v50 = vld [vmem:[%s1214_s1 + $0x170] sm:$0xff]  }
   0xd   :  { %852 = vmatpush3.bf16.msra.mxu1 %v925_v11  ;;  %831 = vmatprep.subr.bf16.mxu0 %v926_v12  ;;  %v15_v38 = vld [vmem:[%s1215_s0] sm:$0xff]  ;;  %v950_v52 = vld [vmem:[%s1214_s1 + $0x1b8] sm:$0xff]   ;;  %v952_v54 = vld [vmem:[%s1214_s1 + $0x1f0] sm:$0xff]  }
   0xe   :  { %853 = vmatprep.subr.bf16.mxu1 %v927_v13  ;;  %v152_v39 = vcombine.high %v15_v38, %v15_v38  ;;  %v159_v40 = vrot.slane %v15_v38, %v1090_v35  ;;  %v953_v55 = vld [vmem:[%s1214_s1 + $0x130] sm:$0xff]   ;;  %v955_v57 = vld [vmem:[%s1214_s1 + $0x168] sm:$0xff]   ;;  %v959_v61 = vld [vmem:[%s1214_s1 + $0x160] sm:$0xff]  }
   0xf   :  { %v954_v58 = vld [vmem:[%s1214_s1 + $0x1b0] sm:$0xff]   ;;  %v956_v59 = vld [vmem:[%s1214_s1 + $0x1e8] sm:$0xff]   ;;  %v960_v63 = vld [vmem:[%s1214_s1 + $0x1e0] sm:$0xff]  }
  0x10   :  { %832 = vmatpush3.bf16.msra.mxu0 %v928_v14  ;;  %v167_v43 = vcombine.high %v159_v40, %v159_v40  ;;  %v175_v44 = vrot.slane %v159_v40, %v1090_v35  ;;  %v1110_v45 = vrot.slane %v152_v39, %v1090_v35  ;;  %v957_v60 = vld [vmem:[%s1214_s1 + $0x128] sm:$0xff]   ;;  %v961_v0 = vld [vmem:[%s1214_s1 + $0x120] sm:$0xff]   ;;  %v963_v1 = vld [vmem:[%s1214_s1 + $0x158] sm:$0xff]  }
  0x11   :  { %854 = vmatpush3.bf16.msra.mxu1 %v929_v15  ;;  %833 = vmatprep.subr.bf16.mxu0 %v930_v16  ;;  %v958_v62 = vld [vmem:[%s1214_s1 + $0x1a8] sm:$0xff]   ;;  %v962_v2 = vld [vmem:[%s1214_s1 + $0x1a0] sm:$0xff]   ;;  %v964_v3 = vld [vmem:[%s1214_s1 + $0x1d8] sm:$0xff]  }
  0x12   :  { %855 = vmatprep.subr.bf16.mxu1 %v931_v17  ;;  %v189_v46 = vrot.slane %v167_v43, %v1090_v35  ;;  %v168_v48 = vcombine.high %v1110_v45, %v1110_v45  ;;  %v197_v49 = vcombine.high %v175_v44, %v175_v44  ;;  %v965_v4 = vld [vmem:[%s1214_s1 + $0x118] sm:$0xff]   ;;  %v967_v5 = vld [vmem:[%s1214_s1 + $0x150] sm:$0xff]   ;;  %v971_v9 = vld [vmem:[%s1214_s1 + $0x148] sm:$0xff]   ;;  %v182_v17 = vrot.slane %v1110_v45, %v1090_v35 }
  0x13   :  { %v966_v6 = vld [vmem:[%s1214_s1 + $0x198] sm:$0xff]   ;;  %v968_v7 = vld [vmem:[%s1214_s1 + $0x1d0] sm:$0xff]   ;;  %v972_v11 = vld [vmem:[%s1214_s1 + $0x1c8] sm:$0xff]  }
  0x14   :  { %834 = vmatpush3.bf16.msra.mxu0 %v932_v18  ;;  %625 = vmatprep.mubr.bf16.mxu0 %v189_v46  ;;  %v199_v51 = vcombine.high %v189_v46, %v189_v46  ;;  %v196_v53 = vrot.slane %v168_v48, %v1090_v35  ;;  %v969_v8 = vld [vmem:[%s1214_s1 + $0x110] sm:$0xff]   ;;  %v973_v12 = vld [vmem:[%s1214_s1 + $0x108] sm:$0xff]   ;;  %v975_v13 = vld [vmem:[%s1214_s1 + $0x140] sm:$0xff]  }
  0x15   :  { %856 = vmatpush3.bf16.msra.mxu1 %v933_v19  ;;  %835 = vmatprep.subr.bf16.mxu0 %v934_v20  ;;  %v970_v10 = vld [vmem:[%s1214_s1 + $0x190] sm:$0xff]   ;;  %v974_v14 = vld [vmem:[%s1214_s1 + $0x188] sm:$0xff]   ;;  %v976_v15 = vld [vmem:[%s1214_s1 + $0x1c0] sm:$0xff]   ;;  %v198_v19 = vcombine.high %v182_v17, %v182_v17 }
  0x16   :  { %857 = vmatprep.subr.bf16.mxu1 %v935_v21  ;;  %665 = vmatprep.mubr.bf16.mxu1 %v199_v51  ;;  %v200_v56 = vcombine.high %v196_v53, %v196_v53  ;;  %v977_v16 = vld [vmem:[%s1214_s1 + $0x100] sm:$0xff]  }
  0x17   :  { %v978_v18 = vld [vmem:[%s1214_s1 + $0x180] sm:$0xff]  }
  0x18   :  { %836 = vmatpush3.bf16.msra.mxu0 %v936_v25  ;;  %v760_v29 = vld [vmem:[%s1216_s2] ss:$0 sm:$0xff] }
  0x19   :  { %858 = vmatpush3.bf16.msra.mxu1 %v937_v26  ;;  %837 = vmatprep.subr.bf16.mxu0 %v938_v27 }
  0x1a   :  { %859 = vmatprep.subr.bf16.mxu1 %v939_v28 }
  0x1c   :  { %838 = vmatpush3.bf16.msra.mxu0 %v940_v31 }
  0x1d   :  { %860 = vmatpush3.bf16.msra.mxu1 %v941_v32  ;;  %839 = vmatprep.subr.bf16.mxu0 %v942_v33 }
  0x1e   :  { %861 = vmatprep.subr.bf16.mxu1 %v943_v34 }
  0x20   :  { %840 = vmatpush3.bf16.msra.mxu0 %v944_v36 }
  0x21   :  { %862 = vmatpush3.bf16.msra.mxu1 %v945_v37  ;;  %869 = vmatprep.subr.bf16.mxu0 %v947_v41 }
  0x22   :  { %891 = vmatprep.subr.bf16.mxu1 %v948_v42 }
  0x23   :  { %626 = vmatmul.mubr.bf16.vlgmr.msra.gmra.mxu0 %v175_v44 }
  0x24   :  { %870 = vmatpush3.bf16.msra.mxu0 %v949_v47  ;;  %666 = vmatmul.mubr.bf16.vlgmr.msra.gmra.mxu1 %v197_v49 }
  0x25   :  { %871 = vmatprep.subr.bf16.mxu0 %v951_v50  ;;  %892 = vmatpush3.bf16.msra.mxu1 %v950_v52 }
  0x26   :  { %705 = vmatprep.mubr.bf16.mxu0 %v196_v53  ;;  %893 = vmatprep.subr.bf16.mxu1 %v952_v54 }
  0x27   :  { %745 = vmatprep.mubr.bf16.mxu1 %v200_v56 }
  0x28   :  { %872 = vmatpush3.bf16.msra.mxu0 %v953_v55 }
  0x29   :  { %873 = vmatprep.subr.bf16.mxu0 %v955_v57  ;;  %894 = vmatpush3.bf16.msra.mxu1 %v954_v58 }
  0x2a   :  { %895 = vmatprep.subr.bf16.mxu1 %v956_v59 }
  0x2c   :  { %874 = vmatpush3.bf16.msra.mxu0 %v957_v60 }
  0x2d   :  { %875 = vmatprep.subr.bf16.mxu0 %v959_v61  ;;  %896 = vmatpush3.bf16.msra.mxu1 %v958_v62 }
  0x2e   :  { %897 = vmatprep.subr.bf16.mxu1 %v960_v63 }
  0x30   :  { %876 = vmatpush3.bf16.msra.mxu0 %v961_v0 }
  0x31   :  { %877 = vmatprep.subr.bf16.mxu0 %v963_v1  ;;  %898 = vmatpush3.bf16.msra.mxu1 %v962_v2 }
  0x32   :  { %899 = vmatprep.subr.bf16.mxu1 %v964_v3 }
  0x34   :  { %878 = vmatpush3.bf16.msra.mxu0 %v965_v4 }
  0x35   :  { %879 = vmatprep.subr.bf16.mxu0 %v967_v5  ;;  %900 = vmatpush3.bf16.msra.mxu1 %v966_v6 }
  0x36   :  { %901 = vmatprep.subr.bf16.mxu1 %v968_v7 }
  0x38   :  { %880 = vmatpush3.bf16.msra.mxu0 %v969_v8 }
  0x39   :  { %881 = vmatprep.subr.bf16.mxu0 %v971_v9  ;;  %902 = vmatpush3.bf16.msra.mxu1 %v970_v10 }
  0x3a   :  { %903 = vmatprep.subr.bf16.mxu1 %v972_v11 }
  0x3c   :  { %882 = vmatpush3.bf16.msra.mxu0 %v973_v12 }
  0x3d   :  { %883 = vmatprep.subr.bf16.mxu0 %v975_v13  ;;  %904 = vmatpush3.bf16.msra.mxu1 %v974_v14 }
  0x3e   :  { %905 = vmatprep.subr.bf16.mxu1 %v976_v15 }
  0x40   :  { %884 = vmatpush3.bf16.msra.mxu0 %v977_v16 }
  0x41   :  { %906 = vmatpush3.bf16.msra.mxu1 %v978_v18 }
  0x43   :  { %706 = vmatmul.mubr.bf16.vlgmr.msra.gmra.mxu0 %v182_v17 }
  0x44   :  { %746 = vmatmul.mubr.bf16.vlgmr.msra.gmra.mxu1 %v198_v19 }
  0xe3   :  { %v841_v20 = vpop.f32.mrf.mxu0 }
  0xe4   :  { %v863_v21 = vpop.f32.mrf.mxu1 }
  0xe5   :  { %v842_v22 = vpop.f32.mrf.mxu0 }
  0xe6   :  { %v864_v23 = vpop.f32.mrf.mxu1  ;;  %v843_v28 = vadd.f32 %v842_v22, %v841_v20 }
  0xe7   :  { %v844_v24 = vpop.f32.mrf.mxu0  ;;  %v865_v31 = vadd.f32 %v864_v23, %v863_v21 }
  0xe8   :  { %v866_v25 = vpop.f32.mrf.mxu1  ;;  %v628_v30 = vadd.f32 %v843_v28, %v760_v29 }
  0xe9   :  { %v845_v26 = vpop.f32.mrf.mxu0 }
  0xea   :  { %v867_v27 = vpop.f32.mrf.mxu1  ;;  %v668_v35 = vadd.f32 %v865_v31, %v628_v30 }
 0x103   :  { %v885_v32 = vpop.f32.mrf.mxu0 }
 0x104   :  { %v907_v33 = vpop.f32.mrf.mxu1 }
 0x105   :  { %v886_v34 = vpop.f32.mrf.mxu0 }
 0x106   :  { %v887_v36 = vadd.f32 %v886_v34, %v885_v32  ;;  %v908_v37 = vpop.f32.mrf.mxu1 }
 0x107   :  { %v888_v38 = vpop.f32.mrf.mxu0  ;;  %v909_v40 = vadd.f32 %v908_v37, %v907_v33 }
 0x108   :  { %v708_v39 = vadd.f32 %v887_v36, %v668_v35  ;;  %v910_v41 = vpop.f32.mrf.mxu1 }
 0x109   :  { %v889_v42 = vpop.f32.mrf.mxu0 }
 0x10a   :  { %v748_v43 = vadd.f32 %v909_v40, %v708_v39  ;;  %v911_v44 = vpop.f32.mrf.mxu1 }
 0x10c   :  { %v753_v45 = vmax.f32 %v748_v43, 0.0 }
 0x10e   :  { %v754_v46 = vpack.c.bf16 %v753_v45, %v753_v45 }
 0x110   :  { %755 = vst [vmem:[%s1217_s3] sm:$0x1] %v754_v46 }

// kernel: ednet_forward.16
= control target key start
LH: loop header
LB: loop body
LE: loop exit
PB: predicated region body
PF: predicated region fallthrough
CT: control target
= control target key end

     0   :  { %vm362_vm0 = vcmask 523264   ;;  %s894_s1 = inlined_call_operand.vmem [shape: bf16[576,128], index: 1, kind: input, shape index: {}]   ;;  %s895_s0 = inlined_call_operand.vmem [shape: bf16[32,576], index: 0, kind: input, shape index: {}]   ;;  %s896_s2 = inlined_call_operand.vmem [shape: bf16[32,128], index: 2, kind: output, shape index: {}]  }
   0x1   :  { %v685_v0 = vld [vmem:[%s894_s1 + $0x78] sm:$0xff]   ;;  %v689_v4 = vld [vmem:[%s894_s1 + $0x70] sm:$0xff]   ;;  %v693_v8 = vld [vmem:[%s894_s1 + $0x68] sm:$0xff]  }
   0x2   :  { %v686_v1 = vld [vmem:[%s894_s1 + $0xf8] sm:$0xff]   ;;  %611 = vmatprep.subr.bf16.mxu0 %v685_v0  ;;  %v690_v5 = vld [vmem:[%s894_s1 + $0xf0] sm:$0xff]   ;;  %v694_v9 = vld [vmem:[%s894_s1 + $0xe8] sm:$0xff]  }
   0x3   :  { %v687_v2 = vld [vmem:[%s894_s1 + $0x38] sm:$0xff]   ;;  %639 = vmatprep.subr.bf16.mxu1 %v686_v1  ;;  %v691_v6 = vld [vmem:[%s894_s1 + $0x30] sm:$0xff]   ;;  %v695_v10 = vld [vmem:[%s894_s1 + $0x28] sm:$0xff]  }
   0x4   :  { %v688_v3 = vld [vmem:[%s894_s1 + $0xb8] sm:$0xff]   ;;  %612 = vmatpush3.bf16.msra.mxu0 %v687_v2  ;;  %v692_v7 = vld [vmem:[%s894_s1 + $0xb0] sm:$0xff]   ;;  %v696_v11 = vld [vmem:[%s894_s1 + $0xa8] sm:$0xff]  }
   0x5   :  { %640 = vmatpush3.bf16.msra.mxu1 %v688_v3  ;;  %613 = vmatprep.subr.bf16.mxu0 %v689_v4  ;;  %v697_v12 = vld [vmem:[%s894_s1 + $0x60] sm:$0xff]   ;;  %v701_v16 = vld [vmem:[%s894_s1 + $0x58] sm:$0xff]   ;;  %v705_v20 = vld [vmem:[%s894_s1 + $0x50] sm:$0xff]  }
   0x6   :  { %641 = vmatprep.subr.bf16.mxu1 %v690_v5  ;;  %v698_v13 = vld [vmem:[%s894_s1 + $0xe0] sm:$0xff]   ;;  %v702_v17 = vld [vmem:[%s894_s1 + $0xd8] sm:$0xff]   ;;  %v706_v21 = vld [vmem:[%s894_s1 + $0xd0] sm:$0xff]  }
   0x7   :  { %v699_v14 = vld [vmem:[%s894_s1 + $0x20] sm:$0xff]   ;;  %v703_v18 = vld [vmem:[%s894_s1 + $0x18] sm:$0xff]   ;;  %v707_v22 = vld [vmem:[%s894_s1 + $0x10] sm:$0xff]  }
   0x8   :  { %614 = vmatpush3.bf16.msra.mxu0 %v691_v6  ;;  %v700_v15 = vld [vmem:[%s894_s1 + $0xa0] sm:$0xff]   ;;  %v704_v19 = vld [vmem:[%s894_s1 + $0x98] sm:$0xff]   ;;  %v708_v23 = vld [vmem:[%s894_s1 + $0x90] sm:$0xff]  }
   0x9   :  { %642 = vmatpush3.bf16.msra.mxu1 %v692_v7  ;;  %615 = vmatprep.subr.bf16.mxu0 %v693_v8  ;;  %v709_v24 = vld [vmem:[%s894_s1 + $0x48] sm:$0xff]   ;;  %v713_v28 = vld [vmem:[%s894_s1 + $0x40] sm:$0xff]   ;;  %v723_v36 = vld [vmem:[%s894_s1 + $0x118] sm:$0xff]  }
   0xa   :  { %643 = vmatprep.subr.bf16.mxu1 %v694_v9  ;;  %v710_v25 = vld [vmem:[%s894_s1 + $0xc8] sm:$0xff]   ;;  %v714_v29 = vld [vmem:[%s894_s1 + $0xc0] sm:$0xff]   ;;  %v724_v37 = vld [vmem:[%s894_s1 + $0x110] sm:$0xff]  }
   0xb   :  { %v711_v26 = vld [vmem:[%s894_s1 + $0x8] sm:$0xff]   ;;  %v715_v30 = vld [vmem:[%s894_s1] sm:$0xff]  }
   0xc   :  { %616 = vmatpush3.bf16.msra.mxu0 %v695_v10  ;;  %v712_v27 = vld [vmem:[%s894_s1 + $0x88] sm:$0xff]   ;;  %v716_v31 = vld [vmem:[%s894_s1 + $0x80] sm:$0xff]  }
   0xd   :  { %644 = vmatpush3.bf16.msra.mxu1 %v696_v11  ;;  %617 = vmatprep.subr.bf16.mxu0 %v697_v12  ;;  %v717_v32 = vld [vmem:[%s895_s0] ss:$20 sps:$4 sm:$0xff]   ;;  %v719_v33 = vld [vmem:[%s895_s0 + $0x4] ss:$20 sps:$4 sm:$0xff]   ;;  %v720_v34 = vld [vmem:[%s895_s0 + $0x8] ss:$20 sps:$4 sm:$0xff]  }
   0xe   :  { %645 = vmatprep.subr.bf16.mxu1 %v698_v13  ;;  %v722_v35 = vld [vmem:[%s895_s0 + $0xc] ss:$20 sps:$4 sm:$0xff]   ;;  %401 = vmatprep.mubr.bf16.mxu0 %v719_v33  ;;  %v727_v39 = vld [vmem:[%s895_s0 + $0x34] ss:$20 sps:$4 sm:$0xff]   ;;  %v730_v42 = vld [vmem:[%s895_s0 + $0x30] ss:$20 sps:$4 sm:$0xff]  }
   0xf   :  { %450 = vmatprep.mubr.bf16.mxu1 %v722_v35  ;;  %v725_v38 = vld [vmem:[%s895_s0 + $0x2c] ss:$20 sps:$4 sm:$0xff]   ;;  %v729_v40 = vld [vmem:[%s895_s0 + $0x28] ss:$20 sps:$4 sm:$0xff]   ;;  %v733_v43 = vld [vmem:[%s895_s0 + $0x10] ss:$20 sps:$4 sm:$0xff]  }
  0x10   :  { %618 = vmatpush3.bf16.msra.mxu0 %v699_v14  ;;  %v731_v41 = vld [vmem:[%s894_s1 + $0x108] sm:$0xff]   ;;  %v732_v44 = vld [vmem:[%s894_s1 + $0x100] sm:$0xff]  }
  0x11   :  { %646 = vmatpush3.bf16.msra.mxu1 %v700_v15  ;;  %619 = vmatprep.subr.bf16.mxu0 %v701_v16  ;;  %v734_v45 = vld [vmem:[%s895_s0 + $0x38] ss:$20 sps:$4 sm:$0xff]  }
  0x12   :  { %647 = vmatprep.subr.bf16.mxu1 %v702_v17 }
  0x14   :  { %620 = vmatpush3.bf16.msra.mxu0 %v703_v18 }
  0x15   :  { %648 = vmatpush3.bf16.msra.mxu1 %v704_v19  ;;  %621 = vmatprep.subr.bf16.mxu0 %v705_v20 }
  0x16   :  { %649 = vmatprep.subr.bf16.mxu1 %v706_v21 }
  0x18   :  { %622 = vmatpush3.bf16.msra.mxu0 %v707_v22 }
  0x19   :  { %650 = vmatpush3.bf16.msra.mxu1 %v708_v23  ;;  %623 = vmatprep.subr.bf16.mxu0 %v709_v24 }
  0x1a   :  { %651 = vmatprep.subr.bf16.mxu1 %v710_v25 }
  0x1c   :  { %624 = vmatpush3.bf16.msra.mxu0 %v711_v26 }
  0x1d   :  { %652 = vmatpush3.bf16.msra.mxu1 %v712_v27  ;;  %625 = vmatprep.subr.bf16.mxu0 %v713_v28 }
  0x1e   :  { %653 = vmatprep.subr.bf16.mxu1 %v714_v29 }
  0x20   :  { %626 = vmatpush3.bf16.msra.mxu0 %v715_v30 }
  0x21   :  { %654 = vmatpush3.bf16.msra.mxu1 %v716_v31  ;;  %673 = vmatprep.subr.bf16.mxu0 %v723_v36 }
  0x23   :  { %402 = vmatmul.mubr.bf16.vlgmr.msra.gmra.mxu0 %v717_v32 }
  0x24   :  { %451 = vmatmul.mubr.bf16.vlgmr.msra.gmra.mxu1 %v720_v34  ;;  %674 = vmatpush3.bf16.msra.mxu0 %v723_v36 }
  0x25   :  { %675 = vmatprep.subr.bf16.mxu0 %v724_v37  ;;  %409 = vmatprep.mubr.bf16.mxu0 %v725_v38 }
  0x26   :  { %458 = vmatprep.mubr.bf16.mxu1 %v727_v39 }
  0x28   :  { %676 = vmatpush3.bf16.msra.mxu0 %v724_v37 }
  0x29   :  { %677 = vmatprep.subr.bf16.mxu0 %v731_v41 }
  0x2b   :  { %410 = vmatmul.mubr.bf16.gmra.mxu0 %v729_v40 }
  0x2c   :  { %459 = vmatmul.mubr.bf16.gmra.mxu1 %v730_v42  ;;  %681 = vmatprep.mubr.msk.bf16.mxu0 %vm362_vm0, %v733_v43 }
  0x2d   :  { %678 = vmatpush3.bf16.msra.mxu0 %v731_v41 }
  0x2e   :  { %679 = vmatprep.subr.bf16.mxu0 %v732_v44 }
  0x31   :  { %680 = vmatpush3.bf16.msra.mxu0 %v732_v44 }
  0x34   :  { %682 = vmatmul.mubr.msk.bf16.vlgmr.msra.gmra.mxu0 %vm362_vm0, %v734_v45 }
  0xe3   :  { %v627_v46 = vpop.f32.mrf.mxu0 }
  0xe4   :  { %v655_v47 = vpop.f32.mrf.mxu1 }
  0xe5   :  { %v628_v48 = vpop.f32.mrf.mxu0 }
  0xe6   :  { %v656_v49 = vpop.f32.mrf.mxu1  ;;  %v629_v0 = vadd.f32 %v628_v48, %v627_v46 }
  0xe7   :  { %v630_v50 = vpop.f32.mrf.mxu0  ;;  %v657_v1 = vadd.f32 %v656_v49, %v655_v47 }
  0xe8   :  { %v658_v51 = vpop.f32.mrf.mxu1 }
  0xe9   :  { %v631_v52 = vpop.f32.mrf.mxu0  ;;  %v453_v10 = vadd.f32 %v657_v1, %v629_v0 }
  0xea   :  { %v659_v53 = vpop.f32.mrf.mxu1  ;;  %v632_v5 = vadd.f32 %v631_v52, %v630_v50 }
  0xeb   :  { %v633_v54 = vpop.f32.mrf.mxu0  ;;  %v660_v6 = vadd.f32 %v659_v53, %v658_v51 }
  0xec   :  { %v661_v55 = vpop.f32.mrf.mxu1 }
  0xed   :  { %v634_v56 = vpop.f32.mrf.mxu0  ;;  %v456_v15 = vadd.f32 %v660_v6, %v632_v5 }
  0xee   :  { %v662_v57 = vpop.f32.mrf.mxu1  ;;  %v635_v60 = vadd.f32 %v634_v56, %v633_v54 }
  0xef   :  { %v636_v58 = vpop.f32.mrf.mxu0  ;;  %v663_v61 = vadd.f32 %v662_v57, %v661_v55 }
  0xf0   :  { %v664_v59 = vpop.f32.mrf.mxu1 }
  0xf1   :  { %v637_v62 = vpop.f32.mrf.mxu0  ;;  %v461_v7 = vadd.f32 %v663_v61, %v635_v60 }
  0xf2   :  { %v665_v63 = vpop.f32.mrf.mxu1  ;;  %v638_v2 = vadd.f32 %v637_v62, %v636_v58 }
  0xf3   :  { %v666_v3 = vadd.f32 %v665_v63, %v664_v59 }
  0xf4   :  { %v683_v4 = vpop.f32.mrf.mxu0 }
  0xf5   :  { %v510_v9 = vadd.f32 %v683_v4, %v461_v7  ;;  %v464_v11 = vadd.f32 %v666_v3, %v638_v2 }
  0xf6   :  { %v501_v8 = vpop.f32.mrf.mxu0 }
  0xf7   :  { %v502_v13 = vadd.f32 %v501_v8, %v453_v10  ;;  %v518_v17 = vmax.f32 %v510_v9, 0.0 }
  0xf8   :  { %v684_v12 = vpop.f32.mrf.mxu0 }
  0xf9   :  { %v513_v14 = vadd.f32 %v684_v12, %v464_v11  ;;  %v516_v20 = vmax.f32 %v502_v13, 0.0 }
  0xfa   :  { %v504_v16 = vpop.f32.mrf.mxu0 }
  0xfb   :  { %v519_v18 = vmax.f32 %v513_v14, 0.0  ;;  %v505_v19 = vadd.f32 %v504_v16, %v456_v15 }
  0xfd   :  { %v608_v21 = vpack.c.bf16 %v519_v18, %v518_v17  ;;  %v517_v22 = vmax.f32 %v505_v19, 0.0 }
  0xff   :  { %610 = vst [vmem:[%s896_s2 + $0x8] sm:$0xff] %v608_v21   ;;  %v603_v23 = vpack.c.bf16 %v517_v22, %v516_v20 }
 0x101   :  { %604 = vst [vmem:[%s896_s2] sm:$0xff] %v603_v23  }

// kernel: ednet_forward.17
= control target key start
LH: loop header
LB: loop body
LE: loop exit
PB: predicated region body
PF: predicated region fallthrough
CT: control target
= control target key end

     0   :  { %vm308_vm0 = vcmask 261120   ;;  %vm607_vm1 = vcmask 519168   ;;  %s1107_s1 = inlined_call_operand.vmem [shape: bf16[288,64], index: 1, kind: input, shape index: {}]   ;;  %s1108_s0 = inlined_call_operand.vmem [shape: bf16[128,288], index: 0, kind: input, shape index: {}]   ;;  %s1109_s2 = inlined_call_operand.vmem [shape: bf16[128,64], index: 2, kind: output, shape index: {}]  }
   0x1   :  { %v820_v0 = vld [vmem:[%s1107_s1 + $0x78] sm:$0xff]   ;;  %v822_v2 = vld [vmem:[%s1107_s1 + $0x70] sm:$0xff]   ;;  %v824_v4 = vld [vmem:[%s1107_s1 + $0x68] sm:$0xff]  }
   0x2   :  { %v821_v1 = vld [vmem:[%s1107_s1 + $0x38] sm:$0xff]   ;;  %710 = vmatprep.subr.bf16.mxu0 %v820_v0  ;;  %804 = vmatprep.subr.bf16.mxu1 %v820_v0  ;;  %v823_v3 = vld [vmem:[%s1107_s1 + $0x30] sm:$0xff]   ;;  %v825_v5 = vld [vmem:[%s1107_s1 + $0x28] sm:$0xff]  }
   0x3   :  { %711 = vmatpush3.bf16.msra.mxu0 %v821_v1  ;;  %812 = vmatpush3.bf16.msra.mxu1 %v821_v1  ;;  %v826_v6 = vld [vmem:[%s1107_s1 + $0x60] sm:$0xff]   ;;  %v828_v8 = vld [vmem:[%s1107_s1 + $0x58] sm:$0xff]   ;;  %v830_v10 = vld [vmem:[%s1107_s1 + $0x50] sm:$0xff]  }
   0x4   :  { %712 = vmatprep.subr.bf16.mxu0 %v822_v2  ;;  %805 = vmatprep.subr.bf16.mxu1 %v822_v2  ;;  %v827_v7 = vld [vmem:[%s1107_s1 + $0x20] sm:$0xff]   ;;  %v829_v9 = vld [vmem:[%s1107_s1 + $0x18] sm:$0xff]   ;;  %v831_v13 = vld [vmem:[%s1107_s1 + $0x10] sm:$0xff]  }
   0x5   :  { %v838_v11 = vld [vmem:[%s1108_s0 + $0x4] ss:$12 sps:$4 sm:$0xff]   ;;  %v841_v12 = vld [vmem:[%s1108_s0 + $0x94] ss:$12 sps:$4 sm:$0xff]   ;;  %v832_v14 = vld [vmem:[%s1107_s1 + $0x48] sm:$0xff]  }
   0x6   :  { %365 = vmatprep.mubr.bf16.mxu0 %v838_v11  ;;  %413 = vmatprep.mubr.bf16.mxu1 %v841_v12  ;;  %v833_v15 = vld [vmem:[%s1107_s1 + $0x8] sm:$0xff]   ;;  %v834_v16 = vld [vmem:[%s1107_s1 + $0x40] sm:$0xff]   ;;  %v839_v20 = vld [vmem:[%s1108_s0 + $0x90] ss:$12 sps:$4 sm:$0xff]  }
   0x7   :  { %713 = vmatpush3.bf16.msra.mxu0 %v823_v3  ;;  %813 = vmatpush3.bf16.msra.mxu1 %v823_v3  ;;  %v835_v17 = vld [vmem:[%s1107_s1] sm:$0xff]   ;;  %v842_v19 = vld [vmem:[%s1107_s1 + $0x88] sm:$0xff]   ;;  %v853_v28 = vld [vmem:[%s1108_s0 + $0x30] ss:$12 sps:$4 sm:$0xff]  }
   0x8   :  { %714 = vmatprep.subr.bf16.mxu0 %v824_v4  ;;  %806 = vmatprep.subr.bf16.mxu1 %v824_v4  ;;  %v836_v18 = vld [vmem:[%s1108_s0] ss:$12 sps:$4 sm:$0xff]   ;;  %v843_v21 = vld [vmem:[%s1108_s0 + $0x1c] ss:$12 sps:$4 sm:$0xff]   ;;  %v847_v24 = vld [vmem:[%s1108_s0 + $0x18] ss:$12 sps:$4 sm:$0xff]  }
   0x9   :  { %v845_v22 = vld [vmem:[%s1108_s0 + $0xac] ss:$12 sps:$4 sm:$0xff]   ;;  %v849_v23 = vld [vmem:[%s1107_s1 + $0x80] sm:$0xff]   ;;  %v848_v25 = vld [vmem:[%s1108_s0 + $0xa8] ss:$12 sps:$4 sm:$0xff]  }
   0xa   :  { %v850_v26 = vld [vmem:[%s1108_s0 + $0x34] ss:$12 sps:$4 sm:$0xff]   ;;  %v855_v30 = vld [vmem:[%s1108_s0 + $0x4c] ss:$12 sps:$4 sm:$0xff]   ;;  %v859_v33 = vld [vmem:[%s1108_s0 + $0x50] ss:$12 sps:$4 sm:$0xff]  }
   0xb   :  { %715 = vmatpush3.bf16.msra.mxu0 %v825_v5  ;;  %814 = vmatpush3.bf16.msra.mxu1 %v825_v5  ;;  %v852_v27 = vld [vmem:[%s1108_s0 + $0x8] ss:$12 sps:$4 sm:$0xff]   ;;  %v854_v29 = vld [vmem:[%s1108_s0 + $0x20] ss:$12 sps:$4 sm:$0xff]   ;;  %v857_v31 = vld [vmem:[%s1108_s0 + $0x38] ss:$12 sps:$4 sm:$0xff]  }
   0xc   :  { %716 = vmatprep.subr.bf16.mxu0 %v826_v6  ;;  %807 = vmatprep.subr.bf16.mxu1 %v826_v6  ;;  %v858_v32 = vld [vmem:[%s1108_s0 + $0x48] ss:$12 sps:$4 sm:$0xff]   ;;  %v860_v34 = vld [vmem:[%s1108_s0 + $0x64] ss:$12 sps:$4 sm:$0xff]   ;;  %v863_v36 = vld [vmem:[%s1108_s0 + $0x60] ss:$12 sps:$4 sm:$0xff]  }
   0xd   :  { %v862_v35 = vld [vmem:[%s1108_s0 + $0x68] ss:$12 sps:$4 sm:$0xff]   ;;  %v864_v37 = vld [vmem:[%s1108_s0 + $0x80] ss:$12 sps:$4 sm:$0xff]   ;;  %v867_v39 = vld [vmem:[%s1108_s0 + $0x98] ss:$12 sps:$4 sm:$0xff]  }
   0xe   :  { %v865_v38 = vld [vmem:[%s1108_s0 + $0x7c] ss:$12 sps:$4 sm:$0xff]   ;;  %v868_v40 = vld [vmem:[%s1108_s0 + $0x78] ss:$12 sps:$4 sm:$0xff]  }
   0xf   :  { %717 = vmatpush3.bf16.msra.mxu0 %v827_v7  ;;  %815 = vmatpush3.bf16.msra.mxu1 %v827_v7  ;;  %v869_v41 = vld [vmem:[%s1108_s0 + $0xb0] ss:$12 sps:$4 sm:$0xff]  }
  0x10   :  { %718 = vmatprep.subr.bf16.mxu0 %v828_v8  ;;  %808 = vmatprep.subr.bf16.mxu1 %v828_v8 }
  0x13   :  { %719 = vmatpush3.bf16.msra.mxu0 %v829_v9  ;;  %816 = vmatpush3.bf16.msra.mxu1 %v829_v9 }
  0x14   :  { %720 = vmatprep.subr.bf16.mxu0 %v830_v10  ;;  %809 = vmatprep.subr.bf16.mxu1 %v830_v10 }
  0x17   :  { %721 = vmatpush3.bf16.msra.mxu0 %v831_v13  ;;  %817 = vmatpush3.bf16.msra.mxu1 %v831_v13 }
  0x18   :  { %722 = vmatprep.subr.bf16.mxu0 %v832_v14  ;;  %810 = vmatprep.subr.bf16.mxu1 %v832_v14 }
  0x1b   :  { %723 = vmatpush3.bf16.msra.mxu0 %v833_v15  ;;  %818 = vmatpush3.bf16.msra.mxu1 %v833_v15 }
  0x1c   :  { %724 = vmatprep.subr.bf16.mxu0 %v834_v16  ;;  %811 = vmatprep.subr.bf16.mxu1 %v834_v16 }
  0x1f   :  { %725 = vmatpush3.bf16.msra.mxu0 %v835_v17  ;;  %819 = vmatpush3.bf16.msra.mxu1 %v835_v17 }
  0x20   :  { %784 = vmatprep.subr.bf16.mxu1 %v842_v19 }
  0x22   :  { %366 = vmatmul.mubr.bf16.vlgmr.msra.gmra.mxu0 %v836_v18  ;;  %414 = vmatmul.mubr.bf16.vlgmr.msra.gmra.mxu1 %v839_v20 }
  0x23   :  { %785 = vmatpush3.bf16.msra.mxu1 %v842_v19  ;;  %373 = vmatprep.mubr.bf16.mxu0 %v843_v21 }
  0x24   :  { %421 = vmatprep.mubr.bf16.mxu1 %v845_v22  ;;  %786 = vmatprep.subr.bf16.mxu1 %v849_v23 }
  0x27   :  { %787 = vmatpush3.bf16.msra.mxu1 %v849_v23 }
  0x2a   :  { %374 = vmatmul.mubr.bf16.gmra.mxu0 %v847_v24  ;;  %422 = vmatmul.mubr.bf16.gmra.mxu1 %v848_v25 }
  0x2b   :  { %381 = vmatprep.mubr.bf16.mxu0 %v850_v26  ;;  %788 = vmatprep.mubr.msk.bf16.mxu1 %vm308_vm0, %v852_v27 }
  0x32   :  { %382 = vmatmul.mubr.bf16.gmra.mxu0 %v853_v28  ;;  %789 = vmatmul.mubr.msk.bf16.vlgmr.msra.gmra.mxu1 %vm308_vm0, %v854_v29 }
  0x33   :  { %389 = vmatprep.mubr.bf16.mxu0 %v855_v30  ;;  %792 = vmatprep.mubr.msk.bf16.mxu1 %vm308_vm0, %v857_v31 }
  0x3a   :  { %390 = vmatmul.mubr.bf16.gmra.mxu0 %v858_v32  ;;  %793 = vmatmul.mubr.msk.bf16.gmra.mxu1 %vm308_vm0, %v859_v33 }
  0x3b   :  { %397 = vmatprep.mubr.bf16.mxu0 %v860_v34  ;;  %796 = vmatprep.mubr.msk.bf16.mxu1 %vm308_vm0, %v862_v35 }
  0x42   :  { %398 = vmatmul.mubr.bf16.gmra.mxu0 %v863_v36  ;;  %797 = vmatmul.mubr.msk.bf16.gmra.mxu1 %vm308_vm0, %v864_v37 }
  0x43   :  { %405 = vmatprep.mubr.bf16.mxu0 %v865_v38  ;;  %800 = vmatprep.mubr.msk.bf16.mxu1 %vm308_vm0, %v867_v39 }
  0x4a   :  { %406 = vmatmul.mubr.bf16.gmra.mxu0 %v868_v40  ;;  %801 = vmatmul.mubr.msk.bf16.gmra.mxu1 %vm308_vm0, %v869_v41 }
  0xe2   :  { %v726_v42 = vpop.f32.mrf.mxu0  ;;  %v1019_v43 = vpop.f32.mrf.mxu1 }
  0xe4   :  { %v727_v44 = vpop.f32.mrf.mxu0  ;;  %v1021_v45 = vpop.f32.mrf.mxu1 }
  0xe5   :  { %v728_v61 = vadd.f32 %v727_v44, %v726_v42 }
  0xe6   :  { %v729_v46 = vpop.f32.mrf.mxu0  ;;  %v1023_v47 = vpop.f32.mrf.mxu1 }
  0xe8   :  { %v730_v48 = vpop.f32.mrf.mxu0  ;;  %v1025_v49 = vpop.f32.mrf.mxu1 }
  0xe9   :  { %v731_v6 = vadd.f32 %v730_v48, %v729_v46 }
  0xea   :  { %v732_v50 = vpop.f32.mrf.mxu0  ;;  %v1027_v51 = vpop.f32.mrf.mxu1 }
  0xec   :  { %v733_v52 = vpop.f32.mrf.mxu0  ;;  %v1029_v53 = vpop.f32.mrf.mxu1 }
  0xed   :  { %v734_v58 = vadd.f32 %v733_v52, %v732_v50 }
  0xee   :  { %v735_v54 = vpop.f32.mrf.mxu0  ;;  %v1031_v55 = vpop.f32.mrf.mxu1 }
  0xf0   :  { %v736_v56 = vpop.f32.mrf.mxu0  ;;  %v1033_v57 = vpop.f32.mrf.mxu1 }
  0xf1   :  { %v737_v1 = vadd.f32 %v736_v56, %v735_v54 }
  0xf2   :  { %v738_v59 = vpop.f32.mrf.mxu0  ;;  %v790_v60 = vpop.f32.mrf.mxu1 }
  0xf3   :  { %v473_v62 = vadd.f32 %v790_v60, %v734_v58  ;;  %v770_v60 = vadd.f32 %v1029_v53, %v1027_v51 }
  0xf4   :  { %v739_v63 = vpop.f32.mrf.mxu0  ;;  %v464_v0 = vpop.f32.mrf.mxu1 }
  0xf5   :  { %v529_v2 = vmax.f32 %v473_v62, 0.0  ;;  %v465_v3 = vadd.f32 %v728_v61, %v464_v0  ;;  %v740_v17 = vadd.f32 %v739_v63, %v738_v59 }
  0xf6   :  { %v741_v4 = vpop.f32.mrf.mxu0  ;;  %v791_v5 = vpop.f32.mrf.mxu1 }
  0xf7   :  { %v696_v7 = vpack.c.bf16 %v529_v2, %v529_v2  ;;  %v527_v8 = vmax.f32 %v465_v3, 0.0  ;;  %v476_v9 = vadd.f32 %v791_v5, %v737_v1  ;;  %v764_v1 = vadd.f32 %v1021_v45, %v1019_v43 }
  0xf8   :  { %v742_v10 = vpop.f32.mrf.mxu0  ;;  %v467_v11 = vpop.f32.mrf.mxu1  ;;  %v773_v43 = vadd.f32 %v1033_v57, %v1031_v55 }
  0xf9   :  { %610 = vst.msk [vmem:[%s1109_s2 + $0x8] sm:$0xf] %vm607_vm1, %v696_v7  ;;  %v694_v12 = vpack.c.bf16 %v527_v8, %v527_v8  ;;  %v530_v13 = vmax.f32 %v476_v9, 0.0  ;;  %v468_v14 = vadd.f32 %v731_v6, %v467_v11  ;;  %v743_v27 = vadd.f32 %v742_v10, %v741_v4 }
  0xfa   :  { %v744_v15 = vpop.f32.mrf.mxu0  ;;  %v794_v16 = vpop.f32.mrf.mxu1  ;;  %v767_v9 = vadd.f32 %v1025_v49, %v1023_v47 }
  0xfb   :  { %608 = vst.msk [vmem:[%s1109_s2] sm:$0xf] %vm607_vm1, %v694_v12  ;;  %v697_v18 = vpack.c.bf16 %v530_v13, %v530_v13  ;;  %v528_v19 = vmax.f32 %v468_v14, 0.0 }
  0xfc   :  { %v745_v20 = vpop.f32.mrf.mxu0  ;;  %v480_v21 = vpop.f32.mrf.mxu1 }
  0xfd   :  { %611 = vst.msk [vmem:[%s1109_s2 + $0xc] sm:$0xf] %vm607_vm1, %v697_v18  ;;  %v695_v22 = vpack.c.bf16 %v528_v19, %v528_v19  ;;  %v746_v23 = vadd.f32 %v745_v20, %v744_v15  ;;  %v481_v24 = vadd.f32 %v740_v17, %v480_v21 }
  0xfe   :  { %v747_v25 = vpop.f32.mrf.mxu0  ;;  %v795_v26 = vpop.f32.mrf.mxu1 }
  0xff   :  { %609 = vst.msk [vmem:[%s1109_s2 + $0x4] sm:$0xf] %vm607_vm1, %v695_v22  ;;  %v489_v28 = vadd.f32 %v794_v16, %v746_v23  ;;  %v531_v29 = vmax.f32 %v481_v24, 0.0 }
 0x100   :  { %v748_v30 = vpop.f32.mrf.mxu0  ;;  %v483_v31 = vpop.f32.mrf.mxu1 }
 0x101   :  { %v533_v32 = vmax.f32 %v489_v28, 0.0  ;;  %v698_v33 = vpack.c.bf16 %v531_v29, %v531_v29  ;;  %v749_v34 = vadd.f32 %v748_v30, %v747_v25  ;;  %v484_v35 = vadd.f32 %v743_v27, %v483_v31 }
 0x102   :  { %v750_v36 = vpop.f32.mrf.mxu0  ;;  %v798_v37 = vpop.f32.mrf.mxu1 }
 0x103   :  { %v700_v38 = vpack.c.bf16 %v533_v32, %v533_v32  ;;  %612 = vst.msk [vmem:[%s1109_s2 + $0x10] sm:$0xf] %vm607_vm1, %v698_v33  ;;  %v492_v39 = vadd.f32 %v795_v26, %v749_v34  ;;  %v532_v40 = vmax.f32 %v484_v35, 0.0 }
 0x104   :  { %v751_v41 = vpop.f32.mrf.mxu0  ;;  %v496_v42 = vpop.f32.mrf.mxu1 }
 0x105   :  { %614 = vst.msk [vmem:[%s1109_s2 + $0x18] sm:$0xf] %vm607_vm1, %v700_v38  ;;  %v534_v44 = vmax.f32 %v492_v39, 0.0  ;;  %v699_v46 = vpack.c.bf16 %v532_v40, %v532_v40  ;;  %v752_v48 = vadd.f32 %v751_v41, %v750_v36 }
 0x106   :  { %v753_v50 = vpop.f32.mrf.mxu0  ;;  %v799_v52 = vpop.f32.mrf.mxu1 }
 0x107   :  { %v701_v54 = vpack.c.bf16 %v534_v44, %v534_v44  ;;  %613 = vst.msk [vmem:[%s1109_s2 + $0x14] sm:$0xf] %vm607_vm1, %v699_v46  ;;  %v497_v56 = vadd.f32 %v752_v48, %v496_v42 }
 0x108   :  { %v754_v58 = vpop.f32.mrf.mxu0  ;;  %v499_v59 = vpop.f32.mrf.mxu1 }
 0x109   :  { %615 = vst.msk [vmem:[%s1109_s2 + $0x1c] sm:$0xf] %vm607_vm1, %v701_v54  ;;  %v535_v61 = vmax.f32 %v497_v56, 0.0  ;;  %v755_v62 = vadd.f32 %v754_v58, %v753_v50 }
 0x10a   :  { %v756_v63 = vpop.f32.mrf.mxu0  ;;  %v802_v0 = vpop.f32.mrf.mxu1 }
 0x10b   :  { %v702_v2 = vpack.c.bf16 %v535_v61, %v535_v61  ;;  %v500_v3 = vadd.f32 %v755_v62, %v499_v59  ;;  %v521_v4 = vadd.f32 %v802_v0, %v770_v60 }
 0x10c   :  { %v757_v5 = vpop.f32.mrf.mxu0  ;;  %v512_v6 = vpop.f32.mrf.mxu1 }
 0x10d   :  { %616 = vst.msk [vmem:[%s1109_s2 + $0x20] sm:$0xf] %vm607_vm1, %v702_v2  ;;  %v536_v51 = vmax.f32 %v500_v3, 0.0  ;;  %v541_v53 = vmax.f32 %v521_v4, 0.0  ;;  %v758_v7 = vadd.f32 %v757_v5, %v756_v63  ;;  %v513_v8 = vadd.f32 %v764_v1, %v512_v6 }
 0x10e   :  { %v759_v45 = vpop.f32.mrf.mxu0  ;;  %v803_v10 = vpop.f32.mrf.mxu1 }
 0x10f   :  { %v703_v11 = vpack.c.bf16 %v536_v51, %v536_v51  ;;  %v708_v12 = vpack.c.bf16 %v541_v53, %v541_v53  ;;  %v505_v13 = vadd.f32 %v798_v37, %v758_v7  ;;  %v539_v14 = vmax.f32 %v513_v8, 0.0 }
 0x110   :  { %v524_v15 = vadd.f32 %v803_v10, %v773_v43  ;;  %v760_v16 = vpop.f32.mrf.mxu0  ;;  %v515_v17 = vpop.f32.mrf.mxu1 }
 0x111   :  { %617 = vst.msk [vmem:[%s1109_s2 + $0x24] sm:$0xf] %vm607_vm1, %v703_v11  ;;  %622 = vst.msk [vmem:[%s1109_s2 + $0x38] sm:$0xf] %vm607_vm1, %v708_v12  ;;  %v537_v47 = vmax.f32 %v505_v13, 0.0  ;;  %v706_v49 = vpack.c.bf16 %v539_v14, %v539_v14  ;;  %v761_v55 = vadd.f32 %v760_v16, %v759_v45  ;;  %v516_v57 = vadd.f32 %v767_v9, %v515_v17 }
 0x112   :  { %v542_v18 = vmax.f32 %v524_v15, 0.0 }
 0x113   :  { %v704_v19 = vpack.c.bf16 %v537_v47, %v537_v47  ;;  %620 = vst.msk [vmem:[%s1109_s2 + $0x30] sm:$0xf] %vm607_vm1, %v706_v49  ;;  %v508_v20 = vadd.f32 %v799_v52, %v761_v55  ;;  %v540_v21 = vmax.f32 %v516_v57, 0.0 }
 0x114   :  { %v709_v22 = vpack.c.bf16 %v542_v18, %v542_v18 }
 0x115   :  { %618 = vst.msk [vmem:[%s1109_s2 + $0x28] sm:$0xf] %vm607_vm1, %v704_v19  ;;  %v538_v23 = vmax.f32 %v508_v20, 0.0  ;;  %v707_v24 = vpack.c.bf16 %v540_v21, %v540_v21 }
 0x116   :  { %623 = vst.msk [vmem:[%s1109_s2 + $0x3c] sm:$0xf] %vm607_vm1, %v709_v22 }
 0x117   :  { %v705_v25 = vpack.c.bf16 %v538_v23, %v538_v23  ;;  %621 = vst.msk [vmem:[%s1109_s2 + $0x34] sm:$0xf] %vm607_vm1, %v707_v24 }
 0x119   :  { %619 = vst.msk [vmem:[%s1109_s2 + $0x2c] sm:$0xf] %vm607_vm1, %v705_v25 }

// kernel: ednet_forward.18
= control target key start
LH: loop header
LB: loop body
LE: loop exit
PB: predicated region body
PF: predicated region fallthrough
CT: control target
= control target key end

     0   :  { %v1568_v0 = vmov 0   ;;  %vm436_vm0 = vcmask 130048   ;;  %vm1142_vm1 = vcmask 257024   ;;  %s2091_s1 = inlined_call_operand.vmem [shape: bf16[144,32], index: 1, kind: input, shape index: {}]   ;;  %s2092_s0 = inlined_call_operand.vmem [shape: bf16[512,144], index: 0, kind: input, shape index: {}]   ;;  %s2093_s2 = inlined_call_operand.vmem [shape: bf16[512,32], index: 2, kind: output, shape index: {}]  }
   0x1   :  { %533 = vmatprep.subr.bf16.mxu0 %v1568_v0  ;;  %1444 = vmatprep.subr.bf16.mxu1 %v1568_v0  ;;  %v1463_v1 = vld [vmem:[%s2091_s1 + $0x38] sm:$0xff]   ;;  %v1464_v2 = vld [vmem:[%s2091_s1 + $0x30] sm:$0xff]   ;;  %v1465_v3 = vld [vmem:[%s2091_s1 + $0x28] sm:$0xff]  }
   0x2   :  { %534 = vmatpush1.bf16.msra.mxu0 %v1463_v1  ;;  %1453 = vmatpush1.bf16.msra.mxu1 %v1463_v1  ;;  %v1466_v4 = vld [vmem:[%s2091_s1 + $0x20] sm:$0xff]   ;;  %v1467_v7 = vld [vmem:[%s2091_s1 + $0x18] sm:$0xff]   ;;  %v1468_v8 = vld [vmem:[%s2091_s1 + $0x10] sm:$0xff]  }
   0x3   :  { %535 = vmatprep.subr.bf16.mxu0 %v1568_v0  ;;  %1445 = vmatprep.subr.bf16.mxu1 %v1568_v0  ;;  %v1474_v5 = vld [vmem:[%s2092_s0 + $0x4] ss:$8 sps:$4 sm:$0xff]   ;;  %v1472_v12 = vld [vmem:[%s2092_s0] ss:$8 sps:$4 sm:$0xff]   ;;  %v1478_v14 = vld [vmem:[%s2092_s0 + $0x14] ss:$8 sps:$4 sm:$0xff]  }
   0x4   :  { %v1477_v6 = vld [vmem:[%s2092_s0 + $0x104] ss:$8 sps:$4 sm:$0xff]   ;;  %1284 = vmatprep.mubr.msk.bf16.mxu0 %vm436_vm0, %v1474_v5  ;;  %v1475_v13 = vld [vmem:[%s2092_s0 + $0x100] ss:$8 sps:$4 sm:$0xff]   ;;  %v1480_v15 = vld [vmem:[%s2092_s0 + $0x114] ss:$8 sps:$4 sm:$0xff]  }
   0x5   :  { %1300 = vmatprep.mubr.msk.bf16.mxu1 %vm436_vm0, %v1477_v6  ;;  %v1469_v9 = vld [vmem:[%s2091_s1 + $0x8] sm:$0xff]   ;;  %v1470_v10 = vld [vmem:[%s2091_s1] sm:$0xff]   ;;  %v1482_v16 = vld [vmem:[%s2092_s0 + $0x10] ss:$8 sps:$4 sm:$0xff]  }
   0x6   :  { %536 = vmatpush1.bf16.msra.mxu0 %v1464_v2  ;;  %1454 = vmatpush1.bf16.msra.mxu1 %v1464_v2  ;;  %v1471_v11 = vld [vmem:[%s2091_s1 + $0x40] sm:$0xff]   ;;  %v1483_v17 = vld [vmem:[%s2092_s0 + $0x110] ss:$8 sps:$4 sm:$0xff]   ;;  %v1490_v22 = vld [vmem:[%s2092_s0 + $0x34] ss:$8 sps:$4 sm:$0xff]  }
   0x7   :  { %537 = vmatprep.subr.bf16.mxu0 %v1568_v0  ;;  %1446 = vmatprep.subr.bf16.mxu1 %v1568_v0  ;;  %v1484_v18 = vld [vmem:[%s2092_s0 + $0x24] ss:$8 sps:$4 sm:$0xff]   ;;  %v1488_v20 = vld [vmem:[%s2092_s0 + $0x20] ss:$8 sps:$4 sm:$0xff]   ;;  %v1492_v23 = vld [vmem:[%s2092_s0 + $0x134] ss:$8 sps:$4 sm:$0xff]  }
   0x8   :  { %v1486_v19 = vld [vmem:[%s2092_s0 + $0x124] ss:$8 sps:$4 sm:$0xff]   ;;  %v1489_v21 = vld [vmem:[%s2092_s0 + $0x120] ss:$8 sps:$4 sm:$0xff]   ;;  %v1494_v24 = vld [vmem:[%s2092_s0 + $0x30] ss:$8 sps:$4 sm:$0xff]  }
   0x9   :  { %v1495_v25 = vld [vmem:[%s2092_s0 + $0x130] ss:$8 sps:$4 sm:$0xff]   ;;  %v1496_v26 = vld [vmem:[%s2092_s0 + $0x44] ss:$8 sps:$4 sm:$0xff]   ;;  %v1500_v28 = vld [vmem:[%s2092_s0 + $0x40] ss:$8 sps:$4 sm:$0xff]  }
   0xa   :  { %538 = vmatpush1.bf16.msra.mxu0 %v1465_v3  ;;  %1455 = vmatpush1.bf16.msra.mxu1 %v1465_v3  ;;  %v1498_v27 = vld [vmem:[%s2092_s0 + $0x144] ss:$8 sps:$4 sm:$0xff]   ;;  %v1501_v29 = vld [vmem:[%s2092_s0 + $0x140] ss:$8 sps:$4 sm:$0xff]   ;;  %v1502_v30 = vld [vmem:[%s2092_s0 + $0x54] ss:$8 sps:$4 sm:$0xff]  }
   0xb   :  { %539 = vmatprep.subr.bf16.mxu0 %v1568_v0  ;;  %1447 = vmatprep.subr.bf16.mxu1 %v1568_v0  ;;  %v1504_v31 = vld [vmem:[%s2092_s0 + $0x154] ss:$8 sps:$4 sm:$0xff]   ;;  %v1506_v32 = vld [vmem:[%s2092_s0 + $0x50] ss:$8 sps:$4 sm:$0xff]   ;;  %v1508_v34 = vld [vmem:[%s2092_s0 + $0x64] ss:$8 sps:$4 sm:$0xff]  }
   0xc   :  { %v1507_v33 = vld [vmem:[%s2092_s0 + $0x150] ss:$8 sps:$4 sm:$0xff]   ;;  %v1510_v35 = vld [vmem:[%s2092_s0 + $0x164] ss:$8 sps:$4 sm:$0xff]   ;;  %v1512_v36 = vld [vmem:[%s2092_s0 + $0x60] ss:$8 sps:$4 sm:$0xff]  }
   0xd   :  { %v1513_v37 = vld [vmem:[%s2092_s0 + $0x160] ss:$8 sps:$4 sm:$0xff]   ;;  %v1514_v38 = vld [vmem:[%s2092_s0 + $0x74] ss:$8 sps:$4 sm:$0xff]   ;;  %v1518_v40 = vld [vmem:[%s2092_s0 + $0x70] ss:$8 sps:$4 sm:$0xff]  }
   0xe   :  { %540 = vmatpush1.bf16.msra.mxu0 %v1466_v4  ;;  %1456 = vmatpush1.bf16.msra.mxu1 %v1466_v4  ;;  %v1516_v39 = vld [vmem:[%s2092_s0 + $0x174] ss:$8 sps:$4 sm:$0xff]   ;;  %v1519_v41 = vld [vmem:[%s2092_s0 + $0x170] ss:$8 sps:$4 sm:$0xff]   ;;  %v1520_v42 = vld [vmem:[%s2092_s0 + $0x84] ss:$8 sps:$4 sm:$0xff]  }
   0xf   :  { %541 = vmatprep.subr.bf16.mxu0 %v1568_v0  ;;  %1448 = vmatprep.subr.bf16.mxu1 %v1568_v0  ;;  %v1522_v43 = vld [vmem:[%s2092_s0 + $0x184] ss:$8 sps:$4 sm:$0xff]   ;;  %v1524_v44 = vld [vmem:[%s2092_s0 + $0x80] ss:$8 sps:$4 sm:$0xff]   ;;  %v1526_v46 = vld [vmem:[%s2092_s0 + $0x94] ss:$8 sps:$4 sm:$0xff]  }
  0x10   :  { %v1525_v45 = vld [vmem:[%s2092_s0 + $0x180] ss:$8 sps:$4 sm:$0xff]   ;;  %v1528_v47 = vld [vmem:[%s2092_s0 + $0x194] ss:$8 sps:$4 sm:$0xff]   ;;  %v1530_v48 = vld [vmem:[%s2092_s0 + $0x90] ss:$8 sps:$4 sm:$0xff]  }
  0x11   :  { %v1531_v49 = vld [vmem:[%s2092_s0 + $0x190] ss:$8 sps:$4 sm:$0xff]   ;;  %v1532_v50 = vld [vmem:[%s2092_s0 + $0xa4] ss:$8 sps:$4 sm:$0xff]   ;;  %v1536_v52 = vld [vmem:[%s2092_s0 + $0xa0] ss:$8 sps:$4 sm:$0xff]  }
  0x12   :  { %542 = vmatpush1.bf16.msra.mxu0 %v1467_v7  ;;  %1457 = vmatpush1.bf16.msra.mxu1 %v1467_v7  ;;  %v1534_v51 = vld [vmem:[%s2092_s0 + $0x1a4] ss:$8 sps:$4 sm:$0xff]   ;;  %v1537_v53 = vld [vmem:[%s2092_s0 + $0x1a0] ss:$8 sps:$4 sm:$0xff]   ;;  %v1538_v54 = vld [vmem:[%s2092_s0 + $0xb4] ss:$8 sps:$4 sm:$0xff]  }
  0x13   :  { %543 = vmatprep.subr.bf16.mxu0 %v1568_v0  ;;  %1449 = vmatprep.subr.bf16.mxu1 %v1568_v0  ;;  %v1540_v55 = vld [vmem:[%s2092_s0 + $0x1b4] ss:$8 sps:$4 sm:$0xff]   ;;  %v1542_v56 = vld [vmem:[%s2092_s0 + $0xb0] ss:$8 sps:$4 sm:$0xff]   ;;  %v1544_v58 = vld [vmem:[%s2092_s0 + $0xc4] ss:$8 sps:$4 sm:$0xff]  }
  0x14   :  { %v1543_v57 = vld [vmem:[%s2092_s0 + $0x1b0] ss:$8 sps:$4 sm:$0xff]   ;;  %v1546_v59 = vld [vmem:[%s2092_s0 + $0x1c4] ss:$8 sps:$4 sm:$0xff]   ;;  %v1548_v60 = vld [vmem:[%s2092_s0 + $0xc0] ss:$8 sps:$4 sm:$0xff]  }
  0x15   :  { %v1549_v61 = vld [vmem:[%s2092_s0 + $0x1c0] ss:$8 sps:$4 sm:$0xff]   ;;  %v1550_v62 = vld [vmem:[%s2092_s0 + $0xd4] ss:$8 sps:$4 sm:$0xff]   ;;  %v1555_v1 = vld [vmem:[%s2092_s0 + $0x1d0] ss:$8 sps:$4 sm:$0xff]  }
  0x16   :  { %544 = vmatpush1.bf16.msra.mxu0 %v1468_v8  ;;  %1458 = vmatpush1.bf16.msra.mxu1 %v1468_v8  ;;  %v1552_v63 = vld [vmem:[%s2092_s0 + $0x1d4] ss:$8 sps:$4 sm:$0xff]   ;;  %v1556_v2 = vld [vmem:[%s2092_s0 + $0xe4] ss:$8 sps:$4 sm:$0xff]   ;;  %v1560_v4 = vld [vmem:[%s2092_s0 + $0xe0] ss:$8 sps:$4 sm:$0xff]  }
  0x17   :  { %545 = vmatprep.subr.bf16.mxu0 %v1568_v0  ;;  %1450 = vmatprep.subr.bf16.mxu1 %v1568_v0  ;;  %v1558_v3 = vld [vmem:[%s2092_s0 + $0x1e4] ss:$8 sps:$4 sm:$0xff]   ;;  %v1561_v5 = vld [vmem:[%s2092_s0 + $0x1e0] ss:$8 sps:$4 sm:$0xff]   ;;  %v1562_v6 = vld [vmem:[%s2092_s0 + $0xf4] ss:$8 sps:$4 sm:$0xff]  }
  0x18   :  { %v1564_v7 = vld [vmem:[%s2092_s0 + $0x1f4] ss:$8 sps:$4 sm:$0xff]   ;;  %v1566_v8 = vld [vmem:[%s2092_s0 + $0xf0] ss:$8 sps:$4 sm:$0xff]  }
  0x1a   :  { %546 = vmatpush1.bf16.msra.mxu0 %v1469_v9  ;;  %1459 = vmatpush1.bf16.msra.mxu1 %v1469_v9  ;;  %v1567_v9 = vld [vmem:[%s2092_s0 + $0x1f0] ss:$8 sps:$4 sm:$0xff]  }
  0x1b   :  { %547 = vmatprep.subr.bf16.mxu0 %v1568_v0  ;;  %1451 = vmatprep.subr.bf16.mxu1 %v1568_v0 }
  0x1e   :  { %548 = vmatpush1.bf16.msra.mxu0 %v1470_v10  ;;  %1460 = vmatpush1.bf16.msra.mxu1 %v1470_v10 }
  0x1f   :  { %563 = vmatprep.subr.bf16.mxu0 %v1568_v0  ;;  %1452 = vmatprep.subr.bf16.mxu1 %v1568_v0  ;;  %v1554_v0 = vld [vmem:[%s2092_s0 + $0xd0] ss:$8 sps:$4 sm:$0xff]  }
  0x22   :  { %564 = vmatpush2.bf16.msra.mxu0 %v1471_v11  ;;  %1461 = vmatpush2.bf16.msra.mxu1 %v1471_v11 }
  0x25   :  { %566 = vmatmul.mubr.bf16.vlgmr.msra.gmra.mxu0 %v1472_v12  ;;  %694 = vmatmul.mubr.bf16.vlgmr.msra.gmra.mxu1 %v1475_v13 }
  0x26   :  { %1285 = vmatprep.mubr.msk.bf16.mxu0 %vm436_vm0, %v1478_v14  ;;  %1301 = vmatprep.mubr.msk.bf16.mxu1 %vm436_vm0, %v1480_v15 }
  0x2d   :  { %574 = vmatmul.mubr.bf16.gmra.mxu0 %v1482_v16  ;;  %702 = vmatmul.mubr.bf16.gmra.mxu1 %v1483_v17 }
  0x2e   :  { %1286 = vmatprep.mubr.msk.bf16.mxu0 %vm436_vm0, %v1484_v18  ;;  %1302 = vmatprep.mubr.msk.bf16.mxu1 %vm436_vm0, %v1486_v19 }
  0x35   :  { %582 = vmatmul.mubr.bf16.gmra.mxu0 %v1488_v20  ;;  %710 = vmatmul.mubr.bf16.gmra.mxu1 %v1489_v21 }
  0x36   :  { %1287 = vmatprep.mubr.msk.bf16.mxu0 %vm436_vm0, %v1490_v22  ;;  %1303 = vmatprep.mubr.msk.bf16.mxu1 %vm436_vm0, %v1492_v23 }
  0x3d   :  { %590 = vmatmul.mubr.bf16.gmra.mxu0 %v1494_v24  ;;  %718 = vmatmul.mubr.bf16.gmra.mxu1 %v1495_v25 }
  0x3e   :  { %1288 = vmatprep.mubr.msk.bf16.mxu0 %vm436_vm0, %v1496_v26  ;;  %1304 = vmatprep.mubr.msk.bf16.mxu1 %vm436_vm0, %v1498_v27 }
  0x45   :  { %598 = vmatmul.mubr.bf16.gmra.mxu0 %v1500_v28  ;;  %726 = vmatmul.mubr.bf16.gmra.mxu1 %v1501_v29 }
  0x46   :  { %1289 = vmatprep.mubr.msk.bf16.mxu0 %vm436_vm0, %v1502_v30  ;;  %1305 = vmatprep.mubr.msk.bf16.mxu1 %vm436_vm0, %v1504_v31 }
  0x4d   :  { %606 = vmatmul.mubr.bf16.gmra.mxu0 %v1506_v32  ;;  %734 = vmatmul.mubr.bf16.gmra.mxu1 %v1507_v33 }
  0x4e   :  { %1290 = vmatprep.mubr.msk.bf16.mxu0 %vm436_vm0, %v1508_v34  ;;  %1306 = vmatprep.mubr.msk.bf16.mxu1 %vm436_vm0, %v1510_v35 }
  0x55   :  { %614 = vmatmul.mubr.bf16.gmra.mxu0 %v1512_v36  ;;  %742 = vmatmul.mubr.bf16.gmra.mxu1 %v1513_v37 }
  0x56   :  { %1291 = vmatprep.mubr.msk.bf16.mxu0 %vm436_vm0, %v1514_v38  ;;  %1307 = vmatprep.mubr.msk.bf16.mxu1 %vm436_vm0, %v1516_v39 }
  0x5d   :  { %622 = vmatmul.mubr.bf16.gmra.mxu0 %v1518_v40  ;;  %750 = vmatmul.mubr.bf16.gmra.mxu1 %v1519_v41 }
  0x5e   :  { %1292 = vmatprep.mubr.msk.bf16.mxu0 %vm436_vm0, %v1520_v42  ;;  %1308 = vmatprep.mubr.msk.bf16.mxu1 %vm436_vm0, %v1522_v43 }
  0x65   :  { %630 = vmatmul.mubr.bf16.gmra.mxu0 %v1524_v44  ;;  %758 = vmatmul.mubr.bf16.gmra.mxu1 %v1525_v45 }
  0x66   :  { %1293 = vmatprep.mubr.msk.bf16.mxu0 %vm436_vm0, %v1526_v46  ;;  %1309 = vmatprep.mubr.msk.bf16.mxu1 %vm436_vm0, %v1528_v47 }
  0x6d   :  { %638 = vmatmul.mubr.bf16.gmra.mxu0 %v1530_v48  ;;  %766 = vmatmul.mubr.bf16.gmra.mxu1 %v1531_v49 }
  0x6e   :  { %1294 = vmatprep.mubr.msk.bf16.mxu0 %vm436_vm0, %v1532_v50  ;;  %1310 = vmatprep.mubr.msk.bf16.mxu1 %vm436_vm0, %v1534_v51 }
  0x75   :  { %646 = vmatmul.mubr.bf16.gmra.mxu0 %v1536_v52  ;;  %774 = vmatmul.mubr.bf16.gmra.mxu1 %v1537_v53 }
  0x76   :  { %1295 = vmatprep.mubr.msk.bf16.mxu0 %vm436_vm0, %v1538_v54  ;;  %1311 = vmatprep.mubr.msk.bf16.mxu1 %vm436_vm0, %v1540_v55 }
  0x7d   :  { %654 = vmatmul.mubr.bf16.gmra.mxu0 %v1542_v56  ;;  %782 = vmatmul.mubr.bf16.gmra.mxu1 %v1543_v57 }
  0x7e   :  { %1296 = vmatprep.mubr.msk.bf16.mxu0 %vm436_vm0, %v1544_v58  ;;  %1312 = vmatprep.mubr.msk.bf16.mxu1 %vm436_vm0, %v1546_v59 }
  0x85   :  { %662 = vmatmul.mubr.bf16.gmra.mxu0 %v1548_v60  ;;  %790 = vmatmul.mubr.bf16.gmra.mxu1 %v1549_v61 }
  0x86   :  { %1297 = vmatprep.mubr.msk.bf16.mxu0 %vm436_vm0, %v1550_v62  ;;  %1313 = vmatprep.mubr.msk.bf16.mxu1 %vm436_vm0, %v1552_v63 }
  0x8d   :  { %670 = vmatmul.mubr.bf16.gmra.mxu0 %v1554_v0  ;;  %798 = vmatmul.mubr.bf16.gmra.mxu1 %v1555_v1 }
  0x8e   :  { %1298 = vmatprep.mubr.msk.bf16.mxu0 %vm436_vm0, %v1556_v2  ;;  %1314 = vmatprep.mubr.msk.bf16.mxu1 %vm436_vm0, %v1558_v3 }
  0x95   :  { %678 = vmatmul.mubr.bf16.gmra.mxu0 %v1560_v4  ;;  %806 = vmatmul.mubr.bf16.gmra.mxu1 %v1561_v5 }
  0x96   :  { %1299 = vmatprep.mubr.msk.bf16.mxu0 %vm436_vm0, %v1562_v6  ;;  %1315 = vmatprep.mubr.msk.bf16.mxu1 %vm436_vm0, %v1564_v7 }
  0x9d   :  { %686 = vmatmul.mubr.bf16.gmra.mxu0 %v1566_v8  ;;  %814 = vmatmul.mubr.bf16.gmra.mxu1 %v1567_v9 }
  0xe5   :  { %v567_v10 = vpop.f32.mrf.mxu0  ;;  %v695_v11 = vpop.f32.mrf.mxu1 }
  0xe6   :  { %v822_v12 = vmax.f32 %v567_v10, 0.0  ;;  %v854_v13 = vmax.f32 %v695_v11, 0.0 }
  0xe7   :  { %v569_v14 = vpop.f32.mrf.mxu0  ;;  %v697_v15 = vpop.f32.mrf.mxu1 }
  0xe8   :  { %v1380_v16 = vpack.c.bf16 %v822_v12, %v822_v12  ;;  %v1412_v17 = vpack.c.bf16 %v854_v13, %v854_v13 }
  0xe9   :  { %v570_v18 = vpop.f32.mrf.mxu0  ;;  %v698_v19 = vpop.f32.mrf.mxu1 }
  0xea   :  { %1143 = vst.msk [vmem:[%s2093_s2] sm:$0xf] %vm1142_vm1, %v1380_v16  ;;  %1175 = vst.msk [vmem:[%s2093_s2 + $0x80] sm:$0xf] %vm1142_vm1, %v1412_v17  ;;  %v823_v20 = vmax.f32 %v570_v18, 0.0  ;;  %v855_v21 = vmax.f32 %v698_v19, 0.0 }
  0xeb   :  { %v572_v22 = vpop.f32.mrf.mxu0  ;;  %v700_v23 = vpop.f32.mrf.mxu1 }
  0xec   :  { %v1381_v24 = vpack.c.bf16 %v823_v20, %v823_v20  ;;  %v1413_v25 = vpack.c.bf16 %v855_v21, %v855_v21 }
  0xed   :  { %v575_v26 = vpop.f32.mrf.mxu0  ;;  %v703_v27 = vpop.f32.mrf.mxu1 }
  0xee   :  { %1144 = vst.msk [vmem:[%s2093_s2 + $0x4] sm:$0xf] %vm1142_vm1, %v1381_v24  ;;  %1176 = vst.msk [vmem:[%s2093_s2 + $0x84] sm:$0xf] %vm1142_vm1, %v1413_v25  ;;  %v824_v28 = vmax.f32 %v575_v26, 0.0  ;;  %v856_v29 = vmax.f32 %v703_v27, 0.0 }
  0xef   :  { %v577_v30 = vpop.f32.mrf.mxu0  ;;  %v705_v31 = vpop.f32.mrf.mxu1 }
  0xf0   :  { %v1382_v32 = vpack.c.bf16 %v824_v28, %v824_v28  ;;  %v1414_v33 = vpack.c.bf16 %v856_v29, %v856_v29 }
  0xf1   :  { %v578_v34 = vpop.f32.mrf.mxu0  ;;  %v706_v35 = vpop.f32.mrf.mxu1 }
  0xf2   :  { %1145 = vst.msk [vmem:[%s2093_s2 + $0x8] sm:$0xf] %vm1142_vm1, %v1382_v32  ;;  %1177 = vst.msk [vmem:[%s2093_s2 + $0x88] sm:$0xf] %vm1142_vm1, %v1414_v33  ;;  %v825_v36 = vmax.f32 %v578_v34, 0.0  ;;  %v857_v37 = vmax.f32 %v706_v35, 0.0 }
  0xf3   :  { %v580_v38 = vpop.f32.mrf.mxu0  ;;  %v708_v39 = vpop.f32.mrf.mxu1 }
  0xf4   :  { %v1383_v40 = vpack.c.bf16 %v825_v36, %v825_v36  ;;  %v1415_v41 = vpack.c.bf16 %v857_v37, %v857_v37 }
  0xf5   :  { %v583_v42 = vpop.f32.mrf.mxu0  ;;  %v711_v43 = vpop.f32.mrf.mxu1 }
  0xf6   :  { %1146 = vst.msk [vmem:[%s2093_s2 + $0xc] sm:$0xf] %vm1142_vm1, %v1383_v40  ;;  %1178 = vst.msk [vmem:[%s2093_s2 + $0x8c] sm:$0xf] %vm1142_vm1, %v1415_v41  ;;  %v826_v44 = vmax.f32 %v583_v42, 0.0  ;;  %v858_v45 = vmax.f32 %v711_v43, 0.0 }
  0xf7   :  { %v585_v46 = vpop.f32.mrf.mxu0  ;;  %v713_v47 = vpop.f32.mrf.mxu1 }
  0xf8   :  { %v1384_v48 = vpack.c.bf16 %v826_v44, %v826_v44  ;;  %v1416_v49 = vpack.c.bf16 %v858_v45, %v858_v45 }
  0xf9   :  { %v586_v50 = vpop.f32.mrf.mxu0  ;;  %v714_v51 = vpop.f32.mrf.mxu1 }
  0xfa   :  { %1147 = vst.msk [vmem:[%s2093_s2 + $0x10] sm:$0xf] %vm1142_vm1, %v1384_v48  ;;  %1179 = vst.msk [vmem:[%s2093_s2 + $0x90] sm:$0xf] %vm1142_vm1, %v1416_v49  ;;  %v827_v52 = vmax.f32 %v586_v50, 0.0  ;;  %v859_v53 = vmax.f32 %v714_v51, 0.0 }
  0xfb   :  { %v588_v54 = vpop.f32.mrf.mxu0  ;;  %v716_v55 = vpop.f32.mrf.mxu1 }
  0xfc   :  { %v1385_v56 = vpack.c.bf16 %v827_v52, %v827_v52  ;;  %v1417_v57 = vpack.c.bf16 %v859_v53, %v859_v53 }
  0xfd   :  { %v591_v58 = vpop.f32.mrf.mxu0  ;;  %v719_v59 = vpop.f32.mrf.mxu1 }
  0xfe   :  { %1148 = vst.msk [vmem:[%s2093_s2 + $0x14] sm:$0xf] %vm1142_vm1, %v1385_v56  ;;  %1180 = vst.msk [vmem:[%s2093_s2 + $0x94] sm:$0xf] %vm1142_vm1, %v1417_v57  ;;  %v828_v60 = vmax.f32 %v591_v58, 0.0  ;;  %v860_v61 = vmax.f32 %v719_v59, 0.0 }
  0xff   :  { %v593_v62 = vpop.f32.mrf.mxu0  ;;  %v721_v63 = vpop.f32.mrf.mxu1 }
 0x100   :  { %v1386_v0 = vpack.c.bf16 %v828_v60, %v828_v60  ;;  %v1418_v1 = vpack.c.bf16 %v860_v61, %v860_v61 }
 0x101   :  { %v594_v2 = vpop.f32.mrf.mxu0  ;;  %v722_v3 = vpop.f32.mrf.mxu1 }
 0x102   :  { %1149 = vst.msk [vmem:[%s2093_s2 + $0x18] sm:$0xf] %vm1142_vm1, %v1386_v0  ;;  %1181 = vst.msk [vmem:[%s2093_s2 + $0x98] sm:$0xf] %vm1142_vm1, %v1418_v1  ;;  %v829_v4 = vmax.f32 %v594_v2, 0.0  ;;  %v861_v5 = vmax.f32 %v722_v3, 0.0 }
 0x103   :  { %v596_v6 = vpop.f32.mrf.mxu0  ;;  %v724_v7 = vpop.f32.mrf.mxu1 }
 0x104   :  { %v1387_v8 = vpack.c.bf16 %v829_v4, %v829_v4  ;;  %v1419_v9 = vpack.c.bf16 %v861_v5, %v861_v5 }
 0x105   :  { %v599_v10 = vpop.f32.mrf.mxu0  ;;  %v727_v11 = vpop.f32.mrf.mxu1 }
 0x106   :  { %1150 = vst.msk [vmem:[%s2093_s2 + $0x1c] sm:$0xf] %vm1142_vm1, %v1387_v8  ;;  %1182 = vst.msk [vmem:[%s2093_s2 + $0x9c] sm:$0xf] %vm1142_vm1, %v1419_v9  ;;  %v830_v12 = vmax.f32 %v599_v10, 0.0  ;;  %v862_v13 = vmax.f32 %v727_v11, 0.0 }
 0x107   :  { %v601_v14 = vpop.f32.mrf.mxu0  ;;  %v729_v15 = vpop.f32.mrf.mxu1 }
 0x108   :  { %v1388_v16 = vpack.c.bf16 %v830_v12, %v830_v12  ;;  %v1420_v17 = vpack.c.bf16 %v862_v13, %v862_v13 }
 0x109   :  { %v602_v18 = vpop.f32.mrf.mxu0  ;;  %v730_v19 = vpop.f32.mrf.mxu1 }
 0x10a   :  { %1151 = vst.msk [vmem:[%s2093_s2 + $0x20] sm:$0xf] %vm1142_vm1, %v1388_v16  ;;  %1183 = vst.msk [vmem:[%s2093_s2 + $0xa0] sm:$0xf] %vm1142_vm1, %v1420_v17  ;;  %v831_v20 = vmax.f32 %v602_v18, 0.0  ;;  %v863_v21 = vmax.f32 %v730_v19, 0.0 }
 0x10b   :  { %v604_v22 = vpop.f32.mrf.mxu0  ;;  %v732_v23 = vpop.f32.mrf.mxu1 }
 0x10c   :  { %v1389_v24 = vpack.c.bf16 %v831_v20, %v831_v20  ;;  %v1421_v25 = vpack.c.bf16 %v863_v21, %v863_v21 }
 0x10d   :  { %v607_v26 = vpop.f32.mrf.mxu0  ;;  %v735_v27 = vpop.f32.mrf.mxu1 }
 0x10e   :  { %1152 = vst.msk [vmem:[%s2093_s2 + $0x24] sm:$0xf] %vm1142_vm1, %v1389_v24  ;;  %1184 = vst.msk [vmem:[%s2093_s2 + $0xa4] sm:$0xf] %vm1142_vm1, %v1421_v25  ;;  %v832_v28 = vmax.f32 %v607_v26, 0.0  ;;  %v864_v29 = vmax.f32 %v735_v27, 0.0 }
 0x10f   :  { %v609_v30 = vpop.f32.mrf.mxu0  ;;  %v737_v31 = vpop.f32.mrf.mxu1 }
 0x110   :  { %v1390_v32 = vpack.c.bf16 %v832_v28, %v832_v28  ;;  %v1422_v33 = vpack.c.bf16 %v864_v29, %v864_v29 }
 0x111   :  { %v610_v34 = vpop.f32.mrf.mxu0  ;;  %v738_v35 = vpop.f32.mrf.mxu1 }
 0x112   :  { %1153 = vst.msk [vmem:[%s2093_s2 + $0x28] sm:$0xf] %vm1142_vm1, %v1390_v32  ;;  %1185 = vst.msk [vmem:[%s2093_s2 + $0xa8] sm:$0xf] %vm1142_vm1, %v1422_v33  ;;  %v833_v36 = vmax.f32 %v610_v34, 0.0  ;;  %v865_v37 = vmax.f32 %v738_v35, 0.0 }
 0x113   :  { %v612_v38 = vpop.f32.mrf.mxu0  ;;  %v740_v39 = vpop.f32.mrf.mxu1 }
 0x114   :  { %v1391_v40 = vpack.c.bf16 %v833_v36, %v833_v36  ;;  %v1423_v41 = vpack.c.bf16 %v865_v37, %v865_v37 }
 0x115   :  { %v615_v42 = vpop.f32.mrf.mxu0  ;;  %v743_v43 = vpop.f32.mrf.mxu1 }
 0x116   :  { %1154 = vst.msk [vmem:[%s2093_s2 + $0x2c] sm:$0xf] %vm1142_vm1, %v1391_v40  ;;  %1186 = vst.msk [vmem:[%s2093_s2 + $0xac] sm:$0xf] %vm1142_vm1, %v1423_v41  ;;  %v834_v44 = vmax.f32 %v615_v42, 0.0  ;;  %v866_v45 = vmax.f32 %v743_v43, 0.0 }
 0x117   :  { %v617_v46 = vpop.f32.mrf.mxu0  ;;  %v745_v47 = vpop.f32.mrf.mxu1 }
 0x118   :  { %v1392_v48 = vpack.c.bf16 %v834_v44, %v834_v44  ;;  %v1424_v49 = vpack.c.bf16 %v866_v45, %v866_v45 }
 0x119   :  { %v618_v50 = vpop.f32.mrf.mxu0  ;;  %v746_v51 = vpop.f32.mrf.mxu1 }
 0x11a   :  { %1155 = vst.msk [vmem:[%s2093_s2 + $0x30] sm:$0xf] %vm1142_vm1, %v1392_v48  ;;  %1187 = vst.msk [vmem:[%s2093_s2 + $0xb0] sm:$0xf] %vm1142_vm1, %v1424_v49  ;;  %v835_v52 = vmax.f32 %v618_v50, 0.0  ;;  %v867_v53 = vmax.f32 %v746_v51, 0.0 }
 0x11b   :  { %v620_v54 = vpop.f32.mrf.mxu0  ;;  %v748_v55 = vpop.f32.mrf.mxu1 }
 0x11c   :  { %v1393_v56 = vpack.c.bf16 %v835_v52, %v835_v52  ;;  %v1425_v57 = vpack.c.bf16 %v867_v53, %v867_v53 }
 0x11d   :  { %v623_v58 = vpop.f32.mrf.mxu0  ;;  %v751_v59 = vpop.f32.mrf.mxu1 }
 0x11e   :  { %1156 = vst.msk [vmem:[%s2093_s2 + $0x34] sm:$0xf] %vm1142_vm1, %v1393_v56  ;;  %1188 = vst.msk [vmem:[%s2093_s2 + $0xb4] sm:$0xf] %vm1142_vm1, %v1425_v57  ;;  %v836_v60 = vmax.f32 %v623_v58, 0.0  ;;  %v868_v61 = vmax.f32 %v751_v59, 0.0 }
 0x11f   :  { %v625_v62 = vpop.f32.mrf.mxu0  ;;  %v753_v63 = vpop.f32.mrf.mxu1 }
 0x120   :  { %v1394_v0 = vpack.c.bf16 %v836_v60, %v836_v60  ;;  %v1426_v1 = vpack.c.bf16 %v868_v61, %v868_v61 }
 0x121   :  { %v626_v2 = vpop.f32.mrf.mxu0  ;;  %v754_v3 = vpop.f32.mrf.mxu1 }
 0x122   :  { %1157 = vst.msk [vmem:[%s2093_s2 + $0x38] sm:$0xf] %vm1142_vm1, %v1394_v0  ;;  %1189 = vst.msk [vmem:[%s2093_s2 + $0xb8] sm:$0xf] %vm1142_vm1, %v1426_v1  ;;  %v837_v4 = vmax.f32 %v626_v2, 0.0  ;;  %v869_v5 = vmax.f32 %v754_v3, 0.0 }
 0x123   :  { %v628_v6 = vpop.f32.mrf.mxu0  ;;  %v756_v7 = vpop.f32.mrf.mxu1 }
 0x124   :  { %v1395_v8 = vpack.c.bf16 %v837_v4, %v837_v4  ;;  %v1427_v9 = vpack.c.bf16 %v869_v5, %v869_v5 }
 0x125   :  { %v631_v10 = vpop.f32.mrf.mxu0  ;;  %v759_v11 = vpop.f32.mrf.mxu1 }
 0x126   :  { %1158 = vst.msk [vmem:[%s2093_s2 + $0x3c] sm:$0xf] %vm1142_vm1, %v1395_v8  ;;  %1190 = vst.msk [vmem:[%s2093_s2 + $0xbc] sm:$0xf] %vm1142_vm1, %v1427_v9  ;;  %v838_v12 = vmax.f32 %v631_v10, 0.0  ;;  %v870_v13 = vmax.f32 %v759_v11, 0.0 }
 0x127   :  { %v633_v14 = vpop.f32.mrf.mxu0  ;;  %v761_v15 = vpop.f32.mrf.mxu1 }
 0x128   :  { %v1396_v16 = vpack.c.bf16 %v838_v12, %v838_v12  ;;  %v1428_v17 = vpack.c.bf16 %v870_v13, %v870_v13 }
 0x129   :  { %v634_v18 = vpop.f32.mrf.mxu0  ;;  %v762_v19 = vpop.f32.mrf.mxu1 }
 0x12a   :  { %1159 = vst.msk [vmem:[%s2093_s2 + $0x40] sm:$0xf] %vm1142_vm1, %v1396_v16  ;;  %1191 = vst.msk [vmem:[%s2093_s2 + $0xc0] sm:$0xf] %vm1142_vm1, %v1428_v17  ;;  %v839_v20 = vmax.f32 %v634_v18, 0.0  ;;  %v871_v21 = vmax.f32 %v762_v19, 0.0 }
 0x12b   :  { %v636_v22 = vpop.f32.mrf.mxu0  ;;  %v764_v23 = vpop.f32.mrf.mxu1 }
 0x12c   :  { %v1397_v24 = vpack.c.bf16 %v839_v20, %v839_v20  ;;  %v1429_v25 = vpack.c.bf16 %v871_v21, %v871_v21 }
 0x12d   :  { %v639_v26 = vpop.f32.mrf.mxu0  ;;  %v767_v27 = vpop.f32.mrf.mxu1 }
 0x12e   :  { %1160 = vst.msk [vmem:[%s2093_s2 + $0x44] sm:$0xf] %vm1142_vm1, %v1397_v24  ;;  %1192 = vst.msk [vmem:[%s2093_s2 + $0xc4] sm:$0xf] %vm1142_vm1, %v1429_v25  ;;  %v840_v28 = vmax.f32 %v639_v26, 0.0  ;;  %v872_v29 = vmax.f32 %v767_v27, 0.0 }
 0x12f   :  { %v641_v30 = vpop.f32.mrf.mxu0  ;;  %v769_v31 = vpop.f32.mrf.mxu1 }
 0x130   :  { %v1398_v32 = vpack.c.bf16 %v840_v28, %v840_v28  ;;  %v1430_v33 = vpack.c.bf16 %v872_v29, %v872_v29 }
 0x131   :  { %v642_v34 = vpop.f32.mrf.mxu0  ;;  %v770_v35 = vpop.f32.mrf.mxu1 }
 0x132   :  { %1161 = vst.msk [vmem:[%s2093_s2 + $0x48] sm:$0xf] %vm1142_vm1, %v1398_v32  ;;  %1193 = vst.msk [vmem:[%s2093_s2 + $0xc8] sm:$0xf] %vm1142_vm1, %v1430_v33  ;;  %v841_v36 = vmax.f32 %v642_v34, 0.0  ;;  %v873_v37 = vmax.f32 %v770_v35, 0.0 }
 0x133   :  { %v644_v38 = vpop.f32.mrf.mxu0  ;;  %v772_v39 = vpop.f32.mrf.mxu1 }
 0x134   :  { %v1399_v40 = vpack.c.bf16 %v841_v36, %v841_v36  ;;  %v1431_v41 = vpack.c.bf16 %v873_v37, %v873_v37 }
 0x135   :  { %v647_v42 = vpop.f32.mrf.mxu0  ;;  %v775_v43 = vpop.f32.mrf.mxu1 }
 0x136   :  { %1162 = vst.msk [vmem:[%s2093_s2 + $0x4c] sm:$0xf] %vm1142_vm1, %v1399_v40  ;;  %1194 = vst.msk [vmem:[%s2093_s2 + $0xcc] sm:$0xf] %vm1142_vm1, %v1431_v41  ;;  %v842_v44 = vmax.f32 %v647_v42, 0.0  ;;  %v874_v45 = vmax.f32 %v775_v43, 0.0 }
 0x137   :  { %v649_v46 = vpop.f32.mrf.mxu0  ;;  %v777_v47 = vpop.f32.mrf.mxu1 }
 0x138   :  { %v1400_v48 = vpack.c.bf16 %v842_v44, %v842_v44  ;;  %v1432_v49 = vpack.c.bf16 %v874_v45, %v874_v45 }
 0x139   :  { %v650_v50 = vpop.f32.mrf.mxu0  ;;  %v778_v51 = vpop.f32.mrf.mxu1 }
 0x13a   :  { %1163 = vst.msk [vmem:[%s2093_s2 + $0x50] sm:$0xf] %vm1142_vm1, %v1400_v48  ;;  %1195 = vst.msk [vmem:[%s2093_s2 + $0xd0] sm:$0xf] %vm1142_vm1, %v1432_v49  ;;  %v843_v52 = vmax.f32 %v650_v50, 0.0  ;;  %v875_v53 = vmax.f32 %v778_v51, 0.0 }
 0x13b   :  { %v652_v54 = vpop.f32.mrf.mxu0  ;;  %v780_v55 = vpop.f32.mrf.mxu1 }
 0x13c   :  { %v1401_v56 = vpack.c.bf16 %v843_v52, %v843_v52  ;;  %v1433_v57 = vpack.c.bf16 %v875_v53, %v875_v53 }
 0x13d   :  { %v655_v58 = vpop.f32.mrf.mxu0  ;;  %v783_v59 = vpop.f32.mrf.mxu1 }
 0x13e   :  { %1164 = vst.msk [vmem:[%s2093_s2 + $0x54] sm:$0xf] %vm1142_vm1, %v1401_v56  ;;  %1196 = vst.msk [vmem:[%s2093_s2 + $0xd4] sm:$0xf] %vm1142_vm1, %v1433_v57  ;;  %v844_v60 = vmax.f32 %v655_v58, 0.0  ;;  %v876_v61 = vmax.f32 %v783_v59, 0.0 }
 0x13f   :  { %v657_v62 = vpop.f32.mrf.mxu0  ;;  %v785_v63 = vpop.f32.mrf.mxu1 }
 0x140   :  { %v1402_v0 = vpack.c.bf16 %v844_v60, %v844_v60  ;;  %v1434_v1 = vpack.c.bf16 %v876_v61, %v876_v61 }
 0x141   :  { %v658_v2 = vpop.f32.mrf.mxu0  ;;  %v786_v3 = vpop.f32.mrf.mxu1 }
 0x142   :  { %1165 = vst.msk [vmem:[%s2093_s2 + $0x58] sm:$0xf] %vm1142_vm1, %v1402_v0  ;;  %1197 = vst.msk [vmem:[%s2093_s2 + $0xd8] sm:$0xf] %vm1142_vm1, %v1434_v1  ;;  %v845_v4 = vmax.f32 %v658_v2, 0.0  ;;  %v877_v5 = vmax.f32 %v786_v3, 0.0 }
 0x143   :  { %v660_v6 = vpop.f32.mrf.mxu0  ;;  %v788_v7 = vpop.f32.mrf.mxu1 }
 0x144   :  { %v1403_v8 = vpack.c.bf16 %v845_v4, %v845_v4  ;;  %v1435_v9 = vpack.c.bf16 %v877_v5, %v877_v5 }
 0x145   :  { %v663_v10 = vpop.f32.mrf.mxu0  ;;  %v791_v11 = vpop.f32.mrf.mxu1 }
 0x146   :  { %1166 = vst.msk [vmem:[%s2093_s2 + $0x5c] sm:$0xf] %vm1142_vm1, %v1403_v8  ;;  %1198 = vst.msk [vmem:[%s2093_s2 + $0xdc] sm:$0xf] %vm1142_vm1, %v1435_v9  ;;  %v846_v12 = vmax.f32 %v663_v10, 0.0  ;;  %v878_v13 = vmax.f32 %v791_v11, 0.0 }
 0x147   :  { %v665_v14 = vpop.f32.mrf.mxu0  ;;  %v793_v15 = vpop.f32.mrf.mxu1 }
 0x148   :  { %v1404_v16 = vpack.c.bf16 %v846_v12, %v846_v12  ;;  %v1436_v17 = vpack.c.bf16 %v878_v13, %v878_v13 }
 0x149   :  { %v666_v18 = vpop.f32.mrf.mxu0  ;;  %v794_v19 = vpop.f32.mrf.mxu1 }
 0x14a   :  { %1167 = vst.msk [vmem:[%s2093_s2 + $0x60] sm:$0xf] %vm1142_vm1, %v1404_v16  ;;  %1199 = vst.msk [vmem:[%s2093_s2 + $0xe0] sm:$0xf] %vm1142_vm1, %v1436_v17  ;;  %v847_v20 = vmax.f32 %v666_v18, 0.0  ;;  %v879_v21 = vmax.f32 %v794_v19, 0.0 }
 0x14b   :  { %v668_v22 = vpop.f32.mrf.mxu0  ;;  %v796_v23 = vpop.f32.mrf.mxu1 }
 0x14c   :  { %v1405_v24 = vpack.c.bf16 %v847_v20, %v847_v20  ;;  %v1437_v25 = vpack.c.bf16 %v879_v21, %v879_v21 }
 0x14d   :  { %v671_v26 = vpop.f32.mrf.mxu0  ;;  %v799_v27 = vpop.f32.mrf.mxu1 }
 0x14e   :  { %1168 = vst.msk [vmem:[%s2093_s2 + $0x64] sm:$0xf] %vm1142_vm1, %v1405_v24  ;;  %1200 = vst.msk [vmem:[%s2093_s2 + $0xe4] sm:$0xf] %vm1142_vm1, %v1437_v25  ;;  %v848_v28 = vmax.f32 %v671_v26, 0.0  ;;  %v880_v29 = vmax.f32 %v799_v27, 0.0 }
 0x14f   :  { %v673_v30 = vpop.f32.mrf.mxu0  ;;  %v801_v31 = vpop.f32.mrf.mxu1 }
 0x150   :  { %v1406_v32 = vpack.c.bf16 %v848_v28, %v848_v28  ;;  %v1438_v33 = vpack.c.bf16 %v880_v29, %v880_v29 }
 0x151   :  { %v674_v34 = vpop.f32.mrf.mxu0  ;;  %v802_v35 = vpop.f32.mrf.mxu1 }
 0x152   :  { %1169 = vst.msk [vmem:[%s2093_s2 + $0x68] sm:$0xf] %vm1142_vm1, %v1406_v32  ;;  %1201 = vst.msk [vmem:[%s2093_s2 + $0xe8] sm:$0xf] %vm1142_vm1, %v1438_v33  ;;  %v849_v36 = vmax.f32 %v674_v34, 0.0  ;;  %v881_v37 = vmax.f32 %v802_v35, 0.0 }
 0x153   :  { %v676_v38 = vpop.f32.mrf.mxu0  ;;  %v804_v39 = vpop.f32.mrf.mxu1 }
 0x154   :  { %v1407_v40 = vpack.c.bf16 %v849_v36, %v849_v36  ;;  %v1439_v41 = vpack.c.bf16 %v881_v37, %v881_v37 }
 0x155   :  { %v679_v42 = vpop.f32.mrf.mxu0  ;;  %v807_v43 = vpop.f32.mrf.mxu1 }
 0x156   :  { %1170 = vst.msk [vmem:[%s2093_s2 + $0x6c] sm:$0xf] %vm1142_vm1, %v1407_v40  ;;  %1202 = vst.msk [vmem:[%s2093_s2 + $0xec] sm:$0xf] %vm1142_vm1, %v1439_v41  ;;  %v850_v44 = vmax.f32 %v679_v42, 0.0  ;;  %v882_v45 = vmax.f32 %v807_v43, 0.0 }
 0x157   :  { %v681_v46 = vpop.f32.mrf.mxu0  ;;  %v809_v47 = vpop.f32.mrf.mxu1 }
 0x158   :  { %v1408_v48 = vpack.c.bf16 %v850_v44, %v850_v44  ;;  %v1440_v49 = vpack.c.bf16 %v882_v45, %v882_v45 }
 0x159   :  { %v682_v50 = vpop.f32.mrf.mxu0  ;;  %v810_v51 = vpop.f32.mrf.mxu1 }
 0x15a   :  { %1171 = vst.msk [vmem:[%s2093_s2 + $0x70] sm:$0xf] %vm1142_vm1, %v1408_v48  ;;  %1203 = vst.msk [vmem:[%s2093_s2 + $0xf0] sm:$0xf] %vm1142_vm1, %v1440_v49  ;;  %v851_v52 = vmax.f32 %v682_v50, 0.0  ;;  %v883_v53 = vmax.f32 %v810_v51, 0.0 }
 0x15b   :  { %v684_v54 = vpop.f32.mrf.mxu0  ;;  %v812_v55 = vpop.f32.mrf.mxu1 }
 0x15c   :  { %v1409_v56 = vpack.c.bf16 %v851_v52, %v851_v52  ;;  %v1441_v57 = vpack.c.bf16 %v883_v53, %v883_v53 }
 0x15d   :  { %v687_v58 = vpop.f32.mrf.mxu0  ;;  %v815_v59 = vpop.f32.mrf.mxu1 }
 0x15e   :  { %1172 = vst.msk [vmem:[%s2093_s2 + $0x74] sm:$0xf] %vm1142_vm1, %v1409_v56  ;;  %1204 = vst.msk [vmem:[%s2093_s2 + $0xf4] sm:$0xf] %vm1142_vm1, %v1441_v57  ;;  %v852_v60 = vmax.f32 %v687_v58, 0.0  ;;  %v884_v61 = vmax.f32 %v815_v59, 0.0 }
 0x15f   :  { %v689_v62 = vpop.f32.mrf.mxu0  ;;  %v817_v63 = vpop.f32.mrf.mxu1 }
 0x160   :  { %v1410_v0 = vpack.c.bf16 %v852_v60, %v852_v60  ;;  %v1442_v1 = vpack.c.bf16 %v884_v61, %v884_v61 }
 0x161   :  { %v690_v2 = vpop.f32.mrf.mxu0  ;;  %v818_v3 = vpop.f32.mrf.mxu1 }
 0x162   :  { %1173 = vst.msk [vmem:[%s2093_s2 + $0x78] sm:$0xf] %vm1142_vm1, %v1410_v0  ;;  %1205 = vst.msk [vmem:[%s2093_s2 + $0xf8] sm:$0xf] %vm1142_vm1, %v1442_v1  ;;  %v853_v4 = vmax.f32 %v690_v2, 0.0  ;;  %v885_v5 = vmax.f32 %v818_v3, 0.0 }
 0x163   :  { %v692_v6 = vpop.f32.mrf.mxu0  ;;  %v820_v7 = vpop.f32.mrf.mxu1 }
 0x164   :  { %v1411_v8 = vpack.c.bf16 %v853_v4, %v853_v4  ;;  %v1443_v9 = vpack.c.bf16 %v885_v5, %v885_v5 }
 0x166   :  { %1174 = vst.msk [vmem:[%s2093_s2 + $0x7c] sm:$0xf] %vm1142_vm1, %v1411_v8  ;;  %1206 = vst.msk [vmem:[%s2093_s2 + $0xfc] sm:$0xf] %vm1142_vm1, %v1443_v9 }

// kernel: ednet_forward.19
= control target key start
LH: loop header
LB: loop body
LE: loop exit
PB: predicated region body
PF: predicated region fallthrough
CT: control target
= control target key end

     0   :  { %s1254_s9 = smov 0   ;;  %s1486_s0 = inlined_call_operand.vmem [shape: bf16[2048,72], index: 0, kind: input, shape index: {}]   ;;  %s1487_s1 = inlined_call_operand.vmem [shape: bf16[72,12], index: 1, kind: input, shape index: {}]   ;;  %s1488_s2 = inlined_call_operand.vmem [shape: f32[2048,12], index: 2, kind: output, shape index: {}]  }
   0x1 LB: > { %s983_s10 = sadd.s32 4294967295, %s1237_s9   ;;  %p987_p0 = scmp.ge.s32.totalorder %s1237_s9, 1  ;;  %s1237_s9 = sphi %s1254_s9, %s12_s9  }
   0x2   : > { %p113_p1 = scmp.lt.s32.totalorder %s1237_s9, 5 }
   0x4   : > { %p114_p2 = pnand %p987_p0, %p113_p1 }
   0x5   : > { %s988_s15 = sshll.u32 (!%p114_p2), %s983_s10, 6 }
   0x6   : > { %117 = sbr.rel (%p114_p2) target bundleno = 290 (0x122), region = 28  ;;  %p136_p3 = scmp.lt.s32.totalorder (!%p114_p2), %s988_s15, 255 }
   0xb   : > { %v1194_v0 = vld [vmem:[%s1487_s1 + $0x20] ss:$0 sps:$4 sm:$0xff]   ;;  %vm505_vm0 = vcmask 1043456   ;;  %v1195_v1 = vld [vmem:[%s1487_s1 + $0x18] sm:$0xff]   ;;  %v1196_v3 = vld [vmem:[%s1487_s1 + $0x10] sm:$0xff]   ;;  %s1490_s15 = smov (!%p136_p3, %s988_s15), 255 }
   0xc   : > { %1184 = vmatprep.subr.msk.bf16.mxu0 %vm505_vm0, %v1194_v0  ;;  %1185 = vmatprep.subr.msk.bf16.mxu1 %vm505_vm0, %v1194_v0  ;;  %v507_v2 = vsel %vm505_vm0, %v1194_v0, 0  ;;  %v1197_v4 = vld [vmem:[%s1487_s1 + $0x8] sm:$0xff]   ;;  %s989_s20 = sshll.u32 %s1490_s15, 2  ;;  %vm408_vm1 = vcmask 588800   ;;  %v1198_v7 = vld [vmem:[%s1487_s1] sm:$0xff]   ;;  %s991_s26 = sshll.u32 %s1490_s15, 3 }
   0xd   : > { %1101 = vmatpush3.bf16.msra.mxu0 %v507_v2  ;;  %1179 = vmatpush3.bf16.msra.mxu1 %v507_v2  ;;  %s1280_s23 = scalar_lea.vmem %s1486_s0, %s989_s20  ;;  %s1353_s29 = scalar_lea.vmem %s1488_s2, %s991_s26  ;;  %vm862_vm2 = vcmask 97280  }
   0xe   : > { %1102 = vmatprep.subr.bf16.mxu0 %v1195_v1  ;;  %1175 = vmatprep.subr.bf16.mxu1 %v1195_v1  ;;  %v1199_v5 = vld [vmem:[%s1280_s23] sm:$0xff]   ;;  %v1201_v8 = vld [vmem:[%s1280_s23 + $0x8] sm:$0xff]   ;;  %v1203_v10 = vld [vmem:[%s1280_s23 + $0x10] sm:$0xff]  }
   0xf   : > { %v1200_v6 = vld [vmem:[%s1280_s23 + $0x80] sm:$0xff]   ;;  %1110 = vmatprep.mubr.msk.bf16.mxu0 %vm408_vm1, %v1199_v5  ;;  %v1202_v9 = vld [vmem:[%s1280_s23 + $0x88] sm:$0xff]   ;;  %v1204_v11 = vld [vmem:[%s1280_s23 + $0x90] sm:$0xff]  }
  0x10   : > { %1142 = vmatprep.mubr.msk.bf16.mxu1 %vm408_vm1, %v1200_v6  ;;  %v1205_v12 = vld [vmem:[%s1280_s23 + $0x18] sm:$0xff]   ;;  %v1207_v14 = vld [vmem:[%s1280_s23 + $0x20] sm:$0xff]   ;;  %v1209_v16 = vld [vmem:[%s1280_s23 + $0x28] sm:$0xff]  }
  0x11   : > { %1103 = vmatpush3.bf16.msra.mxu0 %v1195_v1  ;;  %1180 = vmatpush3.bf16.msra.mxu1 %v1195_v1  ;;  %v1206_v13 = vld [vmem:[%s1280_s23 + $0x98] sm:$0xff]   ;;  %v1208_v15 = vld [vmem:[%s1280_s23 + $0xa0] sm:$0xff]   ;;  %v1210_v17 = vld [vmem:[%s1280_s23 + $0xa8] sm:$0xff]  }
  0x12   : > { %1104 = vmatprep.subr.bf16.mxu0 %v1196_v3  ;;  %1176 = vmatprep.subr.bf16.mxu1 %v1196_v3  ;;  %v1211_v18 = vld [vmem:[%s1280_s23 + $0x30] sm:$0xff]   ;;  %v1213_v20 = vld [vmem:[%s1280_s23 + $0x38] sm:$0xff]   ;;  %v1215_v22 = vld [vmem:[%s1280_s23 + $0x40] sm:$0xff]  }
  0x13   : > { %v1212_v19 = vld [vmem:[%s1280_s23 + $0xb0] sm:$0xff]   ;;  %v1214_v21 = vld [vmem:[%s1280_s23 + $0xb8] sm:$0xff]   ;;  %v1216_v23 = vld [vmem:[%s1280_s23 + $0xc0] sm:$0xff]  }
  0x14   : > { %v1217_v24 = vld [vmem:[%s1280_s23 + $0x48] sm:$0xff]   ;;  %v1219_v26 = vld [vmem:[%s1280_s23 + $0x50] sm:$0xff]   ;;  %v1221_v28 = vld [vmem:[%s1280_s23 + $0x58] sm:$0xff]  }
  0x15   : > { %1105 = vmatpush3.bf16.msra.mxu0 %v1196_v3  ;;  %1181 = vmatpush3.bf16.msra.mxu1 %v1196_v3  ;;  %v1218_v25 = vld [vmem:[%s1280_s23 + $0xc8] sm:$0xff]   ;;  %v1220_v27 = vld [vmem:[%s1280_s23 + $0xd0] sm:$0xff]   ;;  %v1222_v29 = vld [vmem:[%s1280_s23 + $0xd8] sm:$0xff]  }
  0x16   : > { %1106 = vmatprep.subr.bf16.mxu0 %v1197_v4  ;;  %1177 = vmatprep.subr.bf16.mxu1 %v1197_v4  ;;  %v1223_v30 = vld [vmem:[%s1280_s23 + $0x60] sm:$0xff]   ;;  %v1225_v32 = vld [vmem:[%s1280_s23 + $0x68] sm:$0xff]   ;;  %v1227_v34 = vld [vmem:[%s1280_s23 + $0x70] sm:$0xff]  }
  0x17   : > { %v1224_v31 = vld [vmem:[%s1280_s23 + $0xe0] sm:$0xff]   ;;  %v1226_v33 = vld [vmem:[%s1280_s23 + $0xe8] sm:$0xff]   ;;  %v1228_v35 = vld [vmem:[%s1280_s23 + $0xf0] sm:$0xff]  }
  0x18   : > { %v1229_v36 = vld [vmem:[%s1280_s23 + $0x78] sm:$0xff]  }
  0x19   : > { %1107 = vmatpush3.bf16.msra.mxu0 %v1197_v4  ;;  %1182 = vmatpush3.bf16.msra.mxu1 %v1197_v4  ;;  %v1230_v37 = vld [vmem:[%s1280_s23 + $0xf8] sm:$0xff]  }
  0x1a   : > { %1108 = vmatprep.subr.bf16.mxu0 %v1198_v7  ;;  %1178 = vmatprep.subr.bf16.mxu1 %v1198_v7 }
  0x1d   : > { %1109 = vmatpush3.bf16.msra.mxu0 %v1198_v7  ;;  %1183 = vmatpush3.bf16.msra.mxu1 %v1198_v7 }
  0x20   : > { %1111 = vmatmul.mubr.msk.bf16.vlgmr.msra.gmra.mxu0 %vm408_vm1, %v1201_v8  ;;  %1143 = vmatmul.mubr.msk.bf16.vlgmr.msra.gmra.mxu1 %vm408_vm1, %v1202_v9 }
  0x21   : > { %1114 = vmatprep.mubr.msk.bf16.mxu0 %vm408_vm1, %v1203_v10  ;;  %1146 = vmatprep.mubr.msk.bf16.mxu1 %vm408_vm1, %v1204_v11 }
  0x28   : > { %1115 = vmatmul.mubr.msk.bf16.gmra.mxu0 %vm408_vm1, %v1205_v12  ;;  %1147 = vmatmul.mubr.msk.bf16.gmra.mxu1 %vm408_vm1, %v1206_v13 }
  0x29   : > { %1118 = vmatprep.mubr.msk.bf16.mxu0 %vm408_vm1, %v1207_v14  ;;  %1150 = vmatprep.mubr.msk.bf16.mxu1 %vm408_vm1, %v1208_v15 }
  0x30   : > { %1119 = vmatmul.mubr.msk.bf16.gmra.mxu0 %vm408_vm1, %v1209_v16  ;;  %1151 = vmatmul.mubr.msk.bf16.gmra.mxu1 %vm408_vm1, %v1210_v17 }
  0x31   : > { %1122 = vmatprep.mubr.msk.bf16.mxu0 %vm408_vm1, %v1211_v18  ;;  %1154 = vmatprep.mubr.msk.bf16.mxu1 %vm408_vm1, %v1212_v19 }
  0x38   : > { %1123 = vmatmul.mubr.msk.bf16.gmra.mxu0 %vm408_vm1, %v1213_v20  ;;  %1155 = vmatmul.mubr.msk.bf16.gmra.mxu1 %vm408_vm1, %v1214_v21 }
  0x39   : > { %1126 = vmatprep.mubr.msk.bf16.mxu0 %vm408_vm1, %v1215_v22  ;;  %1158 = vmatprep.mubr.msk.bf16.mxu1 %vm408_vm1, %v1216_v23 }
  0x40   : > { %1127 = vmatmul.mubr.msk.bf16.gmra.mxu0 %vm408_vm1, %v1217_v24  ;;  %1159 = vmatmul.mubr.msk.bf16.gmra.mxu1 %vm408_vm1, %v1218_v25 }
  0x41   : > { %1130 = vmatprep.mubr.msk.bf16.mxu0 %vm408_vm1, %v1219_v26  ;;  %1162 = vmatprep.mubr.msk.bf16.mxu1 %vm408_vm1, %v1220_v27 }
  0x48   : > { %1131 = vmatmul.mubr.msk.bf16.gmra.mxu0 %vm408_vm1, %v1221_v28  ;;  %1163 = vmatmul.mubr.msk.bf16.gmra.mxu1 %vm408_vm1, %v1222_v29 }
  0x49   : > { %1134 = vmatprep.mubr.msk.bf16.mxu0 %vm408_vm1, %v1223_v30  ;;  %1166 = vmatprep.mubr.msk.bf16.mxu1 %vm408_vm1, %v1224_v31 }
  0x50   : > { %1135 = vmatmul.mubr.msk.bf16.gmra.mxu0 %vm408_vm1, %v1225_v32  ;;  %1167 = vmatmul.mubr.msk.bf16.gmra.mxu1 %vm408_vm1, %v1226_v33 }
  0x51   : > { %1138 = vmatprep.mubr.msk.bf16.mxu0 %vm408_vm1, %v1227_v34  ;;  %1170 = vmatprep.mubr.msk.bf16.mxu1 %vm408_vm1, %v1228_v35 }
  0x58   : > { %1139 = vmatmul.mubr.msk.bf16.gmra.mxu0 %vm408_vm1, %v1229_v36  ;;  %1171 = vmatmul.mubr.msk.bf16.gmra.mxu1 %vm408_vm1, %v1230_v37 }
  0xe0   : > { %v1112_v38 = vpop.f32.mrf.mxu0  ;;  %v1144_v39 = vpop.f32.mrf.mxu1 }
  0xe1   : > { %v800_v40 = vmax.f32 %v1112_v38, 0.0  ;;  %v832_v41 = vmax.f32 %v1144_v39, 0.0 }
  0xe2   : > { %v543_v42 = vpop.f32.mrf.mxu0  ;;  %v671_v43 = vpop.f32.mrf.mxu1 }
  0xe3   : > { %865 = vst.msk [vmem:[%s1353_s29 + $0x10] sm:$0xff] %vm862_vm2, %v800_v40  ;;  %897 = vst.msk [vmem:[%s1353_s29 + $0x110] sm:$0xff] %vm862_vm2, %v832_v41  ;;  %v798_v44 = vmax.f32 %v543_v42, 0.0  ;;  %v830_v45 = vmax.f32 %v671_v43, 0.0 }
  0xe4   : > { %v1113_v46 = vpop.f32.mrf.mxu0  ;;  %v1145_v47 = vpop.f32.mrf.mxu1 }
  0xe5   : > { %863 = vst.msk [vmem:[%s1353_s29] sm:$0xff] %vm862_vm2, %v798_v44  ;;  %895 = vst.msk [vmem:[%s1353_s29 + $0x100] sm:$0xff] %vm862_vm2, %v830_v45  ;;  %v801_v48 = vmax.f32 %v1113_v46, 0.0  ;;  %v833_v49 = vmax.f32 %v1145_v47, 0.0 }
  0xe6   : > { %v546_v50 = vpop.f32.mrf.mxu0  ;;  %v674_v51 = vpop.f32.mrf.mxu1 }
  0xe7   : > { %866 = vst.msk [vmem:[%s1353_s29 + $0x18] sm:$0xff] %vm862_vm2, %v801_v48  ;;  %898 = vst.msk [vmem:[%s1353_s29 + $0x118] sm:$0xff] %vm862_vm2, %v833_v49  ;;  %v799_v52 = vmax.f32 %v546_v50, 0.0  ;;  %v831_v53 = vmax.f32 %v674_v51, 0.0 }
  0xe8   : > { %v1116_v54 = vpop.f32.mrf.mxu0  ;;  %v1148_v55 = vpop.f32.mrf.mxu1 }
  0xe9   : > { %864 = vst.msk [vmem:[%s1353_s29 + $0x8] sm:$0xff] %vm862_vm2, %v799_v52  ;;  %896 = vst.msk [vmem:[%s1353_s29 + $0x108] sm:$0xff] %vm862_vm2, %v831_v53  ;;  %v804_v56 = vmax.f32 %v1116_v54, 0.0  ;;  %v836_v57 = vmax.f32 %v1148_v55, 0.0 }
  0xea   : > { %v559_v58 = vpop.f32.mrf.mxu0  ;;  %v687_v59 = vpop.f32.mrf.mxu1 }
  0xeb   : > { %869 = vst.msk [vmem:[%s1353_s29 + $0x30] sm:$0xff] %vm862_vm2, %v804_v56  ;;  %901 = vst.msk [vmem:[%s1353_s29 + $0x130] sm:$0xff] %vm862_vm2, %v836_v57  ;;  %v802_v60 = vmax.f32 %v559_v58, 0.0  ;;  %v834_v61 = vmax.f32 %v687_v59, 0.0 }
  0xec   : > { %v1117_v62 = vpop.f32.mrf.mxu0  ;;  %v1149_v63 = vpop.f32.mrf.mxu1 }
  0xed   : > { %867 = vst.msk [vmem:[%s1353_s29 + $0x20] sm:$0xff] %vm862_vm2, %v802_v60  ;;  %899 = vst.msk [vmem:[%s1353_s29 + $0x120] sm:$0xff] %vm862_vm2, %v834_v61  ;;  %v805_v0 = vmax.f32 %v1117_v62, 0.0  ;;  %v837_v1 = vmax.f32 %v1149_v63, 0.0 }
  0xee   : > { %v562_v2 = vpop.f32.mrf.mxu0  ;;  %v690_v3 = vpop.f32.mrf.mxu1 }
  0xef   : > { %870 = vst.msk [vmem:[%s1353_s29 + $0x38] sm:$0xff] %vm862_vm2, %v805_v0  ;;  %902 = vst.msk [vmem:[%s1353_s29 + $0x138] sm:$0xff] %vm862_vm2, %v837_v1  ;;  %v803_v4 = vmax.f32 %v562_v2, 0.0  ;;  %v835_v5 = vmax.f32 %v690_v3, 0.0 }
  0xf0   : > { %v1120_v6 = vpop.f32.mrf.mxu0  ;;  %v1152_v7 = vpop.f32.mrf.mxu1 }
  0xf1   : > { %868 = vst.msk [vmem:[%s1353_s29 + $0x28] sm:$0xff] %vm862_vm2, %v803_v4  ;;  %900 = vst.msk [vmem:[%s1353_s29 + $0x128] sm:$0xff] %vm862_vm2, %v835_v5  ;;  %v808_v8 = vmax.f32 %v1120_v6, 0.0  ;;  %v840_v9 = vmax.f32 %v1152_v7, 0.0 }
  0xf2   : > { %v575_v10 = vpop.f32.mrf.mxu0  ;;  %v703_v11 = vpop.f32.mrf.mxu1 }
  0xf3   : > { %873 = vst.msk [vmem:[%s1353_s29 + $0x50] sm:$0xff] %vm862_vm2, %v808_v8  ;;  %905 = vst.msk [vmem:[%s1353_s29 + $0x150] sm:$0xff] %vm862_vm2, %v840_v9  ;;  %v806_v12 = vmax.f32 %v575_v10, 0.0  ;;  %v838_v13 = vmax.f32 %v703_v11, 0.0 }
  0xf4   : > { %v1121_v14 = vpop.f32.mrf.mxu0  ;;  %v1153_v15 = vpop.f32.mrf.mxu1 }
  0xf5   : > { %871 = vst.msk [vmem:[%s1353_s29 + $0x40] sm:$0xff] %vm862_vm2, %v806_v12  ;;  %903 = vst.msk [vmem:[%s1353_s29 + $0x140] sm:$0xff] %vm862_vm2, %v838_v13  ;;  %v809_v16 = vmax.f32 %v1121_v14, 0.0  ;;  %v841_v17 = vmax.f32 %v1153_v15, 0.0 }
  0xf6   : > { %v578_v18 = vpop.f32.mrf.mxu0  ;;  %v706_v19 = vpop.f32.mrf.mxu1 }
  0xf7   : > { %874 = vst.msk [vmem:[%s1353_s29 + $0x58] sm:$0xff] %vm862_vm2, %v809_v16  ;;  %906 = vst.msk [vmem:[%s1353_s29 + $0x158] sm:$0xff] %vm862_vm2, %v841_v17  ;;  %v807_v20 = vmax.f32 %v578_v18, 0.0  ;;  %v839_v21 = vmax.f32 %v706_v19, 0.0 }
  0xf8   : > { %v1124_v22 = vpop.f32.mrf.mxu0  ;;  %v1156_v23 = vpop.f32.mrf.mxu1 }
  0xf9   : > { %872 = vst.msk [vmem:[%s1353_s29 + $0x48] sm:$0xff] %vm862_vm2, %v807_v20  ;;  %904 = vst.msk [vmem:[%s1353_s29 + $0x148] sm:$0xff] %vm862_vm2, %v839_v21  ;;  %v812_v24 = vmax.f32 %v1124_v22, 0.0  ;;  %v844_v25 = vmax.f32 %v1156_v23, 0.0 }
  0xfa   : > { %v591_v26 = vpop.f32.mrf.mxu0  ;;  %v719_v27 = vpop.f32.mrf.mxu1 }
  0xfb   : > { %877 = vst.msk [vmem:[%s1353_s29 + $0x70] sm:$0xff] %vm862_vm2, %v812_v24  ;;  %909 = vst.msk [vmem:[%s1353_s29 + $0x170] sm:$0xff] %vm862_vm2, %v844_v25  ;;  %v810_v28 = vmax.f32 %v591_v26, 0.0  ;;  %v842_v29 = vmax.f32 %v719_v27, 0.0 }
  0xfc   : > { %v1125_v30 = vpop.f32.mrf.mxu0  ;;  %v1157_v31 = vpop.f32.mrf.mxu1 }
  0xfd   : > { %875 = vst.msk [vmem:[%s1353_s29 + $0x60] sm:$0xff] %vm862_vm2, %v810_v28  ;;  %907 = vst.msk [vmem:[%s1353_s29 + $0x160] sm:$0xff] %vm862_vm2, %v842_v29  ;;  %v813_v32 = vmax.f32 %v1125_v30, 0.0  ;;  %v845_v33 = vmax.f32 %v1157_v31, 0.0 }
  0xfe   : > { %v594_v34 = vpop.f32.mrf.mxu0  ;;  %v722_v35 = vpop.f32.mrf.mxu1 }
  0xff   : > { %878 = vst.msk [vmem:[%s1353_s29 + $0x78] sm:$0xff] %vm862_vm2, %v813_v32  ;;  %910 = vst.msk [vmem:[%s1353_s29 + $0x178] sm:$0xff] %vm862_vm2, %v845_v33  ;;  %v811_v36 = vmax.f32 %v594_v34, 0.0  ;;  %v843_v37 = vmax.f32 %v722_v35, 0.0 }
 0x100   : > { %v1128_v38 = vpop.f32.mrf.mxu0  ;;  %v1160_v39 = vpop.f32.mrf.mxu1 }
 0x101   : > { %876 = vst.msk [vmem:[%s1353_s29 + $0x68] sm:$0xff] %vm862_vm2, %v811_v36  ;;  %908 = vst.msk [vmem:[%s1353_s29 + $0x168] sm:$0xff] %vm862_vm2, %v843_v37  ;;  %v816_v40 = vmax.f32 %v1128_v38, 0.0  ;;  %v848_v41 = vmax.f32 %v1160_v39, 0.0 }
 0x102   : > { %v607_v42 = vpop.f32.mrf.mxu0  ;;  %v735_v43 = vpop.f32.mrf.mxu1 }
 0x103   : > { %881 = vst.msk [vmem:[%s1353_s29 + $0x90] sm:$0xff] %vm862_vm2, %v816_v40  ;;  %913 = vst.msk [vmem:[%s1353_s29 + $0x190] sm:$0xff] %vm862_vm2, %v848_v41  ;;  %v814_v44 = vmax.f32 %v607_v42, 0.0  ;;  %v846_v45 = vmax.f32 %v735_v43, 0.0 }
 0x104   : > { %v1129_v46 = vpop.f32.mrf.mxu0  ;;  %v1161_v47 = vpop.f32.mrf.mxu1 }
 0x105   : > { %879 = vst.msk [vmem:[%s1353_s29 + $0x80] sm:$0xff] %vm862_vm2, %v814_v44  ;;  %911 = vst.msk [vmem:[%s1353_s29 + $0x180] sm:$0xff] %vm862_vm2, %v846_v45  ;;  %v817_v48 = vmax.f32 %v1129_v46, 0.0  ;;  %v849_v49 = vmax.f32 %v1161_v47, 0.0 }
 0x106   : > { %v610_v50 = vpop.f32.mrf.mxu0  ;;  %v738_v51 = vpop.f32.mrf.mxu1 }
 0x107   : > { %882 = vst.msk [vmem:[%s1353_s29 + $0x98] sm:$0xff] %vm862_vm2, %v817_v48  ;;  %914 = vst.msk [vmem:[%s1353_s29 + $0x198] sm:$0xff] %vm862_vm2, %v849_v49  ;;  %v815_v52 = vmax.f32 %v610_v50, 0.0  ;;  %v847_v53 = vmax.f32 %v738_v51, 0.0 }
 0x108   : > { %v1132_v54 = vpop.f32.mrf.mxu0  ;;  %v1164_v55 = vpop.f32.mrf.mxu1 }
 0x109   : > { %880 = vst.msk [vmem:[%s1353_s29 + $0x88] sm:$0xff] %vm862_vm2, %v815_v52  ;;  %912 = vst.msk [vmem:[%s1353_s29 + $0x188] sm:$0xff] %vm862_vm2, %v847_v53  ;;  %v820_v56 = vmax.f32 %v1132_v54, 0.0  ;;  %v852_v57 = vmax.f32 %v1164_v55, 0.0 }
 0x10a   : > { %v623_v58 = vpop.f32.mrf.mxu0  ;;  %v751_v59 = vpop.f32.mrf.mxu1 }
 0x10b   : > { %885 = vst.msk [vmem:[%s1353_s29 + $0xb0] sm:$0xff] %vm862_vm2, %v820_v56  ;;  %917 = vst.msk [vmem:[%s1353_s29 + $0x1b0] sm:$0xff] %vm862_vm2, %v852_v57  ;;  %v818_v60 = vmax.f32 %v623_v58, 0.0  ;;  %v850_v61 = vmax.f32 %v751_v59, 0.0 }
 0x10c   : > { %v1133_v62 = vpop.f32.mrf.mxu0  ;;  %v1165_v63 = vpop.f32.mrf.mxu1 }
 0x10d   : > { %883 = vst.msk [vmem:[%s1353_s29 + $0xa0] sm:$0xff] %vm862_vm2, %v818_v60  ;;  %915 = vst.msk [vmem:[%s1353_s29 + $0x1a0] sm:$0xff] %vm862_vm2, %v850_v61  ;;  %v821_v0 = vmax.f32 %v1133_v62, 0.0  ;;  %v853_v1 = vmax.f32 %v1165_v63, 0.0 }
 0x10e   : > { %v626_v2 = vpop.f32.mrf.mxu0  ;;  %v754_v3 = vpop.f32.mrf.mxu1 }
 0x10f   : > { %886 = vst.msk [vmem:[%s1353_s29 + $0xb8] sm:$0xff] %vm862_vm2, %v821_v0  ;;  %918 = vst.msk [vmem:[%s1353_s29 + $0x1b8] sm:$0xff] %vm862_vm2, %v853_v1  ;;  %v819_v4 = vmax.f32 %v626_v2, 0.0  ;;  %v851_v5 = vmax.f32 %v754_v3, 0.0 }
 0x110   : > { %v1136_v6 = vpop.f32.mrf.mxu0  ;;  %v1168_v7 = vpop.f32.mrf.mxu1 }
 0x111   : > { %884 = vst.msk [vmem:[%s1353_s29 + $0xa8] sm:$0xff] %vm862_vm2, %v819_v4  ;;  %916 = vst.msk [vmem:[%s1353_s29 + $0x1a8] sm:$0xff] %vm862_vm2, %v851_v5  ;;  %v824_v8 = vmax.f32 %v1136_v6, 0.0  ;;  %v856_v9 = vmax.f32 %v1168_v7, 0.0 }
 0x112   : > { %v639_v10 = vpop.f32.mrf.mxu0  ;;  %v767_v11 = vpop.f32.mrf.mxu1 }
 0x113   : > { %889 = vst.msk [vmem:[%s1353_s29 + $0xd0] sm:$0xff] %vm862_vm2, %v824_v8  ;;  %921 = vst.msk [vmem:[%s1353_s29 + $0x1d0] sm:$0xff] %vm862_vm2, %v856_v9  ;;  %v822_v12 = vmax.f32 %v639_v10, 0.0  ;;  %v854_v13 = vmax.f32 %v767_v11, 0.0 }
 0x114   : > { %v1137_v14 = vpop.f32.mrf.mxu0  ;;  %v1169_v15 = vpop.f32.mrf.mxu1 }
 0x115   : > { %887 = vst.msk [vmem:[%s1353_s29 + $0xc0] sm:$0xff] %vm862_vm2, %v822_v12  ;;  %919 = vst.msk [vmem:[%s1353_s29 + $0x1c0] sm:$0xff] %vm862_vm2, %v854_v13  ;;  %v825_v16 = vmax.f32 %v1137_v14, 0.0  ;;  %v857_v17 = vmax.f32 %v1169_v15, 0.0 }
 0x116   : > { %v642_v18 = vpop.f32.mrf.mxu0  ;;  %v770_v19 = vpop.f32.mrf.mxu1 }
 0x117   : > { %890 = vst.msk [vmem:[%s1353_s29 + $0xd8] sm:$0xff] %vm862_vm2, %v825_v16  ;;  %922 = vst.msk [vmem:[%s1353_s29 + $0x1d8] sm:$0xff] %vm862_vm2, %v857_v17  ;;  %v823_v20 = vmax.f32 %v642_v18, 0.0  ;;  %v855_v21 = vmax.f32 %v770_v19, 0.0 }
 0x118   : > { %v1140_v22 = vpop.f32.mrf.mxu0  ;;  %v1172_v23 = vpop.f32.mrf.mxu1 }
 0x119   : > { %888 = vst.msk [vmem:[%s1353_s29 + $0xc8] sm:$0xff] %vm862_vm2, %v823_v20  ;;  %920 = vst.msk [vmem:[%s1353_s29 + $0x1c8] sm:$0xff] %vm862_vm2, %v855_v21  ;;  %v828_v24 = vmax.f32 %v1140_v22, 0.0  ;;  %v860_v25 = vmax.f32 %v1172_v23, 0.0 }
 0x11a   : > { %v655_v26 = vpop.f32.mrf.mxu0  ;;  %v783_v27 = vpop.f32.mrf.mxu1 }
 0x11b   : > { %893 = vst.msk [vmem:[%s1353_s29 + $0xf0] sm:$0xff] %vm862_vm2, %v828_v24  ;;  %925 = vst.msk [vmem:[%s1353_s29 + $0x1f0] sm:$0xff] %vm862_vm2, %v860_v25  ;;  %v826_v28 = vmax.f32 %v655_v26, 0.0  ;;  %v858_v29 = vmax.f32 %v783_v27, 0.0 }
 0x11c   : > { %v1141_v30 = vpop.f32.mrf.mxu0  ;;  %v1173_v31 = vpop.f32.mrf.mxu1 }
 0x11d   : > { %891 = vst.msk [vmem:[%s1353_s29 + $0xe0] sm:$0xff] %vm862_vm2, %v826_v28  ;;  %923 = vst.msk [vmem:[%s1353_s29 + $0x1e0] sm:$0xff] %vm862_vm2, %v858_v29  ;;  %v829_v32 = vmax.f32 %v1141_v30, 0.0  ;;  %v861_v33 = vmax.f32 %v1173_v31, 0.0 }
 0x11e   : > { %v658_v34 = vpop.f32.mrf.mxu0  ;;  %v786_v35 = vpop.f32.mrf.mxu1 }
 0x11f   : > { %894 = vst.msk [vmem:[%s1353_s29 + $0xf8] sm:$0xff] %vm862_vm2, %v829_v32  ;;  %926 = vst.msk [vmem:[%s1353_s29 + $0x1f8] sm:$0xff] %vm862_vm2, %v861_v33  ;;  %v827_v36 = vmax.f32 %v658_v34, 0.0  ;;  %v859_v37 = vmax.f32 %v786_v35, 0.0 }
 0x121   : > { %892 = vst.msk [vmem:[%s1353_s29 + $0xe8] sm:$0xff] %vm862_vm2, %v827_v36  ;;  %924 = vst.msk [vmem:[%s1353_s29 + $0x1e8] sm:$0xff] %vm862_vm2, %v859_v37 }
 0x122 PF: > { %s12_s9 = sadd.s32 1, %s1237_s9  }
 0x123   : > { %p9_p4 = scmp.ge.s32.totalorder %s12_s9, 6  }
 0x125   :  { %11 = sbr.rel (!%p9_p4) target bundleno = 1 (0x1), region = 58 }

</bundles_post_ra>
